<compile_context>
chip_gen: v7x
topology: tpu7x:2x2x1
jax: 0.10.0
libtpu: 0.0.40
codegen_flags: <defaults>
</compile_context>

<pallas_src>
import math
import functools

import jax
import jax.numpy as jnp
from jax.experimental import pallas as pl
from jax.experimental.pallas import tpu as pltpu

_SQRT2_INV = 1.0 / math.sqrt(2.0)
_OPERAND_DTYPE = jnp.bfloat16     # MXU operand dtype (accumulation is f32)
_ACT_DTYPE = jnp.bfloat16         # storage dtype of intermediate activations
_TM_MAX = 256                     # max rows per M-tile
_ACC_BLOCK_BYTES = 1 << 20        # cap on the per-block f32 accumulator (tm * N * 4)


# ------------------------------ in-kernel math ------------------------------

def _erf(x):
    # Abramowitz & Stegun 7.1.26 (max abs err ~1.5e-7); matches torch's erf-based
    # F.gelu closely. Reciprocal goes to the EUP (free bundle slot).
    a1, a2, a3, a4, a5 = 0.254829592, -0.284496736, 1.421413741, -1.453152027, 1.061405429
    p = 0.3275911
    ax = jnp.abs(x)
    t = pl.reciprocal(1.0 + p * ax, approx=True)
    poly = ((((a5 * t + a4) * t + a3) * t + a2) * t + a1) * t
    y = 1.0 - poly * jnp.exp(-ax * ax)
    return jnp.where(x >= 0, y, -y)


def _gelu(x):
    return 0.5 * x * (1.0 + _erf(x * _SQRT2_INV))


def _matmul_bias_act_kernel(x_ref, w_ref, b_ref, o_ref, *, apply_gelu):
    acc = jnp.dot(x_ref[...], w_ref[...], preferred_element_type=jnp.float32)
    acc = acc + b_ref[...]                       # f32 bias add
    if apply_gelu:
        acc = _gelu(acc)                         # f32 GELU (v5e-safe)
    o_ref[...] = acc.astype(o_ref.dtype)


def _conv_cout1_kernel(cols_ref, w_ref, b_ref, o_ref):
    # Cout=1 conv: VPU multiply + lane reduce (no 1/128 MXU-column waste).
    c = cols_ref[...].astype(jnp.float32)        # (tm, K)
    w = w_ref[...].astype(jnp.float32)           # (1,  K)
    acc = jnp.sum(c * w, axis=1, keepdims=True) + b_ref[...]
    o_ref[...] = acc.astype(o_ref.dtype)


# ------------------------------ pallas wrappers ------------------------------

def _pick_tm(M, N):
    """Largest M-tile (multiple of 8, <= _TM_MAX) whose f32 acc block stays small."""
    tm = (_ACC_BLOCK_BYTES // (4 * N)) // 8 * 8
    tm = max(8, min(_TM_MAX, tm))
    return M if M <= tm else tm


def fused_matmul_bias_act(x2d, w2d, bias, apply_gelu, out_dtype):
    """out = gelu?(x2d @ w2d + bias); M-tiled, bf16 MXU operands, f32 accumulation."""
    M, K = x2d.shape
    K2, N = w2d.shape
    assert K == K2
    x2d = x2d.astype(_OPERAND_DTYPE)
    w2d = w2d.astype(_OPERAND_DTYPE)
    b2d = bias.reshape(1, N).astype(jnp.float32)
    tm = _pick_tm(M, N)
    kernel = functools.partial(_matmul_bias_act_kernel, apply_gelu=apply_gelu)
    return pl.pallas_call(
        kernel,
        out_shape=jax.ShapeDtypeStruct((M, N), out_dtype),
        grid=(pl.cdiv(M, tm),),
        in_specs=[
            pl.BlockSpec((tm, K), lambda i: (i, 0)),
            pl.BlockSpec((K, N), lambda i: (0, 0)),
            pl.BlockSpec((1, N), lambda i: (0, 0)),
        ],
        out_specs=pl.BlockSpec((tm, N), lambda i: (i, 0)),
        compiler_params=pltpu.CompilerParams(dimension_semantics=("parallel",)),
    )(x2d, w2d, b2d)


def conv_cout1_matvec(cols, w_row, bias):
    """out[:, 0] = cols @ w_row[0] + bias, as a VPU multiply + lane-reduce kernel."""
    M, K = cols.shape
    tm = _pick_tm(M, K)
    return pl.pallas_call(
        _conv_cout1_kernel,
        out_shape=jax.ShapeDtypeStruct((M, 1), jnp.float32),
        grid=(pl.cdiv(M, tm),),
        in_specs=[
            pl.BlockSpec((tm, K), lambda i: (i, 0)),
            pl.BlockSpec((1, K), lambda i: (0, 0)),
            pl.BlockSpec((1, 1), lambda i: (0, 0)),
        ],
        out_specs=pl.BlockSpec((tm, 1), lambda i: (i, 0)),
        compiler_params=pltpu.CompilerParams(dimension_semantics=("parallel",)),
    )(cols.astype(_OPERAND_DTYPE), w_row.astype(jnp.float32),
      bias.reshape(1, 1).astype(jnp.float32))


# ----------------- layout plumbing (stays in JAX / XLA, HBM only) -----------------

def _im2col(x, k):
    # x: (B, H, W, C) -> (B, Ho, Wo, k*k*C), last-dim order (kh, kw, c)
    B, H, W, C = x.shape
    Ho, Wo = H - k + 1, W - k + 1
    cols = [x[:, kh:kh + Ho, kw:kw + Wo, :] for kh in range(k) for kw in range(k)]
    return jnp.concatenate(cols, axis=-1)


def _conv_transpose2d_phased(x_nhwc, w_mat, b_vec, stride, apply_gelu):
    # stride-s ConvTranspose2d with kernel = 2*s, as ONE valid conv over the
    # UNDILATED input: pad by 1, take 2x2 patches, and let the matmul's N axis
    # enumerate the s*s output phases; interleave the phases afterwards.
    B, H, W, Cin = x_nhwc.shape
    s = stride
    cout = w_mat.shape[1] // (s * s)
    qs = int(round(math.sqrt(w_mat.shape[0] // Cin)))            # taps per axis (=2)
    xp = jnp.pad(x_nhwc, ((0, 0), (qs - 1, qs - 1), (qs - 1, qs - 1), (0, 0)))
    cols = _im2col(xp, qs)                                       # (B, H+1, W+1, 4*Cin)
    Hp, Wp = H + qs - 1, W + qs - 1
    out2d = fused_matmul_bias_act(cols.reshape(B * Hp * Wp, qs * qs * Cin),
                                  w_mat, b_vec, apply_gelu=apply_gelu,
                                  out_dtype=_ACT_DTYPE)          # (M, s*s*cout)
    out = out2d.reshape(B, Hp, Wp, s, s, cout)
    out = out.transpose(0, 1, 3, 2, 4, 5).reshape(B, s * Hp, s * Wp, cout)
    return out                                                   # (B, 2H+2, 2W+2, cout)


# --------------------------- offline weight packing ---------------------------

def _pack_lin1_weights(w_torch, bias):
    # w_torch: (7*7*64, latent) torch Linear layout; out index flattens as (c, h, w)
    # [because of view(-1, 64, 7, 7)]. Permute to (h, w, c) so the linear output is
    # directly NHWC-ordered — removes the activation transpose after lin1.
    out_f, _ = w_torch.shape
    perm = jnp.arange(out_f).reshape(64, 7, 7).transpose(1, 2, 0).reshape(-1)
    w_hwc = w_torch[perm, :]
    b_hwc = bias[perm]
    return jnp.transpose(w_hwc).astype(_OPERAND_DTYPE), b_hwc.astype(jnp.float32)


def _pack_conv_transpose_weights(w_torch, bias, stride):
    # w_torch: PyTorch ConvTranspose2d weight (Cin, Cout, kH, kW), kH = kW = 2*stride.
    # Rows ordered (tap_h, tap_w, ci) to match _im2col; cols ordered (ph, pw, co).
    Cin, Cout, kH, kW = w_torch.shape
    s = stride
    assert kH == kW == 2 * s, "phase decomposition assumes kernel == 2*stride"
    q = kH // s                                          # taps per phase per axis (=2)
    w_r = w_torch.reshape(Cin, Cout, q, s, q, s)         # (ci, co, jh, ph, jw, pw)
    w_f = jnp.flip(w_r, axis=(2, 4))                     # tap a = q-1-jh, b = q-1-jw
    w_mat = w_f.transpose(2, 4, 0, 3, 5, 1).reshape(q * q * Cin, s * s * Cout)
    b_vec = jnp.tile(bias, s * s)
    return w_mat.astype(_OPERAND_DTYPE), b_vec.astype(jnp.float32)


def _pack_conv_weights(w_torch, bias):
    # w_torch: PyTorch Conv2d weight (Cout=1, Cin, k, k) -> row in (kh, kw, ci) order.
    Cout, Cin, k, _ = w_torch.shape
    assert Cout == 1
    w_row = w_torch[0].transpose(1, 2, 0).reshape(1, k * k * Cin)
    return w_row.astype(jnp.float32), bias.astype(jnp.float32)


def prepare_params(params):
    lin1_wT, lin1_b = _pack_lin1_weights(params["lin1_w"], params["lin1_b"])
    ct1_w, ct1_b = _pack_conv_transpose_weights(params["ct1_w"], params["ct1_b"], stride=2)
    ct2_w, ct2_b = _pack_conv_transpose_weights(params["ct2_w"], params["ct2_b"], stride=2)
    conv_w, conv_b = _pack_conv_weights(params["conv_w"], params["conv_b"])
    return {"lin1_wT": lin1_wT, "lin1_b": lin1_b,
            "ct1_w": ct1_w, "ct1_b": ct1_b,
            "ct2_w": ct2_w, "ct2_b": ct2_b,
            "conv_w": conv_w, "conv_b": conv_b}


# ---------------------------- Generator forward ----------------------------

def generator_forward(prepared, x):
    B = x.shape[0]
    # lin1 + GELU : (B, latent) @ (latent, 3136); weight pre-permuted to HWC order.
    h = fused_matmul_bias_act(x, prepared["lin1_wT"], prepared["lin1_b"],
                              apply_gelu=True, out_dtype=_ACT_DTYPE)
    h = h.reshape(B, 7, 7, 64)                                   # NHWC, no transpose
    # ct1 + GELU : -> (B, 16, 16, 32)
    h = _conv_transpose2d_phased(h, prepared["ct1_w"], prepared["ct1_b"],
                                 stride=2, apply_gelu=True)
    # ct2 + GELU : -> (B, 34, 34, 16)
    h = _conv_transpose2d_phased(h, prepared["ct2_w"], prepared["ct2_b"],
                                 stride=2, apply_gelu=True)
    # final Conv2d(16, 1, kernel_size=7) : -> (B, 28, 28, 1)
    Cin = h.shape[-1]
    k = int(round(math.sqrt(prepared["conv_w"].shape[1] // Cin)))
    cols = _im2col(h, k)
    Bc, Ho, Wo, KC = cols.shape
    out = conv_cout1_matvec(cols.reshape(Bc * Ho * Wo, KC),
                            prepared["conv_w"], prepared["conv_b"])
    out = out.reshape(B, Ho, Wo, 1)
    return out.transpose(0, 3, 1, 2)                             # back to NCHW


def init_params(key, latent_dim):
    # Deterministic synthetic init (PyTorch-like uniform(-1/sqrt(fan_in), 1/sqrt(fan_in))).
    ks = jax.random.split(key, 8)

    def u(k, shape, fan_in):
        bound = 1.0 / math.sqrt(fan_in)
        return jax.random.uniform(k, shape, jnp.float32, -bound, bound)

    return {
        "lin1_w": u(ks[0], (7 * 7 * 64, latent_dim), latent_dim),   # torch Linear (out, in)
        "lin1_b": u(ks[1], (7 * 7 * 64,), latent_dim),
        "ct1_w": u(ks[2], (64, 32, 4, 4), 32 * 4 * 4),              # ConvTranspose2d (Cin, Cout, k, k)
        "ct1_b": u(ks[3], (32,), 32 * 4 * 4),
        "ct2_w": u(ks[4], (32, 16, 4, 4), 16 * 4 * 4),
        "ct2_b": u(ks[5], (16,), 16 * 4 * 4),
        "conv_w": u(ks[6], (1, 16, 7, 7), 16 * 7 * 7),              # Conv2d (Cout, Cin, k, k)
        "conv_b": u(ks[7], (1,), 16 * 7 * 7),
    }


if __name__ == "__main__":
    latent_dim = 32
    batch = 2
    key = jax.random.PRNGKey(0)
    pkey, xkey = jax.random.split(key)
    params = init_params(pkey, latent_dim)
    prepared = prepare_params(params)          # one-time offline weight packing
    x = jax.random.normal(xkey, (batch, latent_dim), dtype=jnp.float32)

    fwd = jax.jit(generator_forward)
    out = jax.block_until_ready(fwd(prepared, x))
    assert out.shape == (batch, 1, 28, 28), out.shape
    assert out.dtype == jnp.float32
    assert bool(jnp.all(jnp.isfinite(out)))
    print("KERNEL_OK")
</pallas_src>

<mosaic_0001>
module attributes {stable_mosaic.version = 11 : i64} {
  func.func @_matmul_bias_act_kernel(%arg0: i32, %arg1: memref<2x32xbf16, #tpu.memory_space<vmem>>, %arg2: memref<32x3136xbf16, #tpu.memory_space<vmem>>, %arg3: memref<1x3136xf32, #tpu.memory_space<vmem>>, %arg4: memref<2x3136xbf16, #tpu.memory_space<vmem>>) attributes {dimension_semantics = [#tpu.dimension_semantics<parallel>], iteration_bounds = array<i64: 1>, scalar_prefetch = 0 : i64, scratch_operands = 0 : i64, tpu.core_type = #tpu.core_type<tc>, window_params = [{transform_indices = @transform_0, window_bounds = array<i64: 2, 32>}, {pipeline_mode = #tpu.pipeline_mode<synchronous>, transform_indices = @transform_1, window_bounds = array<i64: 32, 3136>}, {pipeline_mode = #tpu.pipeline_mode<synchronous>, transform_indices = @transform_2, window_bounds = array<i64: 1, 3136>}, {transform_indices = @transform_3, window_bounds = array<i64: 2, 3136>}]} {
    %c0 = arith.constant 0 : index
    %c0_0 = arith.constant 0 : index
    %0 = vector.load %arg1[%c0, %c0_0] : memref<2x32xbf16, #tpu.memory_space<vmem>>, vector<2x32xbf16>
    %c0_1 = arith.constant 0 : index
    %c0_2 = arith.constant 0 : index
    %1 = vector.load %arg2[%c0_1, %c0_2] : memref<32x3136xbf16, #tpu.memory_space<vmem>>, vector<32x3136xbf16>
    %cst = arith.constant dense<0.000000e+00> : vector<2x3136xf32>
    %2 = tpu.matmul %0, %1, %cst {dimension_numbers = #tpu.dot_dimension_numbers<[1], [0], [0], [1], [0, 0, 1, 1], [], []>} : vector<2x32xbf16>, vector<32x3136xbf16>, vector<2x3136xf32> -> vector<2x3136xf32>
    %c0_3 = arith.constant 0 : index
    %c0_4 = arith.constant 0 : index
    %3 = vector.load %arg3[%c0_3, %c0_4] : memref<1x3136xf32, #tpu.memory_space<vmem>>, vector<1x3136xf32>
    %4 = vector.broadcast %3 : vector<1x3136xf32> to vector<2x3136xf32>
    %5 = arith.addf %2, %4 : vector<2x3136xf32>
    %cst_5 = arith.constant 5.000000e-01 : f32
    %6 = vector.broadcast %cst_5 : f32 to vector<2x3136xf32>
    %7 = arith.mulf %6, %5 : vector<2x3136xf32>
    %cst_6 = arith.constant 0.707106769 : f32
    %8 = vector.broadcast %cst_6 : f32 to vector<2x3136xf32>
    %9 = arith.mulf %5, %8 : vector<2x3136xf32>
    %10 = math.absf %9 : vector<2x3136xf32>
    %cst_7 = arith.constant 0.327591091 : f32
    %11 = vector.broadcast %cst_7 : f32 to vector<2x3136xf32>
    %12 = arith.mulf %11, %10 : vector<2x3136xf32>
    %cst_8 = arith.constant 1.000000e+00 : f32
    %13 = vector.broadcast %cst_8 : f32 to vector<2x3136xf32>
    %14 = arith.addf %13, %12 : vector<2x3136xf32>
    %15 = tpu.reciprocal %14 {approx = true} : vector<2x3136xf32> -> vector<2x3136xf32>
    %cst_9 = arith.constant 1.06140542 : f32
    %16 = vector.broadcast %cst_9 : f32 to vector<2x3136xf32>
    %17 = arith.mulf %16, %15 : vector<2x3136xf32>
    %cst_10 = arith.constant -1.45315206 : f32
    %18 = vector.broadcast %cst_10 : f32 to vector<2x3136xf32>
    %19 = arith.addf %17, %18 : vector<2x3136xf32>
    %20 = arith.mulf %19, %15 : vector<2x3136xf32>
    %cst_11 = arith.constant 1.42141378 : f32
    %21 = vector.broadcast %cst_11 : f32 to vector<2x3136xf32>
    %22 = arith.addf %20, %21 : vector<2x3136xf32>
    %23 = arith.mulf %22, %15 : vector<2x3136xf32>
    %cst_12 = arith.constant -0.284496725 : f32
    %24 = vector.broadcast %cst_12 : f32 to vector<2x3136xf32>
    %25 = arith.addf %23, %24 : vector<2x3136xf32>
    %26 = arith.mulf %25, %15 : vector<2x3136xf32>
    %cst_13 = arith.constant 0.254829586 : f32
    %27 = vector.broadcast %cst_13 : f32 to vector<2x3136xf32>
    %28 = arith.addf %26, %27 : vector<2x3136xf32>
    %29 = arith.mulf %28, %15 : vector<2x3136xf32>
    %cst_14 = arith.constant 0.000000e+00 : f32
    %30 = vector.broadcast %cst_14 : f32 to vector<2x3136xf32>
    %31 = arith.subf %30, %10 : vector<2x3136xf32>
    %32 = arith.mulf %31, %10 : vector<2x3136xf32>
    %33 = math.exp %32 : vector<2x3136xf32>
    %34 = arith.mulf %29, %33 : vector<2x3136xf32>
    %cst_15 = arith.constant 1.000000e+00 : f32
    %35 = vector.broadcast %cst_15 : f32 to vector<2x3136xf32>
    %36 = arith.subf %35, %34 : vector<2x3136xf32>
    %cst_16 = arith.constant 0.000000e+00 : f32
    %37 = vector.broadcast %cst_16 : f32 to vector<2x3136xf32>
    %38 = arith.cmpf oge, %9, %37 : vector<2x3136xf32>
    %cst_17 = arith.constant 0.000000e+00 : f32
    %39 = vector.broadcast %cst_17 : f32 to vector<2x3136xf32>
    %40 = arith.subf %39, %36 : vector<2x3136xf32>
    %41 = arith.select %38, %36, %40 : vector<2x3136xi1>, vector<2x3136xf32>
    %cst_18 = arith.constant 1.000000e+00 : f32
    %42 = vector.broadcast %cst_18 : f32 to vector<2x3136xf32>
    %43 = arith.addf %42, %41 : vector<2x3136xf32>
    %44 = arith.mulf %7, %43 : vector<2x3136xf32>
    %45 = arith.truncf %44 : vector<2x3136xf32> to vector<2x3136xbf16>
    %c0_19 = arith.constant 0 : index
    %c0_20 = arith.constant 0 : index
    %46 = vector.load %arg4[%c0_19, %c0_20] : memref<2x3136xbf16, #tpu.memory_space<vmem>>, vector<2x3136xbf16>
    tpu.vector_store %arg4[%c0_19, %c0_20], %45 {strides = array<i32>} : memref<2x3136xbf16, #tpu.memory_space<vmem>>, vector<2x3136xbf16>,
    return
  }
  func.func @transform_0(%arg0: i32) -> (i32, i32) {
    %c0_i32 = arith.constant 0 : i32
    %c0_i32_0 = arith.constant 0 : i32
    return %arg0, %c0_i32 : i32, i32
  }
  func.func @transform_1(%arg0: i32) -> (i32, i32) {
    %c0_i32 = arith.constant 0 : i32
    %c0_i32_0 = arith.constant 0 : i32
    %c0_i32_1 = arith.constant 0 : i32
    return %c0_i32, %c0_i32_0 : i32, i32
  }
  func.func @transform_2(%arg0: i32) -> (i32, i32) {
    %c0_i32 = arith.constant 0 : i32
    %c0_i32_0 = arith.constant 0 : i32
    %c0_i32_1 = arith.constant 0 : i32
    return %c0_i32, %c0_i32_0 : i32, i32
  }
  func.func @transform_3(%arg0: i32) -> (i32, i32) {
    %c0_i32 = arith.constant 0 : i32
    %c0_i32_0 = arith.constant 0 : i32
    return %arg0, %c0_i32 : i32, i32
  }
}

module attributes {stable_mosaic.version = 11 : i64} {
  func.func @_matmul_bias_act_kernel(%arg0: i32, %arg1: memref<128x256xbf16, #tpu.memory_space<vmem>>, %arg2: memref<256x128xbf16, #tpu.memory_space<vmem>>, %arg3: memref<1x128xf32, #tpu.memory_space<vmem>>, %arg4: memref<128x128xbf16, #tpu.memory_space<vmem>>) attributes {dimension_semantics = [#tpu.dimension_semantics<parallel>], iteration_bounds = array<i64: 1>, scalar_prefetch = 0 : i64, scratch_operands = 0 : i64, tpu.core_type = #tpu.core_type<tc>, window_params = [{transform_indices = @transform_0, window_bounds = array<i64: 128, 256>}, {pipeline_mode = #tpu.pipeline_mode<synchronous>, transform_indices = @transform_1, window_bounds = array<i64: 256, 128>}, {pipeline_mode = #tpu.pipeline_mode<synchronous>, transform_indices = @transform_2, window_bounds = array<i64: 1, 128>}, {transform_indices = @transform_3, window_bounds = array<i64: 128, 128>}]} {
    %c0 = arith.constant 0 : index
    %c0_0 = arith.constant 0 : index
    %0 = vector.load %arg1[%c0, %c0_0] : memref<128x256xbf16, #tpu.memory_space<vmem>>, vector<128x256xbf16>
    %c0_1 = arith.constant 0 : index
    %c0_2 = arith.constant 0 : index
    %1 = vector.load %arg2[%c0_1, %c0_2] : memref<256x128xbf16, #tpu.memory_space<vmem>>, vector<256x128xbf16>
    %cst = arith.constant dense<0.000000e+00> : vector<128x128xf32>
    %2 = tpu.matmul %0, %1, %cst {dimension_numbers = #tpu.dot_dimension_numbers<[1], [0], [0], [1], [0, 0, 1, 1], [], []>} : vector<128x256xbf16>, vector<256x128xbf16>, vector<128x128xf32> -> vector<128x128xf32>
    %c0_3 = arith.constant 0 : index
    %c0_4 = arith.constant 0 : index
    %3 = vector.load %arg3[%c0_3, %c0_4] : memref<1x128xf32, #tpu.memory_space<vmem>>, vector<1x128xf32>
    %4 = vector.broadcast %3 : vector<1x128xf32> to vector<128x128xf32>
    %5 = arith.addf %2, %4 : vector<128x128xf32>
    %cst_5 = arith.constant 5.000000e-01 : f32
    %6 = vector.broadcast %cst_5 : f32 to vector<128x128xf32>
    %7 = arith.mulf %6, %5 : vector<128x128xf32>
    %cst_6 = arith.constant 0.707106769 : f32
    %8 = vector.broadcast %cst_6 : f32 to vector<128x128xf32>
    %9 = arith.mulf %5, %8 : vector<128x128xf32>
    %10 = math.absf %9 : vector<128x128xf32>
    %cst_7 = arith.constant 0.327591091 : f32
    %11 = vector.broadcast %cst_7 : f32 to vector<128x128xf32>
    %12 = arith.mulf %11, %10 : vector<128x128xf32>
    %cst_8 = arith.constant 1.000000e+00 : f32
    %13 = vector.broadcast %cst_8 : f32 to vector<128x128xf32>
    %14 = arith.addf %13, %12 : vector<128x128xf32>
    %15 = tpu.reciprocal %14 {approx = true} : vector<128x128xf32> -> vector<128x128xf32>
    %cst_9 = arith.constant 1.06140542 : f32
    %16 = vector.broadcast %cst_9 : f32 to vector<128x128xf32>
    %17 = arith.mulf %16, %15 : vector<128x128xf32>
    %cst_10 = arith.constant -1.45315206 : f32
    %18 = vector.broadcast %cst_10 : f32 to vector<128x128xf32>
    %19 = arith.addf %17, %18 : vector<128x128xf32>
    %20 = arith.mulf %19, %15 : vector<128x128xf32>
    %cst_11 = arith.constant 1.42141378 : f32
    %21 = vector.broadcast %cst_11 : f32 to vector<128x128xf32>
    %22 = arith.addf %20, %21 : vector<128x128xf32>
    %23 = arith.mulf %22, %15 : vector<128x128xf32>
    %cst_12 = arith.constant -0.284496725 : f32
    %24 = vector.broadcast %cst_12 : f32 to vector<128x128xf32>
    %25 = arith.addf %23, %24 : vector<128x128xf32>
    %26 = arith.mulf %25, %15 : vector<128x128xf32>
    %cst_13 = arith.constant 0.254829586 : f32
    %27 = vector.broadcast %cst_13 : f32 to vector<128x128xf32>
    %28 = arith.addf %26, %27 : vector<128x128xf32>
    %29 = arith.mulf %28, %15 : vector<128x128xf32>
    %cst_14 = arith.constant 0.000000e+00 : f32
    %30 = vector.broadcast %cst_14 : f32 to vector<128x128xf32>
    %31 = arith.subf %30, %10 : vector<128x128xf32>
    %32 = arith.mulf %31, %10 : vector<128x128xf32>
    %33 = math.exp %32 : vector<128x128xf32>
    %34 = arith.mulf %29, %33 : vector<128x128xf32>
    %cst_15 = arith.constant 1.000000e+00 : f32
    %35 = vector.broadcast %cst_15 : f32 to vector<128x128xf32>
    %36 = arith.subf %35, %34 : vector<128x128xf32>
    %cst_16 = arith.constant 0.000000e+00 : f32
    %37 = vector.broadcast %cst_16 : f32 to vector<128x128xf32>
    %38 = arith.cmpf oge, %9, %37 : vector<128x128xf32>
    %cst_17 = arith.constant 0.000000e+00 : f32
    %39 = vector.broadcast %cst_17 : f32 to vector<128x128xf32>
    %40 = arith.subf %39, %36 : vector<128x128xf32>
    %41 = arith.select %38, %36, %40 : vector<128x128xi1>, vector<128x128xf32>
    %cst_18 = arith.constant 1.000000e+00 : f32
    %42 = vector.broadcast %cst_18 : f32 to vector<128x128xf32>
    %43 = arith.addf %42, %41 : vector<128x128xf32>
    %44 = arith.mulf %7, %43 : vector<128x128xf32>
    %45 = arith.truncf %44 : vector<128x128xf32> to vector<128x128xbf16>
    %c0_19 = arith.constant 0 : index
    %c0_20 = arith.constant 0 : index
    %46 = vector.load %arg4[%c0_19, %c0_20] : memref<128x128xbf16, #tpu.memory_space<vmem>>, vector<128x128xbf16>
    tpu.vector_store %arg4[%c0_19, %c0_20], %45 {strides = array<i32>} : memref<128x128xbf16, #tpu.memory_space<vmem>>, vector<128x128xbf16>,
    return
  }
  func.func @transform_0(%arg0: i32) -> (i32, i32) {
    %c0_i32 = arith.constant 0 : i32
    %c0_i32_0 = arith.constant 0 : i32
    return %arg0, %c0_i32 : i32, i32
  }
  func.func @transform_1(%arg0: i32) -> (i32, i32) {
    %c0_i32 = arith.constant 0 : i32
    %c0_i32_0 = arith.constant 0 : i32
    %c0_i32_1 = arith.constant 0 : i32
    return %c0_i32, %c0_i32_0 : i32, i32
  }
  func.func @transform_2(%arg0: i32) -> (i32, i32) {
    %c0_i32 = arith.constant 0 : i32
    %c0_i32_0 = arith.constant 0 : i32
    %c0_i32_1 = arith.constant 0 : i32
    return %c0_i32, %c0_i32_0 : i32, i32
  }
  func.func @transform_3(%arg0: i32) -> (i32, i32) {
    %c0_i32 = arith.constant 0 : i32
    %c0_i32_0 = arith.constant 0 : i32
    return %arg0, %c0_i32 : i32, i32
  }
}

module attributes {stable_mosaic.version = 11 : i64} {
  func.func @_matmul_bias_act_kernel(%arg0: i32, %arg1: memref<256x128xbf16, #tpu.memory_space<vmem>>, %arg2: memref<128x64xbf16, #tpu.memory_space<vmem>>, %arg3: memref<1x64xf32, #tpu.memory_space<vmem>>, %arg4: memref<256x64xbf16, #tpu.memory_space<vmem>>) attributes {dimension_semantics = [#tpu.dimension_semantics<parallel>], iteration_bounds = array<i64: 3>, scalar_prefetch = 0 : i64, scratch_operands = 0 : i64, tpu.core_type = #tpu.core_type<tc>, window_params = [{transform_indices = @transform_0, window_bounds = array<i64: 256, 128>}, {pipeline_mode = #tpu.pipeline_mode<synchronous>, transform_indices = @transform_1, window_bounds = array<i64: 128, 64>}, {pipeline_mode = #tpu.pipeline_mode<synchronous>, transform_indices = @transform_2, window_bounds = array<i64: 1, 64>}, {transform_indices = @transform_3, window_bounds = array<i64: 256, 64>}]} {
    %c0 = arith.constant 0 : index
    %c0_0 = arith.constant 0 : index
    %0 = vector.load %arg1[%c0, %c0_0] : memref<256x128xbf16, #tpu.memory_space<vmem>>, vector<256x128xbf16>
    %c0_1 = arith.constant 0 : index
    %c0_2 = arith.constant 0 : index
    %1 = vector.load %arg2[%c0_1, %c0_2] : memref<128x64xbf16, #tpu.memory_space<vmem>>, vector<128x64xbf16>
    %cst = arith.constant dense<0.000000e+00> : vector<256x64xf32>
    %2 = tpu.matmul %0, %1, %cst {dimension_numbers = #tpu.dot_dimension_numbers<[1], [0], [0], [1], [0, 0, 1, 1], [], []>} : vector<256x128xbf16>, vector<128x64xbf16>, vector<256x64xf32> -> vector<256x64xf32>
    %c0_3 = arith.constant 0 : index
    %c0_4 = arith.constant 0 : index
    %3 = vector.load %arg3[%c0_3, %c0_4] : memref<1x64xf32, #tpu.memory_space<vmem>>, vector<1x64xf32>
    %4 = vector.broadcast %3 : vector<1x64xf32> to vector<256x64xf32>
    %5 = arith.addf %2, %4 : vector<256x64xf32>
    %cst_5 = arith.constant 5.000000e-01 : f32
    %6 = vector.broadcast %cst_5 : f32 to vector<256x64xf32>
    %7 = arith.mulf %6, %5 : vector<256x64xf32>
    %cst_6 = arith.constant 0.707106769 : f32
    %8 = vector.broadcast %cst_6 : f32 to vector<256x64xf32>
    %9 = arith.mulf %5, %8 : vector<256x64xf32>
    %10 = math.absf %9 : vector<256x64xf32>
    %cst_7 = arith.constant 0.327591091 : f32
    %11 = vector.broadcast %cst_7 : f32 to vector<256x64xf32>
    %12 = arith.mulf %11, %10 : vector<256x64xf32>
    %cst_8 = arith.constant 1.000000e+00 : f32
    %13 = vector.broadcast %cst_8 : f32 to vector<256x64xf32>
    %14 = arith.addf %13, %12 : vector<256x64xf32>
    %15 = tpu.reciprocal %14 {approx = true} : vector<256x64xf32> -> vector<256x64xf32>
    %cst_9 = arith.constant 1.06140542 : f32
    %16 = vector.broadcast %cst_9 : f32 to vector<256x64xf32>
    %17 = arith.mulf %16, %15 : vector<256x64xf32>
    %cst_10 = arith.constant -1.45315206 : f32
    %18 = vector.broadcast %cst_10 : f32 to vector<256x64xf32>
    %19 = arith.addf %17, %18 : vector<256x64xf32>
    %20 = arith.mulf %19, %15 : vector<256x64xf32>
    %cst_11 = arith.constant 1.42141378 : f32
    %21 = vector.broadcast %cst_11 : f32 to vector<256x64xf32>
    %22 = arith.addf %20, %21 : vector<256x64xf32>
    %23 = arith.mulf %22, %15 : vector<256x64xf32>
    %cst_12 = arith.constant -0.284496725 : f32
    %24 = vector.broadcast %cst_12 : f32 to vector<256x64xf32>
    %25 = arith.addf %23, %24 : vector<256x64xf32>
    %26 = arith.mulf %25, %15 : vector<256x64xf32>
    %cst_13 = arith.constant 0.254829586 : f32
    %27 = vector.broadcast %cst_13 : f32 to vector<256x64xf32>
    %28 = arith.addf %26, %27 : vector<256x64xf32>
    %29 = arith.mulf %28, %15 : vector<256x64xf32>
    %cst_14 = arith.constant 0.000000e+00 : f32
    %30 = vector.broadcast %cst_14 : f32 to vector<256x64xf32>
    %31 = arith.subf %30, %10 : vector<256x64xf32>
    %32 = arith.mulf %31, %10 : vector<256x64xf32>
    %33 = math.exp %32 : vector<256x64xf32>
    %34 = arith.mulf %29, %33 : vector<256x64xf32>
    %cst_15 = arith.constant 1.000000e+00 : f32
    %35 = vector.broadcast %cst_15 : f32 to vector<256x64xf32>
    %36 = arith.subf %35, %34 : vector<256x64xf32>
    %cst_16 = arith.constant 0.000000e+00 : f32
    %37 = vector.broadcast %cst_16 : f32 to vector<256x64xf32>
    %38 = arith.cmpf oge, %9, %37 : vector<256x64xf32>
    %cst_17 = arith.constant 0.000000e+00 : f32
    %39 = vector.broadcast %cst_17 : f32 to vector<256x64xf32>
    %40 = arith.subf %39, %36 : vector<256x64xf32>
    %41 = arith.select %38, %36, %40 : vector<256x64xi1>, vector<256x64xf32>
    %cst_18 = arith.constant 1.000000e+00 : f32
    %42 = vector.broadcast %cst_18 : f32 to vector<256x64xf32>
    %43 = arith.addf %42, %41 : vector<256x64xf32>
    %44 = arith.mulf %7, %43 : vector<256x64xf32>
    %45 = arith.truncf %44 : vector<256x64xf32> to vector<256x64xbf16>
    %c0_19 = arith.constant 0 : index
    %c0_20 = arith.constant 0 : index
    %46 = vector.load %arg4[%c0_19, %c0_20] : memref<256x64xbf16, #tpu.memory_space<vmem>>, vector<256x64xbf16>
    tpu.vector_store %arg4[%c0_19, %c0_20], %45 {strides = array<i32>} : memref<256x64xbf16, #tpu.memory_space<vmem>>, vector<256x64xbf16>,
    return
  }
  func.func @transform_0(%arg0: i32) -> (i32, i32) {
    %c0_i32 = arith.constant 0 : i32
    %c0_i32_0 = arith.constant 0 : i32
    return %arg0, %c0_i32 : i32, i32
  }
  func.func @transform_1(%arg0: i32) -> (i32, i32) {
    %c0_i32 = arith.constant 0 : i32
    %c0_i32_0 = arith.constant 0 : i32
    %c0_i32_1 = arith.constant 0 : i32
    return %c0_i32, %c0_i32_0 : i32, i32
  }
  func.func @transform_2(%arg0: i32) -> (i32, i32) {
    %c0_i32 = arith.constant 0 : i32
    %c0_i32_0 = arith.constant 0 : i32
    %c0_i32_1 = arith.constant 0 : i32
    return %c0_i32, %c0_i32_0 : i32, i32
  }
  func.func @transform_3(%arg0: i32) -> (i32, i32) {
    %c0_i32 = arith.constant 0 : i32
    %c0_i32_0 = arith.constant 0 : i32
    return %arg0, %c0_i32 : i32, i32
  }
}

module attributes {stable_mosaic.version = 11 : i64} {
  func.func @_conv_cout1_kernel(%arg0: i32, %arg1: memref<256x784xbf16, #tpu.memory_space<vmem>>, %arg2: memref<1x784xf32, #tpu.memory_space<vmem>>, %arg3: memref<1x1xf32, #tpu.memory_space<vmem>>, %arg4: memref<256x1xf32, #tpu.memory_space<vmem>>) attributes {dimension_semantics = [#tpu.dimension_semantics<parallel>], iteration_bounds = array<i64: 7>, scalar_prefetch = 0 : i64, scratch_operands = 0 : i64, tpu.core_type = #tpu.core_type<tc>, window_params = [{transform_indices = @transform_0, window_bounds = array<i64: 256, 784>}, {pipeline_mode = #tpu.pipeline_mode<synchronous>, transform_indices = @transform_1, window_bounds = array<i64: 1, 784>}, {pipeline_mode = #tpu.pipeline_mode<synchronous>, transform_indices = @transform_2, window_bounds = array<i64: 1, 1>}, {transform_indices = @transform_3, window_bounds = array<i64: 256, 1>}]} {
    %c0 = arith.constant 0 : index
    %c0_0 = arith.constant 0 : index
    %0 = vector.load %arg1[%c0, %c0_0] : memref<256x784xbf16, #tpu.memory_space<vmem>>, vector<256x784xbf16>
    %1 = arith.extf %0 : vector<256x784xbf16> to vector<256x784xf32>
    %c0_1 = arith.constant 0 : index
    %c0_2 = arith.constant 0 : index
    %2 = vector.load %arg2[%c0_1, %c0_2] : memref<1x784xf32, #tpu.memory_space<vmem>>, vector<1x784xf32>
    %3 = vector.broadcast %2 : vector<1x784xf32> to vector<256x784xf32>
    %4 = arith.mulf %1, %3 : vector<256x784xf32>
    %cst = arith.constant dense<0.000000e+00> : vector<256xf32>
    %5 = vector.multi_reduction <add>, %4, %cst [1] : vector<256x784xf32> to vector<256xf32>
    %6 = vector.shape_cast %5 : vector<256xf32> to vector<256x1xf32>
    %c0_3 = arith.constant 0 : index
    %c0_4 = arith.constant 0 : index
    %7 = vector.load %arg3[%c0_3, %c0_4] : memref<1x1xf32, #tpu.memory_space<vmem>>, vector<1x1xf32>
    %8 = vector.broadcast %7 : vector<1x1xf32> to vector<256x1xf32>
    %9 = arith.addf %6, %8 : vector<256x1xf32>
    %c0_5 = arith.constant 0 : index
    %c0_6 = arith.constant 0 : index
    %10 = vector.load %arg4[%c0_5, %c0_6] : memref<256x1xf32, #tpu.memory_space<vmem>>, vector<256x1xf32>
    tpu.vector_store %arg4[%c0_5, %c0_6], %9 {strides = array<i32>} : memref<256x1xf32, #tpu.memory_space<vmem>>, vector<256x1xf32>,
    return
  }
  func.func @transform_0(%arg0: i32) -> (i32, i32) {
    %c0_i32 = arith.constant 0 : i32
    %c0_i32_0 = arith.constant 0 : i32
    return %arg0, %c0_i32 : i32, i32
  }
  func.func @transform_1(%arg0: i32) -> (i32, i32) {
    %c0_i32 = arith.constant 0 : i32
    %c0_i32_0 = arith.constant 0 : i32
    %c0_i32_1 = arith.constant 0 : i32
    return %c0_i32, %c0_i32_0 : i32, i32
  }
  func.func @transform_2(%arg0: i32) -> (i32, i32) {
    %c0_i32 = arith.constant 0 : i32
    %c0_i32_0 = arith.constant 0 : i32
    %c0_i32_1 = arith.constant 0 : i32
    return %c0_i32, %c0_i32_0 : i32, i32
  }
  func.func @transform_3(%arg0: i32) -> (i32, i32) {
    %c0_i32 = arith.constant 0 : i32
    %c0_i32_0 = arith.constant 0 : i32
    return %arg0, %c0_i32 : i32, i32
  }
}

</mosaic_0001>

<bundles_post_ra>
// kernel: generator_forward.5
= control target key start
LH: loop header
LB: loop body
LE: loop exit
PB: predicated region body
PF: predicated region fallthrough
CT: control target
= control target key end

     0   :  { %8 = vsyncpa [#allocation3], 0  ;;  %s1693_s0 = inlined_call_operand.vmem [shape: bf16[128,256], index: 0, kind: input, shape index: {}]   ;;  %s1694_s1 = inlined_call_operand.hbm [shape: bf16[256,128], index: 1, kind: input, shape index: {}]   ;;  %s1695_s2 = inlined_call_operand.hbm [shape: f32[1,128], index: 2, kind: input, shape index: {}]   ;;  %s1696_s3 = inlined_call_operand.vmem [shape: bf16[128,128], index: 3, kind: output, shape index: {}]  }
   0x1   :  { %9 = vsyncpa [#allocation5], 0  ;;  %s1219_s12 = smov [#allocation2]   ;;  %s1171_s16 = scalar_lea.hbm %s1694_s1, 2048 }
   0x2   :  { %s17_s13 = sshll.u32 %s1219_s12, 4  ;;  %p1172_p0 = scmp.ne.s32.totalorder %s1694_s1, %s1171_s16  ;;  %s18_s13 = int_to_ptr.vmem [resolvable:$true] %s17_s13 }
   0x3   :  { %p1175_p1 = scmp.lt.u32.totalorder %s1171_s16, %s1694_s1 }
   0x5   :  { %p1177_p2 = pnand %p1175_p1, %p1172_p0 }
   0x7   :  { %1180 = shalt.err (!%p1177_p2)
}
   0x8   :  { %s1181_s21 = scalar_lea.vmem %s18_s13, 2048  ;;  %p1186_p4 = scmp.lt.s32.totalorder %s18_s13, %s18_s13 }
   0x9   :  { %p1182_p3 = scmp.ne.s32.totalorder %s18_s13, %s1181_s21  ;;  %p1187_p5 = scmp.lt.s32.totalorder %s1181_s21, %s1181_s21 }
   0xb   :  { %p1188_p6 = por %p1187_p5, %p1186_p4 }
   0xd   :  { %p1189_p7 = pnand %p1188_p6, %p1182_p3 }
   0xf   :  { %1192 = shalt.err (!%p1189_p7)
}
  0x10   :  { %s1220_s22 = smov 64   ;;  %s1221_s23 = smov 4  }
  0x11   :  { %23 = dma.hbm_to_vmem [thread:$0]  %s1694_s1, 2048, %s18_s13, [#allocation3], %s1220_s22, %s1220_s22, %s1221_s23  }
  0x12   :  { %s1222_s26 = smov [#allocation4]   ;;  %s1193_s30 = scalar_lea.hbm %s1695_s2, 16 }
  0x13   :  { %s30_s27 = sshll.u32 %s1222_s26, 4  ;;  %p1194_p8 = scmp.ne.s32.totalorder %s1695_s2, %s1193_s30  ;;  %s31_s27 = int_to_ptr.vmem [resolvable:$true] %s30_s27 }
  0x14   :  { %p1197_p9 = scmp.lt.u32.totalorder %s1193_s30, %s1695_s2 }
  0x16   :  { %p1199_p10 = pnand %p1197_p9, %p1194_p8 }
  0x18   :  { %1202 = shalt.err (!%p1199_p10)
}
  0x19   :  { %s1203_s8 = scalar_lea.vmem %s31_s27, 16  ;;  %s1207_s1 = scalar_lea.vmem %s31_s27, 32 }
  0x1a   :  { %p1204_p11 = scmp.ne.s32.totalorder %s31_s27, %s1203_s8  ;;  %p1208_p12 = scmp.lt.s32.totalorder %s31_s27, %s31_s27 }
  0x1b   :  { %p1209_p13 = scmp.lt.s32.totalorder %s1207_s1, %s1203_s8 }
  0x1d   :  { %p1210_p0 = por %p1209_p13, %p1208_p12 }
  0x1f   :  { %p1211_p1 = pnand %p1210_p0, %p1204_p11 }
  0x21   :  { %1214 = shalt.err (!%p1211_p1)
}
  0x22   :  { %33 = dma.hbm_to_vmem [thread:$0]  %s1695_s2, 16, %s31_s27, [#allocation5]  }
  0x23   :  { %1215 = dma.done.wait [#allocation3], 2048  }
  0x24   :  { %1216 = vsyncadd [#allocation3], 4294965248 }
  0x25   :  { %1217 = dma.done.wait [#allocation5], 16  }
  0x26   :  { %1218 = vsyncadd [#allocation5], 4294967280  ;;  %v1067_v0 = vld [vmem:[#allocation2 + $0x40] sm:$0xff]   ;;  %v1069_v2 = vld [vmem:[#allocation2 + $0x48] sm:$0xff]  }
  0x27   :  { %v1068_v1 = vld [vmem:[#allocation2] sm:$0xff]   ;;  %983 = vmatprep.subr.bf16.mxu0 %v1067_v0  ;;  %1047 = vmatprep.subr.bf16.mxu1 %v1067_v0  ;;  %v1070_v3 = vld [vmem:[#allocation2 + $0x8] sm:$0xff]   ;;  %v1071_v4 = vld [vmem:[#allocation2 + $0x50] sm:$0xff]  }
  0x28   :  { %984 = vmatpush3.bf16.msra.mxu0 %v1068_v1  ;;  %1055 = vmatpush3.bf16.msra.mxu1 %v1068_v1  ;;  %v1072_v5 = vld [vmem:[#allocation2 + $0x10] sm:$0xff]   ;;  %v1073_v6 = vld [vmem:[#allocation2 + $0x58] sm:$0xff]   ;;  %v1075_v8 = vld [vmem:[#allocation2 + $0x60] sm:$0xff]  }
  0x29   :  { %985 = vmatprep.subr.bf16.mxu0 %v1069_v2  ;;  %1048 = vmatprep.subr.bf16.mxu1 %v1069_v2  ;;  %v1074_v7 = vld [vmem:[#allocation2 + $0x18] sm:$0xff]   ;;  %v1076_v9 = vld [vmem:[#allocation2 + $0x20] sm:$0xff]   ;;  %v1077_v10 = vld [vmem:[#allocation2 + $0x68] sm:$0xff]  }
  0x2a   :  { %v1085_v11 = vld [vmem:[%s1693_s0 + $0x4] ss:$8 sps:$4 sm:$0xff]   ;;  %v1079_v14 = vld [vmem:[#allocation2 + $0x70] sm:$0xff]   ;;  %v1081_v16 = vld [vmem:[#allocation2 + $0x78] sm:$0xff]  }
  0x2b   :  { %v1088_v12 = vld [vmem:[%s1693_s0 + $0x44] ss:$8 sps:$4 sm:$0xff]   ;;  %304 = vmatprep.mubr.bf16.mxu0 %v1085_v11  ;;  %v1080_v15 = vld [vmem:[#allocation2 + $0x30] sm:$0xff]   ;;  %v1082_v17 = vld [vmem:[#allocation2 + $0x38] sm:$0xff]  }
  0x2c   :  { %986 = vmatpush3.bf16.msra.mxu0 %v1070_v3  ;;  %1056 = vmatpush3.bf16.msra.mxu1 %v1070_v3  ;;  %v1078_v13 = vld [vmem:[#allocation2 + $0x28] sm:$0xff]   ;;  %v1089_v20 = vld [vmem:[%s1693_s0 + $0x14] ss:$8 sps:$4 sm:$0xff]   ;;  %v1093_v22 = vld [vmem:[%s1693_s0 + $0x10] ss:$8 sps:$4 sm:$0xff]  }
  0x2d   :  { %987 = vmatprep.subr.bf16.mxu0 %v1071_v4  ;;  %1049 = vmatprep.subr.bf16.mxu1 %v1071_v4  ;;  %v1083_v18 = vld [vmem:[%s1693_s0] ss:$8 sps:$4 sm:$0xff]   ;;  %v1091_v21 = vld [vmem:[%s1693_s0 + $0x54] ss:$8 sps:$4 sm:$0xff]   ;;  %v1094_v23 = vld [vmem:[%s1693_s0 + $0x50] ss:$8 sps:$4 sm:$0xff]  }
  0x2e   :  { %336 = vmatprep.mubr.bf16.mxu1 %v1088_v12  ;;  %v1086_v19 = vld [vmem:[%s1693_s0 + $0x40] ss:$8 sps:$4 sm:$0xff]   ;;  %v1095_v24 = vld [vmem:[%s1693_s0 + $0x24] ss:$8 sps:$4 sm:$0xff]   ;;  %v1101_v28 = vld [vmem:[%s1693_s0 + $0x34] ss:$8 sps:$4 sm:$0xff]  }
  0x2f   :  { %v1097_v25 = vld [vmem:[%s1693_s0 + $0x64] ss:$8 sps:$4 sm:$0xff]   ;;  %v1099_v26 = vld [vmem:[%s1693_s0 + $0x20] ss:$8 sps:$4 sm:$0xff]   ;;  %v1103_v29 = vld [vmem:[%s1693_s0 + $0x74] ss:$8 sps:$4 sm:$0xff]  }
  0x30   :  { %988 = vmatpush3.bf16.msra.mxu0 %v1072_v5  ;;  %1057 = vmatpush3.bf16.msra.mxu1 %v1072_v5  ;;  %v1100_v27 = vld [vmem:[%s1693_s0 + $0x60] ss:$8 sps:$4 sm:$0xff]   ;;  %v1105_v30 = vld [vmem:[%s1693_s0 + $0x30] ss:$8 sps:$4 sm:$0xff]  }
  0x31   :  { %989 = vmatprep.subr.bf16.mxu0 %v1073_v6  ;;  %1050 = vmatprep.subr.bf16.mxu1 %v1073_v6  ;;  %v1106_v31 = vld [vmem:[%s1693_s0 + $0x70] ss:$8 sps:$4 sm:$0xff]   ;;  %v1315_v34 = vld [vmem:[#allocation4] ss:$0 sm:$0xff] }
  0x34   :  { %990 = vmatpush3.bf16.msra.mxu0 %v1074_v7  ;;  %1058 = vmatpush3.bf16.msra.mxu1 %v1074_v7 }
  0x35   :  { %991 = vmatprep.subr.bf16.mxu0 %v1075_v8  ;;  %1051 = vmatprep.subr.bf16.mxu1 %v1075_v8 }
  0x38   :  { %992 = vmatpush3.bf16.msra.mxu0 %v1076_v9  ;;  %1059 = vmatpush3.bf16.msra.mxu1 %v1076_v9 }
  0x39   :  { %993 = vmatprep.subr.bf16.mxu0 %v1077_v10  ;;  %1052 = vmatprep.subr.bf16.mxu1 %v1077_v10 }
  0x3c   :  { %994 = vmatpush3.bf16.msra.mxu0 %v1078_v13  ;;  %1060 = vmatpush3.bf16.msra.mxu1 %v1078_v13 }
  0x3d   :  { %995 = vmatprep.subr.bf16.mxu0 %v1079_v14  ;;  %1053 = vmatprep.subr.bf16.mxu1 %v1079_v14 }
  0x40   :  { %996 = vmatpush3.bf16.msra.mxu0 %v1080_v15  ;;  %1061 = vmatpush3.bf16.msra.mxu1 %v1080_v15 }
  0x41   :  { %997 = vmatprep.subr.bf16.mxu0 %v1081_v16  ;;  %1054 = vmatprep.subr.bf16.mxu1 %v1081_v16 }
  0x44   :  { %998 = vmatpush3.bf16.msra.mxu0 %v1082_v17  ;;  %1062 = vmatpush3.bf16.msra.mxu1 %v1082_v17 }
  0x47   :  { %305 = vmatmul.mubr.bf16.vlgmr.msra.gmra.mrb[0].mxu0 %v1083_v18  ;;  %337 = vmatmul.mubr.bf16.vlgmr.msra.gmra.mrb[0].mxu1 %v1086_v19 }
  0x48   :  { %312 = vmatprep.mubr.bf16.mxu0 %v1089_v20  ;;  %344 = vmatprep.mubr.bf16.mxu1 %v1091_v21 }
  0x4f   :  { %313 = vmatmul.mubr.bf16.gmra.mrb[4].mxu0 %v1093_v22  ;;  %345 = vmatmul.mubr.bf16.gmra.mrb[4].mxu1 %v1094_v23 }
  0x50   :  { %320 = vmatprep.mubr.bf16.mxu0 %v1095_v24  ;;  %352 = vmatprep.mubr.bf16.mxu1 %v1097_v25 }
  0x57   :  { %321 = vmatmul.mubr.bf16.gmra.mrb[8].mxu0 %v1099_v26  ;;  %353 = vmatmul.mubr.bf16.gmra.mrb[8].mxu1 %v1100_v27 }
  0x58   :  { %328 = vmatprep.mubr.bf16.mxu0 %v1101_v28  ;;  %360 = vmatprep.mubr.bf16.mxu1 %v1103_v29 }
  0x5f   :  { %329 = vmatmul.mubr.bf16.gmra.mrb[12].mxu0 %v1105_v30  ;;  %361 = vmatmul.mubr.bf16.gmra.mrb[12].mxu1 %v1106_v31 }
 0x11a   :  { %v999_v32 = vpop.f32.mrb[0].mxu0  ;;  %v1023_v33 = vpop.f32.mrb[0].mxu1 }
 0x11b   :  { %v1000_v35 = vpop.f32.mrb[1].mxu0  ;;  %v1024_v36 = vpop.f32.mrb[1].mxu1 }
 0x11c   :  { %v1001_v37 = vadd.f32 %v1000_v35, %v999_v32  ;;  %v1025_v38 = vadd.f32 %v1024_v36, %v1023_v33  ;;  %v1002_v39 = vpop.f32.mrb[2].mxu0  ;;  %v1026_v40 = vpop.f32.mrb[2].mxu1 }
 0x11d   :  { %v1003_v41 = vpop.f32.mrb[3].mxu0  ;;  %v1027_v42 = vpop.f32.mrb[3].mxu1 }
 0x11e   :  { %v307_v43 = vadd.f32 %v1001_v37, %v1315_v34  ;;  %v1319_v44 = vadd.f32 %v1025_v38, %v1315_v34  ;;  %v1004_v45 = vadd.f32 %v1003_v41, %v1002_v39  ;;  %v1028_v46 = vadd.f32 %v1027_v42, %v1026_v40 }
 0x120   :  { %v1321_v47 = vmul.f32 0.70710677, %v307_v43  ;;  %v1324_v48 = vmul.f32 0.70710677, %v1319_v44  ;;  %v1327_v49 = vadd.f32 %v1004_v45, %v1315_v34  ;;  %v1330_v50 = vadd.f32 %v1028_v46, %v1315_v34 }
 0x121   :  { %v1371_v38 = vmul.f32 0.5, %v307_v43 }
 0x122   :  { %v401_v51 = vand.u32 2147483647, %v1321_v47  ;;  %v409_v52 = vand.u32 2147483647, %v1324_v48  ;;  %v1335_v53 = vmul.f32 0.70710677, %v1327_v49 }
 0x123   :  { %v1338_v54 = vmul.f32 0.70710677, %v1330_v50  ;;  %v1005_v63 = vpop.f32.mrb[4].mxu0  ;;  %v1029_v0 = vpop.f32.mrb[4].mxu1  ;;  %vm705_vm0 = vcmp.ge.f32.partialorder %v1321_v47, 0.0  ;;  %vm713_vm1 = vcmp.ge.f32.partialorder %v1324_v48, 0.0 }
 0x124   :  { %v417_v55 = vmul.f32 0.3275911, %v401_v51  ;;  %v609_v56 = vsub.f32 0.0, %v401_v51  ;;  %v425_v57 = vmul.f32 0.3275911, %v409_v52  ;;  %v617_v62 = vsub.f32 0.0, %v409_v52 }
 0x125   :  { %v402_v58 = vand.u32 2147483647, %v1335_v53  ;;  %v410_v59 = vand.u32 2147483647, %v1338_v54  ;;  %v1006_v5 = vpop.f32.mrb[5].mxu0  ;;  %v1030_v6 = vpop.f32.mrb[5].mxu1 }
 0x126   :  { %v433_v60 = vadd.f32 1.0, %v417_v55  ;;  %v441_v61 = vadd.f32 1.0, %v425_v57  ;;  %v625_v1 = vmul.f32 %v609_v56, %v401_v51  ;;  %v1008_v9 = vpop.f32.mrb[6].mxu0  ;;  %v1032_v10 = vpop.f32.mrb[6].mxu1  ;;  %v633_v11 = vmul.f32 %v617_v62, %v409_v52 }
 0x127   :  { %v418_v2 = vmul.f32 0.3275911, %v402_v58  ;;  %v426_v3 = vmul.f32 0.3275911, %v410_v59  ;;  %v610_v4 = vsub.f32 0.0, %v402_v58  ;;  %v618_v8 = vsub.f32 0.0, %v410_v59 }
 0x128   :  { %1107 = vrcp.f32 %v433_v60  ;;  %v1007_v13 = vadd.f32 %v1006_v5, %v1005_v63  ;;  %v1031_v14 = vadd.f32 %v1030_v6, %v1029_v0  ;;  %v1009_v15 = vpop.f32.mrb[7].mxu0  ;;  %v1033_v16 = vpop.f32.mrb[7].mxu1  ;;  %v641_v17 = vmul.f32 1.442695, %v625_v1 }
 0x129   :  { %1109 = vrcp.f32 %v441_v61  ;;  %v434_v7 = vadd.f32 1.0, %v418_v2  ;;  %v442_v12 = vadd.f32 1.0, %v426_v3  ;;  %v1010_v18 = vadd.f32 %v1009_v15, %v1008_v9 }
 0x12a   :  { %v1034_v19 = vadd.f32 %v1033_v16, %v1032_v10  ;;  %v1011_v20 = vpop.f32.mrb[8].mxu0  ;;  %v1342_v21 = vpop.f32.mrb[8].mxu1  ;;  %v626_v22 = vmul.f32 %v610_v4, %v402_v58  ;;  %v1345_v23 = vadd.f32 %v1007_v13, %v1315_v34  ;;  %v1348_v24 = vadd.f32 %v1031_v14, %v1315_v34 }
 0x12b   :  { %1111 = vrcp.f32 %v434_v7  ;;  %v1012_v25 = vpop.f32.mrb[9].mxu0  ;;  %v1350_v26 = vpop.f32.mrb[9].mxu1  ;;  %v634_v27 = vmul.f32 %v618_v8, %v410_v59  ;;  %v1353_v28 = vadd.f32 %v1010_v18, %v1315_v34  ;;  %v657_v33 = vmul.f32 1.442695, %v633_v11 }
 0x12c   :  { %v1356_v29 = vadd.f32 %v1034_v19, %v1315_v34  ;;  %v1358_v30 = vadd.f32 %v1012_v25, %v1011_v20  ;;  %v1360_v31 = vpop.f32.mrb[10].mxu0  ;;  %v1362_v32 = vpop.f32.mrb[10].mxu1  ;;  %1113 = vrcp.f32 %v442_v12  ;;  %v1365_v35 = vmul.f32 0.70710677, %v1345_v23 }
 0x12d   :  { %v1367_v36 = vpop.f32.mrb[11].mxu0  ;;  %v1369_v37 = vpop.f32.mrb[11].mxu1  ;;  %v1374_v39 = vmul.f32 0.70710677, %v1348_v24  ;;  %v1377_v40 = vmul.f32 0.70710677, %v1353_v28  ;;  %1115 = vpow2.f32 %v641_v17 }
 0x12e   :  { %v643_v41 = vmul.f32 1.442695, %v626_v22  ;;  %v403_v42 = vand.u32 2147483647, %v1365_v35  ;;  %v1381_v45 = vmul.f32 0.70710677, %v1356_v29  ;;  %1117 = vpow2.f32 %v657_v33 }
 0x12f   :  { %v659_v46 = vmul.f32 1.442695, %v634_v27  ;;  %v411_v51 = vand.u32 2147483647, %v1374_v39  ;;  %v404_v52 = vand.u32 2147483647, %v1377_v40 }
 0x130   :  { %v419_v55 = vmul.f32 0.3275911, %v403_v42  ;;  %v611_v56 = vsub.f32 0.0, %v403_v42  ;;  %v1388_v57 = vand.u32 2147483647, %v1381_v45  ;;  %1119 = vpow2.f32 %v643_v41 }
 0x131   :  { %v427_v60 = vmul.f32 0.3275911, %v411_v51  ;;  %v619_v61 = vsub.f32 0.0, %v411_v51  ;;  %v612_v62 = vsub.f32 0.0, %v404_v52  ;;  %v420_v2 = vmul.f32 0.3275911, %v404_v52 }
 0x132   :  { %v1385_v43 = vpop.eup %1107  ;;  %v435_v0 = vadd.f32 1.0, %v419_v55  ;;  %v627_v1 = vmul.f32 %v611_v56, %v403_v42  ;;  %v1394_v3 = vpop.f32.mrb[12].mxu0  ;;  %v1413_v20 = vmul.f32 0.5, %v1319_v44  ;;  %v428_v25 = vmul.f32 0.3275911, %v1388_v57 }
 0x133   :  { %v1390_v58 = vpop.eup %1109  ;;  %v465_v59 = vmul.f32 1.0614054, %v1385_v43  ;;  %v443_v5 = vadd.f32 1.0, %v427_v60  ;;  %v635_v6 = vmul.f32 %v619_v61, %v411_v51  ;;  %v1396_v7 = vpop.f32.mrb[12].mxu1  ;;  %v436_v12 = vadd.f32 1.0, %v420_v2 }
 0x134   :  { %v473_v63 = vmul.f32 1.0614054, %v1390_v58  ;;  %v1398_v8 = vpop.f32.mrb[13].mxu0  ;;  %1121 = vrcp.f32 %v435_v0  ;;  %v645_v11 = vmul.f32 1.442695, %v627_v1  ;;  %v1402_v13 = vpop.f32.mrb[13].mxu1  ;;  %v628_v16 = vmul.f32 %v612_v62, %v404_v52 }
 0x135   :  { %v481_v4 = vadd.f32 -1.4531521, %v465_v59  ;;  %v1400_v9 = vpop.eup %1111  ;;  %1123 = vrcp.f32 %v443_v5  ;;  %v1406_v17 = vpop.f32.mrb[14].mxu0  ;;  %v661_v55 = vmul.f32 1.442695, %v635_v6  ;;  %v444_v56 = vadd.f32 1.0, %v428_v25 }
 0x136   :  { %v489_v10 = vadd.f32 -1.4531521, %v473_v63  ;;  %v466_v15 = vmul.f32 1.0614054, %v1400_v9  ;;  %v1408_v18 = vpop.f32.mrb[14].mxu1  ;;  %v1410_v19 = vpop.eup %1113  ;;  %1125 = vpow2.f32 %v659_v46  ;;  %v620_v0 = vsub.f32 0.0, %v1388_v57 }
 0x137   :  { %v497_v14 = vmul.f32 %v1385_v43, %v481_v4  ;;  %v1417_v27 = vpop.f32.mrb[15].mxu0  ;;  %v1419_v33 = vpop.f32.mrb[15].mxu1  ;;  %v474_v51 = vmul.f32 1.0614054, %v1410_v19  ;;  %1127 = vpow2.f32 %v645_v11  ;;  %v647_v61 = vmul.f32 1.442695, %v628_v16 }
 0x138   :  { %v505_v22 = vmul.f32 %v1390_v58, %v489_v10  ;;  %v482_v42 = vadd.f32 -1.4531521, %v466_v15  ;;  %1129 = vrcp.f32 %v436_v12  ;;  %v1116_v44 = vpop.eup %1115  ;;  %v1428_v1 = vadd.f32 %v1358_v30, %v1315_v34 }
 0x139   :  { %v513_v41 = vadd.f32 1.4214138, %v497_v14  ;;  %v490_v60 = vadd.f32 -1.4531521, %v474_v51  ;;  %v1118_v62 = vpop.eup %1117  ;;  %1131 = vrcp.f32 %v444_v56  ;;  %v1433_v6 = vadd.f32 %v1350_v26, %v1342_v21 }
 0x13a   :  { %v521_v52 = vadd.f32 1.4214138, %v505_v22  ;;  %v498_v46 = vmul.f32 %v1400_v9, %v482_v42  ;;  %v1436_v11 = vmul.f32 0.5, %v1327_v49  ;;  %1133 = vpow2.f32 %v661_v55  ;;  %v1120_v14 = vpop.eup %1119 }
 0x13b   :  { %v529_v59 = vmul.f32 %v1385_v43, %v513_v41  ;;  %v506_v5 = vmul.f32 %v1410_v19, %v490_v60  ;;  %v1440_v12 = vadd.f32 %v1367_v36, %v1360_v31  ;;  %v1445_v22 = vmul.f32 0.70710677, %v1428_v1 }
 0x13c   :  { %v537_v63 = vmul.f32 %v1390_v58, %v521_v52  ;;  %v514_v4 = vadd.f32 1.4214138, %v498_v46  ;;  %v1451_v49 = vmul.f32 0.5, %v1330_v50  ;;  %1135 = vpow2.f32 %v647_v61 }
 0x13d   :  { %v545_v2 = vadd.f32 -0.28449672, %v529_v59  ;;  %v522_v16 = vadd.f32 1.4214138, %v506_v5  ;;  %v636_v31 = vmul.f32 %v620_v0, %v1388_v57  ;;  %v1461_v50 = vand.u32 2147483647, %v1445_v22 }
 0x13e   :  { %v553_v10 = vadd.f32 -0.28449672, %v537_v63  ;;  %v530_v15 = vmul.f32 %v1400_v9, %v514_v4  ;;  %v1447_v21 = vpop.eup %1121  ;;  %v1465_v57 = vadd.f32 %v1369_v37, %v1362_v32  ;;  %vm706_vm2 = vcmp.ge.f32.partialorder %v1335_v53, 0.0 }
 0x13f   :  { %v561_v30 = vmul.f32 %v1385_v43, %v545_v2  ;;  %v1454_v36 = vpop.eup %1123  ;;  %v538_v42 = vmul.f32 %v1410_v19, %v522_v16  ;;  %v467_v51 = vmul.f32 1.0614054, %v1447_v21  ;;  %v663_v5 = vmul.f32 1.442695, %v636_v31 }
 0x140   :  { %v569_v26 = vmul.f32 %v1390_v58, %v553_v10  ;;  %v546_v41 = vadd.f32 -0.28449672, %v530_v15  ;;  %v1126_v52 = vpop.eup %1125  ;;  %v475_v56 = vmul.f32 1.0614054, %v1454_v36  ;;  %v421_v10 = vmul.f32 0.3275911, %v1461_v50 }
 0x141   :  { %v577_v25 = vadd.f32 0.2548296, %v561_v30  ;;  %v1467_v59 = vpop.eup %1127  ;;  %v554_v61 = vadd.f32 -0.28449672, %v538_v42  ;;  %v483_v63 = vadd.f32 -1.4531521, %v467_v51 }
 0x142   :  { %v585_v55 = vadd.f32 0.2548296, %v569_v26  ;;  %v562_v60 = vmul.f32 %v1400_v9, %v546_v41  ;;  %v1472_v0 = vpop.eup %1129  ;;  %v491_v4 = vadd.f32 -1.4531521, %v475_v56  ;;  %vm714_vm3 = vcmp.ge.f32.partialorder %v1338_v54, 0.0 }
 0x143   :  { %v593_v46 = vmul.f32 %v1385_v43, %v577_v25  ;;  %v570_v30 = vmul.f32 %v1410_v19, %v554_v61  ;;  %v499_v43 = vmul.f32 %v1447_v21, %v483_v63  ;;  %v1478_v15 = vpop.eup %1131  ;;  %v468_v25 = vmul.f32 1.0614054, %v1472_v0 }
 0x144   :  { %v601_v2 = vmul.f32 %v1390_v58, %v585_v55  ;;  %v578_v37 = vadd.f32 0.2548296, %v562_v60  ;;  %v507_v26 = vmul.f32 %v1454_v36, %v491_v4  ;;  %v437_v58 = vadd.f32 1.0, %v421_v10  ;;  %v1134_v51 = vpop.eup %1133 }
 0x145   :  { %v673_v32 = vmul.f32 %v1116_v44, %v593_v46  ;;  %v586_v42 = vadd.f32 0.2548296, %v570_v30  ;;  %v515_v44 = vadd.f32 1.4214138, %v499_v43  ;;  %v484_v46 = vadd.f32 -1.4531521, %v468_v25 }
 0x146   :  { %v681_v16 = vmul.f32 %v1118_v62, %v601_v2  ;;  %v594_v31 = vmul.f32 %v1400_v9, %v578_v37  ;;  %v523_v56 = vadd.f32 1.4214138, %v507_v26  ;;  %1137 = vrcp.f32 %v437_v58  ;;  %v1136_v2 = vpop.eup %1135 }
 0x147   :  { %v689_v41 = vsub.f32 1.0, %v673_v32  ;;  %v602_v61 = vmul.f32 %v1410_v19, %v586_v42  ;;  %v531_v63 = vmul.f32 %v1447_v21, %v515_v44  ;;  %v500_v9 = vmul.f32 %v1472_v0, %v484_v46 }
 0x148   :  { %v697_v55 = vsub.f32 1.0, %v681_v16  ;;  %v674_v60 = vmul.f32 %v1120_v14, %v594_v31  ;;  %v539_v10 = vmul.f32 %v1454_v36, %v523_v56  ;;  %v476_v32 = vmul.f32 1.0614054, %v1478_v15 }
 0x149   :  { %v721_v62 = vsub.f32 0.0, %v689_v41  ;;  %v682_v43 = vmul.f32 %v1126_v52, %v602_v61  ;;  %v547_v16 = vadd.f32 -0.28449672, %v531_v63  ;;  %v516_v26 = vadd.f32 1.4214138, %v500_v9 }
 0x14a   :  { %v729_v4 = vsub.f32 0.0, %v697_v55  ;;  %v690_v30 = vsub.f32 1.0, %v674_v60  ;;  %v555_v19 = vadd.f32 -0.28449672, %v539_v10  ;;  %1139 = vpow2.f32 %v663_v5 }
 0x14b   :  { %v737_v37 = vsel %vm705_vm0, %v689_v41, %v721_v62  ;;  %v698_v31 = vsub.f32 1.0, %v682_v43  ;;  %v563_v42 = vmul.f32 %v1447_v21, %v547_v16  ;;  %v532_v56 = vmul.f32 %v1472_v0, %v516_v26 }
 0x14c   :  { %v745_v14 = vsel %vm713_vm1, %v697_v55, %v729_v4  ;;  %v753_v25 = vadd.f32 1.0, %v737_v37  ;;  %v722_v58 = vsub.f32 0.0, %v690_v30  ;;  %v571_v44 = vmul.f32 %v1454_v36, %v555_v19 }
 0x14d   :  { %v492_v47 = vadd.f32 -1.4531521, %v476_v32  ;;  %v1499_v52 = vadd.f32 %v1433_v6, %v1315_v34  ;;  %v761_v41 = vadd.f32 1.0, %v745_v14  ;;  %v730_v55 = vsub.f32 0.0, %v698_v31 }
 0x14e   :  { %v738_v48 = vsel %vm706_vm2, %v690_v30, %v722_v58  ;;  %v579_v5 = vadd.f32 0.2548296, %v563_v42  ;;  %v587_v62 = vadd.f32 0.2548296, %v571_v44  ;;  %v548_v60 = vadd.f32 -0.28449672, %v532_v56 }
 0x14f   :  { %v754_v46 = vadd.f32 1.0, %v738_v48  ;;  %v508_v61 = vmul.f32 %v1478_v15, %v492_v47  ;;  %v769_v63 = vmul.f32 %v753_v25, %v1371_v38  ;;  %v746_v4 = vsel %vm714_vm3, %v698_v31, %v730_v55 }
 0x150   :  { %v595_v10 = vmul.f32 %v1447_v21, %v579_v5  ;;  %v1510_v6 = vadd.f32 %v1440_v12, %v1315_v34  ;;  %v1512_v53 = vpop.eup %1137  ;;  %v762_v32 = vadd.f32 1.0, %v746_v4  ;;  %v603_v37 = vmul.f32 %v1454_v36, %v587_v62 }
 0x151   :  { %v770_v9 = vmul.f32 %v754_v46, %v1436_v11  ;;  %v564_v30 = vmul.f32 %v1472_v0, %v548_v60  ;;  %v777_v38 = vmul.f32 %v761_v41, %v1413_v20  ;;  %v524_v43 = vadd.f32 1.4214138, %v508_v61 }
 0x152   :  { %v675_v54 = vmul.f32 %v1467_v59, %v595_v10  ;;  %v469_v21 = vmul.f32 1.0614054, %v1512_v53  ;;  %v778_v12 = vmul.f32 %v762_v32, %v1451_v49  ;;  %v683_v14 = vmul.f32 %v1134_v51, %v603_v37 }
 0x153   :  { %v939_v16 = vpack.c.bf16 %v770_v9, %v769_v63  ;;  %v580_v19 = vadd.f32 0.2548296, %v564_v30  ;;  %v540_v11 = vmul.f32 %v1478_v15, %v524_v43  ;;  %v1528_v49 = vmul.f32 0.70710677, %v1499_v52 }
 0x154   :  { %v691_v26 = vsub.f32 1.0, %v675_v54  ;;  %v485_v25 = vadd.f32 -1.4531521, %v469_v21  ;;  %v1140_v58 = vpop.eup %1139  ;;  %v959_v20 = vpack.c.bf16 %v778_v12, %v777_v38  ;;  %v699_v51 = vsub.f32 1.0, %v683_v14 }
 0x155   :  { %940 = vst [vmem:[%s1696_s3] sm:$0xff] %v939_v16   ;;  %v596_v36 = vmul.f32 %v1472_v0, %v580_v19  ;;  %v556_v31 = vadd.f32 -0.28449672, %v540_v11  ;;  %v1534_v56 = vmul.f32 0.70710677, %v1510_v6  ;;  %vm707_vm4 = vcmp.ge.f32.partialorder %v1365_v35, 0.0 }
 0x156   :  { %v723_v59 = vsub.f32 0.0, %v691_v26  ;;  %v501_v42 = vmul.f32 %v1512_v53, %v485_v25  ;;  %979 = vst [vmem:[%s1696_s3 + $0x20] sm:$0xff] %v959_v20   ;;  %v1539_v47 = vand.u32 2147483647, %v1528_v49  ;;  %v371_v5 = vmul.f32 0.5, %v1345_v23 }
 0x157   :  { %v676_v44 = vmul.f32 %v1136_v2, %v596_v36  ;;  %v572_v0 = vmul.f32 %v1478_v15, %v556_v31  ;;  %v613_v62 = vsub.f32 0.0, %v1461_v50  ;;  %v731_v60 = vsub.f32 0.0, %v699_v51 }
 0x158   :  { %v739_v41 = vsel %vm707_vm4, %v691_v26, %v723_v59  ;;  %v517_v55 = vadd.f32 1.4214138, %v501_v42  ;;  %v429_v2 = vmul.f32 0.3275911, %v1539_v47  ;;  %v372_v61 = vmul.f32 0.5, %v1353_v28 }
 0x159   :  { %v692_v48 = vsub.f32 1.0, %v676_v44  ;;  %v588_v46 = vadd.f32 0.2548296, %v572_v0  ;;  %v406_v35 = vand.u32 2147483647, %v1534_v56  ;;  %v755_v4 = vadd.f32 1.0, %v739_v41 }
 0x15a   :  { %vm708_vm5 = vcmp.ge.f32.partialorder %v1377_v40, 0.0  ;;  %v445_v9 = vadd.f32 1.0, %v429_v2  ;;  %vm715_vm6 = vcmp.ge.f32.partialorder %v1374_v39, 0.0  ;;  %v533_v32 = vmul.f32 %v1512_v53, %v517_v55 }
 0x15b   :  { %v724_v63 = vsub.f32 0.0, %v692_v48  ;;  %v604_v10 = vmul.f32 %v1478_v15, %v588_v46  ;;  %v422_v37 = vmul.f32 0.3275911, %v406_v35  ;;  %v629_v54 = vmul.f32 %v613_v62, %v1461_v50 }
 0x15c   :  { %1141 = vrcp.f32 %v445_v9  ;;  %v747_v28 = vsel %vm715_vm6, %v699_v51, %v731_v60  ;;  %v771_v21 = vmul.f32 %v755_v4, %v371_v5  ;;  %v1553_v40 = vadd.f32 %v1465_v57, %v1315_v34 }
 0x15d   :  { %v740_v23 = vsel %vm708_vm5, %v692_v48, %v724_v63  ;;  %v684_v38 = vmul.f32 %v1140_v58, %v604_v10  ;;  %v438_v43 = vadd.f32 1.0, %v422_v37  ;;  %v549_v15 = vadd.f32 -0.28449672, %v533_v32 }
 0x15e   :  { %v756_v30 = vadd.f32 1.0, %v740_v23  ;;  %v1019_v39 = vadd.f32 %v1398_v8, %v1394_v3  ;;  %v1043_v14 = vadd.f32 %v1402_v13, %v1396_v7  ;;  %v649_v50 = vmul.f32 1.442695, %v629_v54 }
 0x15f   :  { %v700_v12 = vsub.f32 1.0, %v684_v38  ;;  %1143 = vrcp.f32 %v438_v43  ;;  %v763_v11 = vadd.f32 1.0, %v747_v28  ;;  %vm716_vm7 = vcmp.ge.f32.partialorder %v1381_v45, 0.0 }
 0x160   :  { %v772_v16 = vmul.f32 %v756_v30, %v372_v61  ;;  %v1561_v25 = vmul.f32 0.70710677, %v1553_v40  ;;  %v1564_v57 = vadd.f32 %v1019_v39, %v1315_v34  ;;  %v379_v58 = vmul.f32 0.5, %v1348_v24 }
 0x161   :  { %v732_v26 = vsub.f32 0.0, %v700_v12  ;;  %v1571_v7 = vadd.f32 %v1043_v14, %v1315_v34  ;;  %v1022_v8 = vadd.f32 %v1417_v27, %v1406_v17  ;;  %v380_v45 = vmul.f32 0.5, %v1356_v29 }
 0x162   :  { %v944_v19 = vpack.c.bf16 %v772_v16, %v771_v21  ;;  %v565_v20 = vmul.f32 %v1512_v53, %v549_v15  ;;  %v414_v36 = vand.u32 2147483647, %v1561_v25  ;;  %1145 = vpow2.f32 %v649_v50 }
 0x163   :  { %v748_v3 = vsel %vm716_vm7, %v700_v12, %v732_v26  ;;  %v1579_v24 = vmul.f32 0.70710677, %v1564_v57  ;;  %v1582_v59 = vmul.f32 0.70710677, %v1571_v7  ;;  %v779_v31 = vmul.f32 %v763_v11, %v379_v58 }
 0x164   :  { %976 = vst [vmem:[%s1696_s3 + $0x8] sm:$0xff] %v944_v19   ;;  %v764_v13 = vadd.f32 1.0, %v748_v3  ;;  %v621_v51 = vsub.f32 0.0, %v1539_v47  ;;  %v430_v44 = vmul.f32 0.3275911, %v414_v36  ;;  %v614_v29 = vsub.f32 0.0, %v406_v35 }
 0x165   :  { %v407_v27 = vand.u32 2147483647, %v1579_v24  ;;  %v1589_v0 = vand.u32 2147483647, %v1582_v59  ;;  %v581_v48 = vadd.f32 0.2548296, %v565_v20  ;;  %v1600_v9 = vadd.f32 %v1022_v8, %v1315_v34 }
 0x166   :  { %v780_v42 = vmul.f32 %v764_v13, %v380_v45  ;;  %v1585_v17 = vpop.eup %1141  ;;  %v446_v5 = vadd.f32 1.0, %v430_v44  ;;  %v637_v60 = vmul.f32 %v621_v51, %v1539_v47  ;;  %v630_v63 = vmul.f32 %v614_v29, %v406_v35 }
 0x167   :  { %v477_v55 = vmul.f32 1.0614054, %v1585_v17  ;;  %v423_v46 = vmul.f32 0.3275911, %v407_v27  ;;  %v431_v62 = vmul.f32 0.3275911, %v1589_v0  ;;  %v597_v23 = vmul.f32 %v1512_v53, %v581_v48 }
 0x168   :  { %v964_v41 = vpack.c.bf16 %v780_v42, %v779_v31  ;;  %1147 = vrcp.f32 %v446_v5  ;;  %v665_v38 = vmul.f32 1.442695, %v637_v60  ;;  %v651_v28 = vmul.f32 1.442695, %v630_v63 }
 0x169   :  { %v493_v2 = vadd.f32 -1.4531521, %v477_v55  ;;  %v1597_v61 = vpop.eup %1143  ;;  %v439_v4 = vadd.f32 1.0, %v423_v46  ;;  %v447_v10 = vadd.f32 1.0, %v431_v62  ;;  %v1606_v35 = vmul.f32 0.70710677, %v1600_v9 }
 0x16a   :  { %980 = vst [vmem:[%s1696_s3 + $0x28] sm:$0xff] %v964_v41   ;;  %v470_v37 = vmul.f32 1.0614054, %v1597_v61  ;;  %v1046_v43 = vadd.f32 %v1419_v33, %v1408_v18  ;;  %v622_v12 = vsub.f32 0.0, %v414_v36  ;;  %v615_v26 = vsub.f32 0.0, %v407_v27 }
 0x16b   :  { %v509_v32 = vmul.f32 %v1585_v17, %v493_v2  ;;  %1149 = vrcp.f32 %v439_v4  ;;  %v408_v15 = vand.u32 2147483647, %v1606_v35  ;;  %v623_v51 = vsub.f32 0.0, %v1589_v0 }
 0x16c   :  { %v486_v54 = vadd.f32 -1.4531521, %v470_v37  ;;  %1151 = vrcp.f32 %v447_v10  ;;  %v1146_v47 = vpop.eup %1145  ;;  %v1614_v39 = vadd.f32 %v1046_v43, %v1315_v34  ;;  %v638_v8 = vmul.f32 %v622_v12, %v414_v36 }
 0x16d   :  { %v525_v30 = vadd.f32 1.4214138, %v509_v32  ;;  %v677_v21 = vmul.f32 %v1146_v47, %v597_v23  ;;  %1153 = vpow2.f32 %v665_v38  ;;  %v424_v50 = vmul.f32 0.3275911, %v408_v15 }
 0x16e   :  { %v502_v16 = vmul.f32 %v1597_v61, %v486_v54  ;;  %1155 = vpow2.f32 %v651_v28  ;;  %v1617_v11 = vmul.f32 0.70710677, %v1614_v39  ;;  %v631_v42 = vmul.f32 %v615_v26, %v407_v27 }
 0x16f   :  { %v541_v53 = vmul.f32 %v1585_v17, %v525_v30  ;;  %v693_v33 = vsub.f32 1.0, %v677_v21  ;;  %v440_v45 = vadd.f32 1.0, %v424_v50  ;;  %v1631_v29 = vmul.f32 0.5, %v1428_v1 }
 0x170   :  { %v518_v19 = vadd.f32 1.4214138, %v502_v16  ;;  %v1625_v13 = vand.u32 2147483647, %v1617_v11  ;;  %v667_v46 = vmul.f32 1.442695, %v638_v8  ;;  %v639_v23 = vmul.f32 %v623_v51, %v1589_v0 }
 0x171   :  { %v557_v14 = vadd.f32 -0.28449672, %v541_v53  ;;  %1157 = vrcp.f32 %v440_v45  ;;  %v725_v55 = vsub.f32 0.0, %v693_v33  ;;  %v653_v10 = vmul.f32 1.442695, %v631_v42 }
 0x172   :  { %v1619_v18 = vpop.eup %1147  ;;  %v534_v3 = vmul.f32 %v1597_v61, %v518_v19  ;;  %v432_v36 = vmul.f32 0.3275911, %v1625_v13  ;;  %v616_v30 = vsub.f32 0.0, %v408_v15  ;;  %vm709_vm8 = vcmp.ge.f32.partialorder %v1445_v22, 0.0 }
 0x173   :  { %v573_v58 = vmul.f32 %v1585_v17, %v557_v14  ;;  %v478_v34 = vmul.f32 1.0614054, %v1619_v18  ;;  %v374_v43 = vmul.f32 0.5, %v1510_v6  ;;  %v741_v53 = vsel %vm709_vm8, %v693_v33, %v725_v55 }
 0x174   :  { %v550_v31 = vadd.f32 -0.28449672, %v534_v3  ;;  %v448_v1 = vadd.f32 1.0, %v432_v36  ;;  %v669_v14 = vmul.f32 1.442695, %v639_v23  ;;  %v632_v26 = vmul.f32 %v616_v30, %v408_v15 }
 0x175   :  { %v589_v20 = vadd.f32 0.2548296, %v573_v58  ;;  %v1628_v44 = vpop.eup %1149  ;;  %v494_v41 = vadd.f32 -1.4531521, %v478_v34  ;;  %vm717_vm9 = vcmp.ge.f32.partialorder %v1528_v49, 0.0  ;;  %vm710_vm10 = vcmp.ge.f32.partialorder %v1534_v56, 0.0 }
 0x176   :  { %v1634_v48 = vpop.eup %1151  ;;  %v566_v5 = vmul.f32 %v1597_v61, %v550_v31  ;;  %v471_v62 = vmul.f32 1.0614054, %v1628_v44  ;;  %1159 = vrcp.f32 %v448_v1  ;;  %v624_v6 = vsub.f32 0.0, %v1625_v13 }
 0x177   :  { %v605_v27 = vmul.f32 %v1585_v17, %v589_v20  ;;  %v510_v2 = vmul.f32 %v1619_v18, %v494_v41  ;;  %v479_v60 = vmul.f32 1.0614054, %v1634_v48  ;;  %v1154_v38 = vpop.eup %1153  ;;  %1161 = vpow2.f32 %v667_v46 }
 0x178   :  { %v582_v63 = vadd.f32 0.2548296, %v566_v5  ;;  %v487_v4 = vadd.f32 -1.4531521, %v471_v62  ;;  %v1156_v47 = vpop.eup %1155  ;;  %1163 = vpow2.f32 %v653_v10  ;;  %v757_v3 = vadd.f32 1.0, %v741_v53 }
 0x179   :  { %v526_v32 = vadd.f32 1.4214138, %v510_v2  ;;  %v495_v37 = vadd.f32 -1.4531521, %v479_v60  ;;  %v685_v28 = vmul.f32 %v1154_v38, %v605_v27  ;;  %1165 = vpow2.f32 %v669_v14 }
 0x17a   :  { %v598_v54 = vmul.f32 %v1597_v61, %v582_v63  ;;  %v503_v17 = vmul.f32 %v1628_v44, %v487_v4  ;;  %v655_v56 = vmul.f32 1.442695, %v632_v26  ;;  %v640_v55 = vmul.f32 %v624_v6, %v1625_v13 }
 0x17b   :  { %v542_v21 = vmul.f32 %v1619_v18, %v526_v32  ;;  %v511_v0 = vmul.f32 %v1634_v48, %v495_v37  ;;  %v1652_v58 = vpop.eup %1157  ;;  %v701_v33 = vsub.f32 1.0, %v685_v28  ;;  %v773_v1 = vmul.f32 %v757_v3, %v1631_v29 }
 0x17c   :  { %v678_v16 = vmul.f32 %v1156_v47, %v598_v54  ;;  %v519_v12 = vadd.f32 1.4214138, %v503_v17  ;;  %v472_v15 = vmul.f32 1.0614054, %v1652_v58  ;;  %1167 = vpow2.f32 %v655_v56 }
 0x17d   :  { %v558_v19 = vadd.f32 -0.28449672, %v542_v21  ;;  %v527_v22 = vadd.f32 1.4214138, %v511_v0  ;;  %v733_v46 = vsub.f32 0.0, %v701_v33  ;;  %v381_v53 = vmul.f32 0.5, %v1499_v52 }
 0x17e   :  { %v694_v61 = vsub.f32 1.0, %v678_v16  ;;  %v535_v50 = vmul.f32 %v1628_v44, %v519_v12  ;;  %v488_v36 = vadd.f32 -1.4531521, %v472_v15  ;;  %v671_v54 = vmul.f32 1.442695, %v640_v55 }
 0x17f   :  { %v574_v8 = vmul.f32 %v1619_v18, %v558_v19  ;;  %v543_v34 = vmul.f32 %v1634_v48, %v527_v22  ;;  %vm718_vm11 = vcmp.ge.f32.partialorder %v1561_v25, 0.0  ;;  %v382_v19 = vmul.f32 0.5, %v1553_v40 }
 0x180   :  { %v726_v45 = vsub.f32 0.0, %v694_v61  ;;  %v551_v20 = vadd.f32 -0.28449672, %v535_v50  ;;  %v1160_v5 = vpop.eup %1159  ;;  %v504_v4 = vmul.f32 %v1652_v58, %v488_v36  ;;  %1169 = vpow2.f32 %v671_v54 }
 0x181   :  { %v590_v31 = vadd.f32 0.2548296, %v574_v8  ;;  %v559_v42 = vadd.f32 -0.28449672, %v543_v34  ;;  %v1162_v60 = vpop.eup %1161  ;;  %v480_v10 = vmul.f32 1.0614054, %v1160_v5 }
 0x182   :  { %v742_v51 = vsel %vm710_vm10, %v694_v61, %v726_v45  ;;  %v567_v41 = vmul.f32 %v1628_v44, %v551_v20  ;;  %v520_v30 = vadd.f32 1.4214138, %v504_v4  ;;  %v1164_v17 = vpop.eup %1163  ;;  %vm711_vm12 = vcmp.ge.f32.partialorder %v1579_v24, 0.0 }
 0x183   :  { %v758_v62 = vadd.f32 1.0, %v742_v51  ;;  %v606_v27 = vmul.f32 %v1619_v18, %v590_v31  ;;  %v575_v2 = vmul.f32 %v1634_v48, %v559_v42  ;;  %v496_v38 = vadd.f32 -1.4531521, %v480_v10  ;;  %v1166_v16 = vpop.eup %1165 }
 0x184   :  { %v583_v63 = vadd.f32 0.2548296, %v567_v41  ;;  %v749_v18 = vsel %vm717_vm9, %v701_v33, %v733_v46  ;;  %v536_v0 = vmul.f32 %v1652_v58, %v520_v30  ;;  %vm719_vm13 = vcmp.ge.f32.partialorder %v1582_v59, 0.0 }
 0x185   :  { %v774_v23 = vmul.f32 %v758_v62, %v374_v43  ;;  %v686_v32 = vmul.f32 %v1162_v60, %v606_v27  ;;  %v591_v37 = vadd.f32 0.2548296, %v575_v2  ;;  %v512_v43 = vmul.f32 %v1160_v5, %v496_v38 }
 0x186   :  { %v599_v13 = vmul.f32 %v1628_v44, %v583_v63  ;;  %v765_v12 = vadd.f32 1.0, %v749_v18  ;;  %v552_v49 = vadd.f32 -0.28449672, %v536_v0  ;;  %v1168_v34 = vpop.eup %1167  ;;  %vm712_vm14 = vcmp.ge.f32.partialorder %v1606_v35, 0.0 }
 0x187   :  { %v949_v47 = vpack.c.bf16 %v774_v23, %v773_v1  ;;  %v702_v28 = vsub.f32 1.0, %v686_v32  ;;  %v607_v29 = vmul.f32 %v1634_v48, %v591_v37  ;;  %v528_v14 = vadd.f32 1.4214138, %v512_v43 }
 0x188   :  { %v679_v21 = vmul.f32 %v1164_v17, %v599_v13  ;;  %v568_v52 = vmul.f32 %v1652_v58, %v552_v49  ;;  %v781_v6 = vmul.f32 %v765_v12, %v381_v53  ;;  %v375_v1 = vmul.f32 0.5, %v1564_v57 }
 0x189   :  { %977 = vst [vmem:[%s1696_s3 + $0x10] sm:$0xff] %v949_v47   ;;  %v734_v44 = vsub.f32 0.0, %v702_v28  ;;  %v687_v22 = vmul.f32 %v1166_v16, %v607_v29  ;;  %v544_v50 = vmul.f32 %v1160_v5, %v528_v14  ;;  %v376_v63 = vmul.f32 0.5, %v1600_v9 }
 0x18a   :  { %v695_v61 = vsub.f32 1.0, %v679_v21  ;;  %v584_v33 = vadd.f32 0.2548296, %v568_v52  ;;  %v1170_v55 = vpop.eup %1169  ;;  %vm720_vm15 = vcmp.ge.f32.partialorder %v1617_v11, 0.0  ;;  %v383_v37 = vmul.f32 0.5, %v1571_v7 }
 0x18b   :  { %v750_v48 = vsel %vm718_vm11, %v702_v28, %v734_v44  ;;  %v560_v8 = vadd.f32 -0.28449672, %v544_v50  ;;  %v703_v45 = vsub.f32 1.0, %v687_v22  ;;  %v384_v35 = vmul.f32 0.5, %v1614_v39 }
 0x18c   :  { %v766_v26 = vadd.f32 1.0, %v750_v48  ;;  %v727_v25 = vsub.f32 0.0, %v695_v61  ;;  %v600_v15 = vmul.f32 %v1652_v58, %v584_v33 }
 0x18d   :  { %v576_v31 = vmul.f32 %v1160_v5, %v560_v8  ;;  %v735_v51 = vsub.f32 0.0, %v703_v45 }
 0x18e   :  { %v782_v3 = vmul.f32 %v766_v26, %v382_v19  ;;  %v680_v40 = vmul.f32 %v1168_v34, %v600_v15  ;;  %v743_v56 = vsel %vm711_vm12, %v695_v61, %v727_v25 }
 0x18f   :  { %v592_v42 = vadd.f32 0.2548296, %v576_v31  ;;  %v759_v27 = vadd.f32 1.0, %v743_v56  ;;  %v751_v58 = vsel %vm719_vm13, %v703_v45, %v735_v51 }
 0x190   :  { %v969_v20 = vpack.c.bf16 %v782_v3, %v781_v6  ;;  %v696_v41 = vsub.f32 1.0, %v680_v40  ;;  %v767_v23 = vadd.f32 1.0, %v751_v58 }
 0x191   :  { %v608_v36 = vmul.f32 %v1160_v5, %v592_v42  ;;  %v775_v10 = vmul.f32 %v759_v27, %v375_v1 }
 0x192   :  { %981 = vst [vmem:[%s1696_s3 + $0x30] sm:$0xff] %v969_v20   ;;  %v728_v46 = vsub.f32 0.0, %v696_v41  ;;  %v783_v30 = vmul.f32 %v767_v23, %v383_v37 }
 0x193   :  { %v688_v62 = vmul.f32 %v1170_v55, %v608_v36 }
 0x194   :  { %v744_v2 = vsel %vm712_vm14, %v696_v41, %v728_v46 }
 0x195   :  { %v704_v60 = vsub.f32 1.0, %v688_v62  ;;  %v760_v24 = vadd.f32 1.0, %v744_v2 }
 0x197   :  { %v736_v4 = vsub.f32 0.0, %v704_v60  ;;  %v776_v5 = vmul.f32 %v760_v24, %v376_v63 }
 0x199   :  { %v752_v32 = vsel %vm720_vm15, %v704_v60, %v736_v4  ;;  %v954_v59 = vpack.c.bf16 %v776_v5, %v775_v10 }
 0x19a   :  { %v768_v13 = vadd.f32 1.0, %v752_v32 }
 0x19b   :  { %978 = vst [vmem:[%s1696_s3 + $0x18] sm:$0xff] %v954_v59  }
 0x19c   :  { %v784_v57 = vmul.f32 %v768_v13, %v384_v35 }
 0x19e   :  { %v974_v9 = vpack.c.bf16 %v784_v57, %v783_v30 }
 0x1a0   :  { %982 = vst [vmem:[%s1696_s3 + $0x38] sm:$0xff] %v974_v9  }
 0x1a1   :  { %869 = vsyncpa [#allocation3], 1 }
 0x1a2   :  { %870 = vsyncpa [#allocation5], 1 }

// kernel: generator_forward.4
= control target key start
LH: loop header
LB: loop body
LE: loop exit
PB: predicated region body
PF: predicated region fallthrough
CT: control target
= control target key end

     0   :  { %8 = vsyncpa [#allocation3], 0  ;;  %s2170_s12 = smov [#allocation2]   ;;  %s2941_s0 = inlined_call_operand.vmem [shape: bf16[2,32], index: 0, kind: input, shape index: {}]   ;;  %s2942_s1 = inlined_call_operand.hbm [shape: bf16[32,3136], index: 1, kind: input, shape index: {}]   ;;  %s2943_s2 = inlined_call_operand.vmem [shape: f32[1,3136], index: 2, kind: input, shape index: {}]   ;;  %s2944_s3 = inlined_call_operand.vmem [shape: bf16[2,3136], index: 3, kind: output, shape index: {}]  }
   0x1   :  { %s16_s13 = sshll.u32 %s2170_s12, 4  ;;  %s2146_s16 = scalar_lea.hbm %s2942_s1, 6400  ;;  %s17_s13 = int_to_ptr.vmem [resolvable:$true] %s16_s13 }
   0x2   :  { %p2147_p0 = scmp.ne.s32.totalorder %s2942_s1, %s2146_s16  ;;  %p2150_p1 = scmp.lt.u32.totalorder %s2146_s16, %s2942_s1 }
   0x4   :  { %p2152_p2 = pnand %p2150_p1, %p2147_p0 }
   0x6   :  { %2155 = shalt.err (!%p2152_p2)
}
   0x7   :  { %s2156_s21 = scalar_lea.vmem %s17_s13, 6400  ;;  %p2161_p4 = scmp.lt.s32.totalorder %s17_s13, %s17_s13 }
   0x8   :  { %p2157_p3 = scmp.ne.s32.totalorder %s17_s13, %s2156_s21  ;;  %p2162_p5 = scmp.lt.s32.totalorder %s2156_s21, %s2156_s21 }
   0xa   :  { %p2163_p6 = por %p2162_p5, %p2161_p4 }
   0xc   :  { %p2164_p7 = pnand %p2163_p6, %p2157_p3 }
   0xe   :  { %2167 = shalt.err (!%p2164_p7)
}
   0xf   :  { %s2171_s22 = smov 1600   ;;  %s2172_s23 = smov 100  }
  0x10   :  { %22 = dma.hbm_to_vmem [thread:$0]  %s2942_s1, 6400, %s17_s13, [#allocation3], %s2171_s22, %s2171_s22, %s2172_s23  }
  0x11   :  { %2168 = dma.done.wait [#allocation3], 6400  }
  0x12   :  { %2169 = vsyncadd [#allocation3], 4294960896  ;;  %v2173_v0 = vmov 0   ;;  %v1972_v1 = vld [vmem:[#allocation2 + $0x4] ss:$100 sps:$4 sm:$0xff]   ;;  %vm467_vm0 = vcmask 261120   ;;  %v90_v53 = vlaneseq }
  0x13   :  { %503 = vmatprep.mubr.bf16.mxu0 %v2173_v0  ;;  %544 = vmatprep.mubr.bf16.mxu1 %v2173_v0  ;;  %v1974_v2 = vld [vmem:[#allocation2 + $0xc] ss:$100 sps:$4 sm:$0xff]   ;;  %v1976_v3 = vld [vmem:[#allocation2] ss:$100 sps:$4 sm:$0xff]   ;;  %v1980_v6 = vld [vmem:[#allocation2 + $0xd4] ss:$100 sps:$4 sm:$0xff]  }
  0x14   :  { %471 = vmatprep.subr.bf16.mxu0 %v1972_v1  ;;  %v1977_v4 = vld [vmem:[#allocation2 + $0x8] ss:$100 sps:$4 sm:$0xff]   ;;  %512 = vmatprep.subr.bf16.mxu1 %v1974_v2  ;;  %v1983_v8 = vld [vmem:[#allocation2 + $0xd0] ss:$100 sps:$4 sm:$0xff]   ;;  %v2214_v9 = vld [vmem:[%s2941_s0] sm:$0x1] }
  0x15   :  { %v1978_v5 = vld [vmem:[#allocation2 + $0xcc] ss:$100 sps:$4 sm:$0xff]   ;;  %472 = vmatpush1.bf16.msra.mxu0 %v1976_v3  ;;  %513 = vmatpush1.bf16.msra.mxu1 %v1977_v4  ;;  %v1986_v11 = vld [vmem:[#allocation2 + $0x14] ss:$100 sps:$4 sm:$0xff]   ;;  %v1989_v13 = vld [vmem:[#allocation2 + $0x1c] ss:$100 sps:$4 sm:$0xff]  }
  0x16   :  { %v1982_v7 = vld [vmem:[#allocation2 + $0xc8] ss:$100 sps:$4 sm:$0xff]   ;;  %473 = vmatprep.subr.bf16.mxu0 %v1978_v5  ;;  %514 = vmatprep.subr.bf16.mxu1 %v1980_v6  ;;  %v1984_v10 = vld [vmem:[#allocation2 + $0x10] ss:$100 sps:$4 sm:$0xff]   ;;  %v1987_v12 = vld [vmem:[#allocation2 + $0x18] ss:$100 sps:$4 sm:$0xff]  }
  0x17   :  { %v1992_v14 = vld [vmem:[#allocation2 + $0xdc] ss:$100 sps:$4 sm:$0xff]   ;;  %v1995_v15 = vld [vmem:[#allocation2 + $0xe4] ss:$100 sps:$4 sm:$0xff]   ;;  %v2001_v19 = vld [vmem:[#allocation2 + $0x2c] ss:$100 sps:$4 sm:$0xff]  }
  0x18   :  { %v1990_v16 = vld [vmem:[#allocation2 + $0xd8] ss:$100 sps:$4 sm:$0xff]   ;;  %v1993_v17 = vld [vmem:[#allocation2 + $0xe0] ss:$100 sps:$4 sm:$0xff]   ;;  %v1999_v21 = vld [vmem:[#allocation2 + $0x28] ss:$100 sps:$4 sm:$0xff]  }
  0x19   :  { %474 = vmatpush1.bf16.msra.mxu0 %v1982_v7  ;;  %515 = vmatpush1.bf16.msra.mxu1 %v1983_v8  ;;  %v1998_v18 = vld [vmem:[#allocation2 + $0x24] ss:$100 sps:$4 sm:$0xff]   ;;  %v2004_v22 = vld [vmem:[#allocation2 + $0xec] ss:$100 sps:$4 sm:$0xff]   ;;  %v2007_v23 = vld [vmem:[#allocation2 + $0xf4] ss:$100 sps:$4 sm:$0xff]  }
  0x1a   :  { %553 = vmatprep.subr.bf16.mxu0 %v1986_v11  ;;  %594 = vmatprep.subr.bf16.mxu1 %v1989_v13  ;;  %v1996_v20 = vld [vmem:[#allocation2 + $0x20] ss:$100 sps:$4 sm:$0xff]   ;;  %v2002_v24 = vld [vmem:[#allocation2 + $0xe8] ss:$100 sps:$4 sm:$0xff]   ;;  %v2005_v25 = vld [vmem:[#allocation2 + $0xf0] ss:$100 sps:$4 sm:$0xff]  }
  0x1b   :  { %v2010_v26 = vld [vmem:[#allocation2 + $0x34] ss:$100 sps:$4 sm:$0xff]   ;;  %v2013_v27 = vld [vmem:[#allocation2 + $0x3c] ss:$100 sps:$4 sm:$0xff]   ;;  %v2019_v31 = vld [vmem:[#allocation2 + $0x104] ss:$100 sps:$4 sm:$0xff]  }
  0x1c   :  { %1929 = vmatmul.mubr.msk.bf16.vlgmr.msra.gmra.mrb[0].mxu0 %vm467_vm0, %v2214_v9  ;;  %1930 = vmatmul.mubr.msk.bf16.vlgmr.msra.gmra.mrb[0].mxu1 %vm467_vm0, %v2214_v9  ;;  %v2008_v28 = vld [vmem:[#allocation2 + $0x30] ss:$100 sps:$4 sm:$0xff]   ;;  %v2011_v29 = vld [vmem:[#allocation2 + $0x38] ss:$100 sps:$4 sm:$0xff]   ;;  %v2017_v33 = vld [vmem:[#allocation2 + $0x100] ss:$100 sps:$4 sm:$0xff]  }
  0x1d   :  { %554 = vmatpush1.bf16.msra.mxu0 %v1984_v10  ;;  %595 = vmatpush1.bf16.msra.mxu1 %v1987_v12  ;;  %v2016_v30 = vld [vmem:[#allocation2 + $0xfc] ss:$100 sps:$4 sm:$0xff]   ;;  %v2022_v34 = vld [vmem:[#allocation2 + $0x44] ss:$100 sps:$4 sm:$0xff]   ;;  %v2025_v35 = vld [vmem:[#allocation2 + $0x4c] ss:$100 sps:$4 sm:$0xff]  }
  0x1e   :  { %555 = vmatprep.subr.bf16.mxu0 %v1992_v14  ;;  %596 = vmatprep.subr.bf16.mxu1 %v1995_v15  ;;  %v2014_v32 = vld [vmem:[#allocation2 + $0xf8] ss:$100 sps:$4 sm:$0xff]   ;;  %v2020_v36 = vld [vmem:[#allocation2 + $0x40] ss:$100 sps:$4 sm:$0xff]   ;;  %v2023_v37 = vld [vmem:[#allocation2 + $0x48] ss:$100 sps:$4 sm:$0xff]  }
  0x1f   :  { %585 = vmatprep.mubr.bf16.mxu0 %v2173_v0  ;;  %626 = vmatprep.mubr.bf16.mxu1 %v2173_v0  ;;  %v2028_v38 = vld [vmem:[#allocation2 + $0x10c] ss:$100 sps:$4 sm:$0xff]   ;;  %v2031_v39 = vld [vmem:[#allocation2 + $0x114] ss:$100 sps:$4 sm:$0xff]   ;;  %v2037_v43 = vld [vmem:[#allocation2 + $0x5c] ss:$100 sps:$4 sm:$0xff]  }
  0x20   :  { %v2026_v40 = vld [vmem:[#allocation2 + $0x108] ss:$100 sps:$4 sm:$0xff]   ;;  %v2029_v41 = vld [vmem:[#allocation2 + $0x110] ss:$100 sps:$4 sm:$0xff]   ;;  %v2035_v45 = vld [vmem:[#allocation2 + $0x58] ss:$100 sps:$4 sm:$0xff]  }
  0x21   :  { %556 = vmatpush1.bf16.msra.mxu0 %v1990_v16  ;;  %597 = vmatpush1.bf16.msra.mxu1 %v1993_v17  ;;  %v2034_v42 = vld [vmem:[#allocation2 + $0x54] ss:$100 sps:$4 sm:$0xff]   ;;  %v2040_v46 = vld [vmem:[#allocation2 + $0x11c] ss:$100 sps:$4 sm:$0xff]   ;;  %v2043_v47 = vld [vmem:[#allocation2 + $0x124] ss:$100 sps:$4 sm:$0xff]  }
  0x22   :  { %635 = vmatprep.subr.bf16.mxu0 %v1998_v18  ;;  %676 = vmatprep.subr.bf16.mxu1 %v2001_v19  ;;  %v2032_v44 = vld [vmem:[#allocation2 + $0x50] ss:$100 sps:$4 sm:$0xff]   ;;  %v2038_v48 = vld [vmem:[#allocation2 + $0x118] ss:$100 sps:$4 sm:$0xff]   ;;  %v2041_v49 = vld [vmem:[#allocation2 + $0x120] ss:$100 sps:$4 sm:$0xff]  }
  0x23   :  { %v2044_v50 = vld [vmem:[#allocation2 + $0x60] ss:$100 sps:$4 sm:$0xff]   ;;  %v2174_v51 = vmov 0.0   ;;  %v2045_v52 = vld [vmem:[#allocation2 + $0x128] ss:$100 sps:$4 sm:$0xff]   ;;  %vm2175_vm1 = vmmov 0  }
  0x24   :  { %1931 = vmatmul.mubr.msk.bf16.vlgmr.msra.gmra.mrb[4].mxu0 %vm467_vm0, %v2214_v9  ;;  %1932 = vmatmul.mubr.msk.bf16.vlgmr.msra.gmra.mrb[4].mxu1 %vm467_vm0, %v2214_v9  ;;  %v2252_v54 = vshrl.u32 %v90_v53, 7  ;;  %v2263_v57 = vld [vmem:[%s2943_s2] sm:$0xff] }
  0x25   :  { %636 = vmatpush1.bf16.msra.mxu0 %v1996_v20  ;;  %677 = vmatpush1.bf16.msra.mxu1 %v1999_v21 }
  0x26   :  { %637 = vmatprep.subr.bf16.mxu0 %v2004_v22  ;;  %678 = vmatprep.subr.bf16.mxu1 %v2007_v23  ;;  %v2255_v55 = vsub.s32 0, %v2252_v54  ;;  %v2258_v56 = vsub.s32 2, %v2252_v54  ;;  %v2266_v58 = vsub.s32 1, %v2252_v54  ;;  %v2269_v59 = vsub.s32 3, %v2252_v54 }
  0x27   :  { %667 = vmatprep.mubr.bf16.mxu0 %v2173_v0  ;;  %708 = vmatprep.mubr.bf16.mxu1 %v2173_v0  ;;  %v2280_v6 = vsub.s32 4, %v2252_v54  ;;  %v2287_v11 = vsub.s32 6, %v2252_v54  ;;  %v2300_v16 = vsub.s32 5, %v2252_v54  ;;  %v2303_v17 = vsub.s32 7, %v2252_v54 }
  0x28   :  { %v93_v60 = vrot.slane %v2263_v57, %v2255_v55  ;;  %v101_v61 = vrot.slane %v2263_v57, %v2258_v56  ;;  %v97_v62 = vrot.slane %v2263_v57, %v2266_v58  ;;  %v105_v63 = vrot.slane %v2263_v57, %v2269_v59 }
  0x29   :  { %638 = vmatpush1.bf16.msra.mxu0 %v2002_v24  ;;  %679 = vmatpush1.bf16.msra.mxu1 %v2005_v25  ;;  %v109_v20 = vrot.slane %v2263_v57, %v2280_v6  ;;  %v2176_v22 = vmov 1966171168   ;;  %v117_v25 = vrot.slane %v2263_v57, %v2287_v11 }
  0x2a   :  { %717 = vmatprep.subr.bf16.mxu0 %v2010_v26  ;;  %758 = vmatprep.subr.bf16.mxu1 %v2013_v27  ;;  %v1708_v23 = vunpack.c.l.s4 %v2176_v22  ;;  %v2316_v26 = vld [vmem:[%s2943_s2 + $0x8] sm:$0xff] }
  0x2c   :  { %1933 = vmatmul.mubr.msk.bf16.vlgmr.msra.gmra.mrb[8].mxu0 %vm467_vm0, %v2214_v9  ;;  %1934 = vmatmul.mubr.msk.bf16.vlgmr.msra.gmra.mrb[8].mxu1 %vm467_vm0, %v2214_v9 }
  0x2d   :  { %718 = vmatpush1.bf16.msra.mxu0 %v2008_v28  ;;  %759 = vmatpush1.bf16.msra.mxu1 %v2011_v29 }
  0x2e   :  { %719 = vmatprep.subr.bf16.mxu0 %v2016_v30  ;;  %760 = vmatprep.subr.bf16.mxu1 %v2019_v31 }
  0x2f   :  { %749 = vmatprep.mubr.bf16.mxu0 %v2173_v0  ;;  %790 = vmatprep.mubr.bf16.mxu1 %v2173_v0 }
  0x31   :  { %720 = vmatpush1.bf16.msra.mxu0 %v2014_v32  ;;  %761 = vmatpush1.bf16.msra.mxu1 %v2017_v33  ;;  %v113_v33 = vrot.slane %v2263_v57, %v2300_v16 }
  0x32   :  { %799 = vmatprep.subr.bf16.mxu0 %v2022_v34  ;;  %840 = vmatprep.subr.bf16.mxu1 %v2025_v35  ;;  %v121_v34 = vrot.slane %v2263_v57, %v2303_v17 }
  0x34   :  { %1935 = vmatmul.mubr.msk.bf16.vlgmr.msra.gmra.mrb[12].mxu0 %vm467_vm0, %v2214_v9  ;;  %1936 = vmatmul.mubr.msk.bf16.vlgmr.msra.gmra.mrb[12].mxu1 %vm467_vm0, %v2214_v9 }
  0x35   :  { %800 = vmatpush1.bf16.msra.mxu0 %v2020_v36  ;;  %841 = vmatpush1.bf16.msra.mxu1 %v2023_v37 }
  0x36   :  { %801 = vmatprep.subr.bf16.mxu0 %v2028_v38  ;;  %842 = vmatprep.subr.bf16.mxu1 %v2031_v39 }
  0x37   :  { %831 = vmatprep.mubr.bf16.mxu0 %v2173_v0  ;;  %872 = vmatprep.mubr.bf16.mxu1 %v2173_v0 }
  0x39   :  { %802 = vmatpush1.bf16.msra.mxu0 %v2026_v40  ;;  %843 = vmatpush1.bf16.msra.mxu1 %v2029_v41  ;;  %v125_v40 = vrot.slane %v2316_v26, %v2255_v55 }
  0x3a   :  { %881 = vmatprep.subr.bf16.mxu0 %v2034_v42  ;;  %922 = vmatprep.subr.bf16.mxu1 %v2037_v43  ;;  %v1709_v43 = vunpack.c.0.s8 %v1708_v23 }
  0x3c   :  { %1937 = vmatmul.mubr.msk.bf16.vlgmr.msra.gmra.mrb[16].mxu0 %vm467_vm0, %v2214_v9  ;;  %1938 = vmatmul.mubr.msk.bf16.vlgmr.msra.gmra.mrb[16].mxu1 %vm467_vm0, %v2214_v9  ;;  %v2351_v22 = vsub.s32 %v1709_v43, %v2252_v54 }
  0x3d   :  { %882 = vmatpush1.bf16.msra.mxu0 %v2032_v44  ;;  %923 = vmatpush1.bf16.msra.mxu1 %v2035_v45 }
  0x3e   :  { %883 = vmatprep.subr.bf16.mxu0 %v2040_v46  ;;  %924 = vmatprep.subr.bf16.mxu1 %v2043_v47  ;;  %v133_v46 = vrot.slane %v2316_v26, %v2258_v56 }
  0x3f   :  { %913 = vmatprep.mubr.bf16.mxu0 %v2173_v0  ;;  %954 = vmatprep.mubr.bf16.mxu1 %v2173_v0 }
  0x41   :  { %884 = vmatpush1.bf16.msra.mxu0 %v2038_v48  ;;  %925 = vmatpush1.bf16.msra.mxu1 %v2041_v49 }
  0x42   :  { %1957 = vmatprep.subr.bf16.mxu0 %v2174_v51 }
  0x44   :  { %1939 = vmatmul.mubr.msk.bf16.vlgmr.msra.gmra.mrb[20].mxu0 %vm467_vm0, %v2214_v9  ;;  %1940 = vmatmul.mubr.msk.bf16.vlgmr.msra.gmra.mrb[20].mxu1 %vm467_vm0, %v2214_v9 }
  0x45   :  { %1958 = vmatpush3.bf16.msra.mxu0 %v2044_v50  ;;  %1961 = vmatprep.mubr.msk.bf16.mxu0 %vm2175_vm1, %v2174_v51 }
  0x46   :  { %1959 = vmatprep.subr.bf16.mxu0 %v2174_v51 }
  0x49   :  { %1960 = vmatpush3.bf16.msra.mxu0 %v2045_v52 }
  0x4c   :  { %1962 = vmatmul.mubr.msk.bf16.vlgmr.msra.gmra.mrb[24].mxu0 %vm467_vm0, %v2214_v9 }
  0xef   :  { %v505_v0 = vpop.f32.mrb[0].mxu0  ;;  %v546_v1 = vpop.f32.mrb[0].mxu1 }
  0xf0   :  { %v506_v2 = vadd.f32 %v505_v0, %v93_v60  ;;  %v547_v3 = vadd.f32 %v546_v1, %v101_v61  ;;  %v507_v4 = vpop.f32.mrb[1].mxu0  ;;  %v548_v5 = vpop.f32.mrb[1].mxu1 }
  0xf1   :  { %v2282_v7 = vadd.f32 %v507_v4, %v97_v62  ;;  %v2284_v8 = vadd.f32 %v548_v5, %v105_v63  ;;  %v509_v9 = vpop.f32.mrb[2].mxu0  ;;  %v550_v10 = vpop.f32.mrb[2].mxu1 }
  0xf2   :  { %v2289_v12 = vmul.f32 0.70710677, %v506_v2  ;;  %v2291_v13 = vmul.f32 0.70710677, %v547_v3  ;;  %v510_v38 = vpop.f32.mrb[3].mxu0  ;;  %v551_v39 = vpop.f32.mrb[3].mxu1 }
  0xf3   :  { %v2294_v14 = vmul.f32 0.70710677, %v2282_v7  ;;  %v2297_v15 = vmul.f32 0.70710677, %v2284_v8  ;;  %v2328_v52 = vmul.f32 0.5, %v506_v2  ;;  %v2330_v53 = vmul.f32 0.5, %v547_v3 }
  0xf4   :  { %v1053_v18 = vand.u32 2147483647, %v2289_v12  ;;  %v1055_v19 = vand.u32 2147483647, %v2291_v13  ;;  %vm1528_vm2 = vcmp.ge.f32.partialorder %v2289_v12, 0.0  ;;  %vm1530_vm3 = vcmp.ge.f32.partialorder %v2291_v13, 0.0 }
  0xf5   :  { %v1054_v21 = vand.u32 2147483647, %v2294_v14  ;;  %v1056_v24 = vand.u32 2147483647, %v2297_v15  ;;  %vm1529_vm4 = vcmp.ge.f32.partialorder %v2294_v14, 0.0  ;;  %vm1531_vm5 = vcmp.ge.f32.partialorder %v2297_v15, 0.0 }
  0xf6   :  { %v1078_v27 = vmul.f32 0.3275911, %v1053_v18  ;;  %v1378_v28 = vsub.f32 0.0, %v1053_v18  ;;  %v1080_v29 = vmul.f32 0.3275911, %v1055_v19  ;;  %v1380_v30 = vsub.f32 0.0, %v1055_v19 }
  0xf7   :  { %v1079_v31 = vmul.f32 0.3275911, %v1054_v21  ;;  %v1379_v32 = vsub.f32 0.0, %v1054_v21  ;;  %v1081_v37 = vmul.f32 0.3275911, %v1056_v24  ;;  %v587_v44 = vpop.f32.mrb[4].mxu0 }
  0xf8   :  { %v1103_v35 = vadd.f32 1.0, %v1078_v27  ;;  %v1105_v36 = vadd.f32 1.0, %v1080_v29  ;;  %v1403_v41 = vmul.f32 %v1378_v28, %v1053_v18  ;;  %v1405_v42 = vmul.f32 %v1380_v30, %v1055_v19  ;;  %v628_v45 = vpop.f32.mrb[4].mxu1  ;;  %v589_v50 = vpop.f32.mrb[5].mxu0 }
  0xf9   :  { %v1104_v47 = vadd.f32 1.0, %v1079_v31  ;;  %v1404_v48 = vmul.f32 %v1379_v32, %v1054_v21  ;;  %v2326_v49 = vadd.f32 %v587_v44, %v109_v20  ;;  %v630_v51 = vpop.f32.mrb[5].mxu1  ;;  %v2332_v57 = vadd.f32 %v628_v45, %v117_v25  ;;  %v591_v60 = vpop.f32.mrb[6].mxu0 }
  0xfa   :  { %2046 = vrcp.f32 %v1103_v35  ;;  %v632_v61 = vpop.f32.mrb[6].mxu1  ;;  %v1106_v62 = vadd.f32 1.0, %v1081_v37  ;;  %v1381_v63 = vsub.f32 0.0, %v1056_v24  ;;  %v2337_v1 = vadd.f32 %v589_v50, %v113_v33  ;;  %v592_v4 = vpop.f32.mrb[7].mxu0 }
  0xfb   :  { %2048 = vrcp.f32 %v1105_v36  ;;  %v2335_v0 = vmul.f32 0.70710677, %v2326_v49  ;;  %v633_v5 = vpop.f32.mrb[7].mxu1  ;;  %v1428_v9 = vmul.f32 1.442695, %v1403_v41  ;;  %v2345_v20 = vadd.f32 %v630_v51, %v121_v34 }
  0xfc   :  { %v1432_v10 = vmul.f32 1.442695, %v1405_v42  ;;  %v2340_v2 = vmul.f32 0.70710677, %v2332_v57  ;;  %2050 = vrcp.f32 %v1104_v47  ;;  %v1430_v18 = vmul.f32 1.442695, %v1404_v48 }
  0xfd   :  { %v1057_v19 = vand.u32 2147483647, %v2335_v0  ;;  %v2348_v21 = vmul.f32 0.5, %v2282_v7  ;;  %v2355_v25 = vmul.f32 0.70710677, %v2337_v1  ;;  %2052 = vrcp.f32 %v1106_v62 }
  0xfe   :  { %v1059_v23 = vand.u32 2147483647, %v2340_v2  ;;  %v1406_v28 = vmul.f32 %v1381_v63, %v1056_v24  ;;  %v2367_v36 = vmul.f32 0.5, %v2284_v8  ;;  %v2370_v24 = vmul.f32 0.70710677, %v2345_v20 }
  0xff   :  { %v669_v27 = vpop.f32.mrb[8].mxu0  ;;  %v1082_v29 = vmul.f32 0.3275911, %v1057_v19  ;;  %v1382_v30 = vsub.f32 0.0, %v1057_v19  ;;  %v2357_v31 = vpop.f32.mrb[8].mxu1  ;;  %2054 = vpow2.f32 %v1428_v9  ;;  %vm1532_vm6 = vcmp.ge.f32.partialorder %v2335_v0, 0.0 }
 0x100   :  { %v2359_v32 = vpop.f32.mrb[9].mxu0  ;;  %v1084_v33 = vmul.f32 0.3275911, %v1059_v23  ;;  %v1384_v7 = vsub.f32 0.0, %v1059_v23  ;;  %v1058_v34 = vand.u32 2147483647, %v2355_v25 }
 0x101   :  { %v2364_v35 = vpop.f32.mrb[9].mxu1  ;;  %v1107_v37 = vadd.f32 1.0, %v1082_v29  ;;  %v673_v38 = vpop.f32.mrb[10].mxu0  ;;  %v1434_v50 = vmul.f32 1.442695, %v1406_v28  ;;  %v1407_v8 = vmul.f32 %v1382_v30, %v1057_v19  ;;  %v2384_v19 = vadd.f32 %v669_v27, %v125_v40 }
 0x102   :  { %v714_v39 = vpop.f32.mrb[10].mxu1  ;;  %v1109_v42 = vadd.f32 1.0, %v1084_v33  ;;  %v1083_v43 = vmul.f32 0.3275911, %v1058_v34  ;;  %v1383_v44 = vsub.f32 0.0, %v1058_v34  ;;  %v674_v45 = vpop.f32.mrb[11].mxu0  ;;  %v1409_v62 = vmul.f32 %v1384_v7, %v1059_v23 }
 0x103   :  { %v715_v47 = vpop.f32.mrb[11].mxu1  ;;  %2056 = vrcp.f32 %v1107_v37  ;;  %v1060_v51 = vand.u32 2147483647, %v2370_v24  ;;  %2948 = vst [vmem:[#allocation5_spill] sm:$0xff] %v2384_v19  ;;  %v1436_v7 = vmul.f32 1.442695, %v1407_v8 }
 0x104   :  { %v2374_v48 = vpop.eup %2046  ;;  %2058 = vrcp.f32 %v1109_v42  ;;  %v1108_v63 = vadd.f32 1.0, %v1083_v43  ;;  %v1408_v5 = vmul.f32 %v1383_v44, %v1058_v34  ;;  %v1440_v39 = vmul.f32 1.442695, %v1409_v62 }
 0x105   :  { %v2377_v60 = vpop.eup %2048  ;;  %v1153_v61 = vmul.f32 1.0614054, %v2374_v48  ;;  %2060 = vpow2.f32 %v1432_v10  ;;  %v1085_v9 = vmul.f32 0.3275911, %v1060_v51  ;;  %v1385_v33 = vsub.f32 0.0, %v1060_v51 }
 0x106   :  { %v1155_v4 = vmul.f32 1.0614054, %v2377_v60  ;;  %2062 = vpow2.f32 %v1430_v18  ;;  %v2390_v37 = vpop.eup %2050  ;;  %v1438_v44 = vmul.f32 1.442695, %v1408_v5  ;;  %v2402_v47 = vmul.f32 0.70710677, %v2384_v19 }
 0x107   :  { %v1178_v29 = vadd.f32 -1.4531521, %v1153_v61  ;;  %v2386_v28 = vpop.f32.mrb[12].mxu0  ;;  %v2388_v30 = vpop.f32.mrb[12].mxu1  ;;  %2064 = vrcp.f32 %v1108_v63  ;;  %v1110_v10 = vadd.f32 1.0, %v1085_v9  ;;  %v1410_v45 = vmul.f32 %v1385_v33, %v1060_v51 }
 0x108   :  { %2949 = vst [vmem:[#allocation6_spill] sm:$0xff] %v2388_v30  ;;  %v1180_v23 = vadd.f32 -1.4531521, %v1155_v4  ;;  %v2392_v34 = vpop.f32.mrb[13].mxu0  ;;  %v1154_v38 = vmul.f32 1.0614054, %v2390_v37  ;;  %2066 = vpow2.f32 %v1434_v50  ;;  %v2398_v42 = vpop.eup %2052 }
 0x109   :  { %2950 = vst [vmem:[#allocation7_spill] sm:$0xff] %v2392_v34  ;;  %v1203_v18 = vmul.f32 %v2374_v48, %v1178_v29  ;;  %v2396_v40 = vpop.f32.mrb[13].mxu1  ;;  %v755_v27 = vpop.f32.mrb[14].mxu0  ;;  %2952 = vst [vmem:[#allocation9_spill] sm:$0xff] %v2402_v47  ;;  %v1156_v9 = vmul.f32 1.0614054, %v2398_v42  ;;  %2068 = vrcp.f32 %v1110_v10 }
 0x10a   :  { %2951 = vst [vmem:[#allocation8_spill] sm:$0xff] %v2396_v40  ;;  %v1205_v43 = vmul.f32 %v2377_v60, %v1180_v23  ;;  %v756_v8 = vpop.f32.mrb[15].mxu0  ;;  %v796_v61 = vpop.f32.mrb[14].mxu1  ;;  %v1179_v4 = vadd.f32 -1.4531521, %v1154_v38  ;;  %v2406_v62 = vmul.f32 0.5, %v2326_v49  ;;  %2070 = vpow2.f32 %v1436_v7 }
 0x10b   :  { %v1228_v63 = vadd.f32 1.4214138, %v1203_v18  ;;  %v2409_v29 = vand.u32 2147483647, %v2402_v47  ;;  %v2055_v5 = vpop.eup %2054  ;;  %v1181_v23 = vadd.f32 -1.4531521, %v1156_v9  ;;  %2072 = vpow2.f32 %v1440_v39 }
 0x10c   :  { %v1230_v50 = vadd.f32 1.4214138, %v1205_v43  ;;  %v1204_v33 = vmul.f32 %v2390_v37, %v1179_v4  ;;  %v797_v18 = vpop.f32.mrb[15].mxu1  ;;  %2074 = vpow2.f32 %v1438_v44  ;;  %v1442_v27 = vmul.f32 1.442695, %v1410_v45 }
 0x10d   :  { %v1253_v51 = vmul.f32 %v2374_v48, %v1228_v63  ;;  %v2413_v38 = vpop.eup %2056  ;;  %v1086_v49 = vmul.f32 0.3275911, %v2409_v29  ;;  %v1206_v61 = vmul.f32 %v2398_v42, %v1181_v23  ;;  %v2426_v44 = vadd.f32 %v2357_v31, %v133_v46 }
 0x10e   :  { %v1255_v10 = vmul.f32 %v2377_v60, %v1230_v50  ;;  %v2417_v7 = vpop.eup %2058  ;;  %v1229_v8 = vadd.f32 1.4214138, %v1204_v33  ;;  %v1157_v63 = vmul.f32 1.0614054, %v2413_v38  ;;  %2076 = vpow2.f32 %v1442_v27 }
 0x10f   :  { %v1278_v43 = vadd.f32 -0.28449672, %v1253_v51  ;;  %v2061_v4 = vpop.eup %2060  ;;  %v1159_v39 = vmul.f32 1.0614054, %v2417_v7  ;;  %v1111_v18 = vadd.f32 1.0, %v1086_v49  ;;  %v2428_v45 = vpop.f32.mrb[16].mxu0 }
 0x110   :  { %v1280_v9 = vadd.f32 -0.28449672, %v1255_v10  ;;  %2953 = vst [vmem:[#allocation10_spill] sm:$0xff] %v2428_v45  ;;  %v2430_v50 = vpop.eup %2062  ;;  %v1254_v33 = vmul.f32 %v2390_v37, %v1229_v8  ;;  %v1231_v23 = vadd.f32 1.4214138, %v1206_v61  ;;  %v2434_v10 = vpop.f32.mrb[16].mxu1 }
 0x111   :  { %v1303_v51 = vmul.f32 %v2374_v48, %v1278_v43  ;;  %v1182_v41 = vadd.f32 -1.4531521, %v1157_v63  ;;  %2954 = vst [vmem:[#allocation11_spill] sm:$0xff] %v2434_v10  ;;  %v2436_v54 = vpop.f32.mrb[17].mxu0  ;;  %v2438_v49 = vpop.eup %2064  ;;  %v1184_v46 = vadd.f32 -1.4531521, %v1159_v39  ;;  %2078 = vrcp.f32 %v1111_v18 }
 0x112   :  { %2955 = vst [vmem:[#allocation12_spill] sm:$0xff] %v2436_v54  ;;  %v1305_v3 = vmul.f32 %v2377_v60, %v1280_v9  ;;  %v2442_v45 = vpop.f32.mrb[17].mxu1  ;;  %v837_v40 = vpop.f32.mrb[18].mxu0  ;;  %v1279_v61 = vadd.f32 -0.28449672, %v1254_v33  ;;  %v1256_v63 = vmul.f32 %v2398_v42, %v1231_v23  ;;  %v2961_v13 = vsub.f32 0.0, %v2409_v29 }
 0x113   :  { %2956 = vst [vmem:[#allocation13_spill] sm:$0xff] %v2442_v45  ;;  %v2444_v43 = vpop.eup %2066  ;;  %v1328_v8 = vadd.f32 0.2548296, %v1303_v51  ;;  %v1207_v10 = vmul.f32 %v2413_v38, %v1182_v41  ;;  %v838_v54 = vpop.f32.mrb[19].mxu0  ;;  %v1209_v27 = vmul.f32 %v2417_v7, %v1184_v46  ;;  %v1158_v39 = vmul.f32 1.0614054, %v2438_v49 }
 0x114   :  { %v878_v34 = vpop.f32.mrb[18].mxu1  ;;  %v1330_v9 = vadd.f32 0.2548296, %v1305_v3  ;;  %v2451_v40 = vpop.eup %2068  ;;  %v1304_v33 = vmul.f32 %v2390_v37, %v1279_v61  ;;  %v1281_v41 = vadd.f32 -0.28449672, %v1256_v63  ;;  %vm1534_vm7 = vcmp.ge.f32.partialorder %v2340_v2, 0.0 }
 0x115   :  { %v879_v31 = vpop.f32.mrb[19].mxu1  ;;  %v1353_v51 = vmul.f32 %v2374_v48, %v1328_v8  ;;  %v1232_v54 = vadd.f32 1.4214138, %v1207_v10  ;;  %v2456_v34 = vpop.eup %2070  ;;  %v1234_v23 = vadd.f32 1.4214138, %v1209_v27  ;;  %vm1533_vm8 = vcmp.ge.f32.partialorder %v2355_v25, 0.0 }
 0x116   :  { %v1355_v3 = vmul.f32 %v2377_v60, %v1330_v9  ;;  %v1183_v46 = vadd.f32 -1.4531521, %v1158_v39  ;;  %v1160_v45 = vmul.f32 1.0614054, %v2451_v40  ;;  %v2460_v18 = vpop.eup %2072  ;;  %v1329_v47 = vadd.f32 0.2548296, %v1304_v33 }
 0x117   :  { %v1478_v31 = vmul.f32 %v2055_v5, %v1353_v51  ;;  %v1306_v48 = vmul.f32 %v2398_v42, %v1281_v41  ;;  %v1257_v8 = vmul.f32 %v2413_v38, %v1232_v54  ;;  %v2464_v19 = vpop.f32.mrb[20].mxu0  ;;  %v2466_v61 = vpop.f32.mrb[20].mxu1  ;;  %v1259_v60 = vmul.f32 %v2417_v7, %v1234_v23 }
 0x118   :  { %2957 = vst [vmem:[#allocation14_spill] sm:$0xff] %v2464_v19  ;;  %2958 = vst [vmem:[#allocation15_spill] sm:$0xff] %v2466_v61  ;;  %v2468_v10 = vpop.eup %2074  ;;  %v1480_v63 = vmul.f32 %v2061_v4, %v1355_v3  ;;  %v1208_v9 = vmul.f32 %v2438_v49, %v1183_v46  ;;  %v1185_v27 = vadd.f32 -1.4531521, %v1160_v45  ;;  %v2473_v5 = vpop.f32.mrb[21].mxu0  ;;  %v1354_v33 = vmul.f32 %v2390_v37, %v1329_v47 }
 0x119   :  { %2959 = vst [vmem:[#allocation16_spill] sm:$0xff] %v2473_v5  ;;  %v2475_v39 = vpop.f32.mrb[21].mxu1  ;;  %v1503_v51 = vsub.f32 1.0, %v1478_v31  ;;  %v1331_v41 = vadd.f32 0.2548296, %v1306_v48  ;;  %v919_v61 = vpop.f32.mrb[22].mxu0 }
 0x11a   :  { %2960 = vst [vmem:[#allocation17_spill] sm:$0xff] %v2475_v39  ;;  %v1282_v54 = vadd.f32 -0.28449672, %v1257_v8  ;;  %v1505_v19 = vsub.f32 1.0, %v1480_v63  ;;  %v1284_v4 = vadd.f32 -0.28449672, %v1259_v60  ;;  %v1210_v23 = vmul.f32 %v2451_v40, %v1185_v27  ;;  %v2483_v37 = vpop.eup %2076 }
 0x11b   :  { %v1233_v3 = vadd.f32 1.4214138, %v1208_v9  ;;  %v920_v30 = vpop.f32.mrb[23].mxu0  ;;  %v1553_v46 = vsub.f32 0.0, %v1503_v51  ;;  %v1479_v45 = vmul.f32 %v2430_v50, %v1354_v33  ;;  %v1356_v5 = vmul.f32 %v2398_v42, %v1331_v41  ;;  %v960_v39 = vpop.f32.mrb[22].mxu1 }
 0x11c   :  { %v1307_v31 = vmul.f32 %v2413_v38, %v1282_v54  ;;  %v1555_v47 = vsub.f32 0.0, %v1505_v19  ;;  %v1309_v48 = vmul.f32 %v2417_v7, %v1284_v4  ;;  %v1235_v61 = vadd.f32 1.4214138, %v1210_v23  ;;  %v961_v63 = vpop.f32.mrb[23].mxu1  ;;  %v2490_v42 = vpop.eup %2078 }
 0x11d   :  { %v1258_v8 = vmul.f32 %v2438_v49, %v1233_v3  ;;  %v1578_v30 = vsel %vm1528_vm2, %v1503_v51, %v1553_v46  ;;  %v1504_v60 = vsub.f32 1.0, %v1479_v45  ;;  %v1481_v50 = vmul.f32 %v2444_v43, %v1356_v5 }
 0x11e   :  { %v1332_v9 = vadd.f32 0.2548296, %v1307_v31  ;;  %v1603_v27 = vadd.f32 1.0, %v1578_v30  ;;  %v1580_v39 = vsel %vm1530_vm3, %v1505_v19, %v1555_v47  ;;  %v1334_v33 = vadd.f32 0.2548296, %v1309_v48 }
 0x11f   :  { %v1283_v41 = vadd.f32 -0.28449672, %v1258_v8  ;;  %v1605_v54 = vadd.f32 1.0, %v1580_v39  ;;  %v1554_v4 = vsub.f32 0.0, %v1504_v60  ;;  %v1506_v3 = vsub.f32 1.0, %v1481_v50  ;;  %v2496_v51 = vpop.f32.mrb[24].mxu0 }
 0x120   :  { %v1357_v12 = vmul.f32 %v2413_v38, %v1332_v9  ;;  %v1359_v43 = vmul.f32 %v2417_v7, %v1334_v33  ;;  %v1260_v23 = vmul.f32 %v2451_v40, %v1235_v61  ;;  %v1411_v19 = vmul.f32 %v2961_v13, %v2409_v29  ;;  %v1963_v46 = vpop.f32.mrb[25].mxu0 }
 0x121   :  { %v1308_v5 = vmul.f32 %v2438_v49, %v1283_v41  ;;  %v1628_v45 = vmul.f32 %v1603_v27, %v2328_v52  ;;  %v1579_v31 = vsel %vm1529_vm4, %v1504_v60, %v1554_v4  ;;  %v1556_v47 = vsub.f32 0.0, %v1506_v3  ;;  %v1000_v48 = vpop.f32.mrb[26].mxu0 }
 0x122   :  { %v1482_v38 = vmul.f32 %v2456_v34, %v1357_v12  ;;  %v1604_v8 = vadd.f32 1.0, %v1579_v31  ;;  %v1484_v7 = vmul.f32 %v2460_v18, %v1359_v43  ;;  %v1285_v30 = vadd.f32 -0.28449672, %v1260_v23  ;;  %v1964_v61 = vpop.f32.mrb[27].mxu0 }
 0x123   :  { %v1333_v63 = vadd.f32 0.2548296, %v1308_v5  ;;  %v1630_v50 = vmul.f32 %v1605_v54, %v2330_v53  ;;  %v1581_v29 = vsel %vm1531_vm5, %v1506_v3, %v1556_v47  ;;  %v1161_v52 = vmul.f32 1.0614054, %v2490_v42 }
 0x124   :  { %v1507_v9 = vsub.f32 1.0, %v1482_v38  ;;  %v1629_v14 = vmul.f32 %v1604_v8, %v2348_v21  ;;  %v1606_v60 = vadd.f32 1.0, %v1581_v29  ;;  %v1509_v27 = vsub.f32 1.0, %v1484_v7 }
 0x125   :  { %v1358_v34 = vmul.f32 %v2438_v49, %v1333_v63  ;;  %v1310_v18 = vmul.f32 %v2451_v40, %v1285_v30  ;;  %v1186_v33 = vadd.f32 -1.4531521, %v1161_v52  ;;  %v2517_v41 = vmul.f32 0.70710677, %v2426_v44 }
 0x126   :  { %v1557_v39 = vsub.f32 0.0, %v1507_v9  ;;  %v1942_v53 = vpack.c.bf16 %v1629_v14, %v1628_v45  ;;  %v1631_v15 = vmul.f32 %v1606_v60, %v2367_v36  ;;  %v1559_v54 = vsub.f32 0.0, %v1509_v27 }
 0x127   :  { %v1483_v4 = vmul.f32 %v2468_v10, %v1358_v34  ;;  %v1335_v3 = vadd.f32 0.2548296, %v1310_v18  ;;  %v1211_v12 = vmul.f32 %v2490_v42, %v1186_v33  ;;  %v1063_v49 = vand.u32 2147483647, %v2517_v41 }
 0x128   :  { %v1582_v21 = vsel %vm1532_vm6, %v1507_v9, %v1557_v39  ;;  %v2526_v43 = vrot.slane %v1942_v53, %v2351_v22  ;;  %v1943_v5 = vpack.c.bf16 %v1631_v15, %v1630_v50  ;;  %v1009_v23 = vmul.f32 0.5, %v2332_v57 }
 0x129   :  { %v1508_v36 = vsub.f32 1.0, %v1483_v4  ;;  %v1360_v13 = vmul.f32 %v2451_v40, %v1335_v3  ;;  %v1236_v10 = vadd.f32 1.4214138, %v1211_v12  ;;  %v1444_v46 = vmul.f32 1.442695, %v1411_v19 }
 0x12a   :  { %v2532_v0 = vrot.slane %v1943_v5, %v2351_v22  ;;  %v1607_v45 = vadd.f32 1.0, %v1582_v21  ;;  %v1088_v31 = vmul.f32 0.3275911, %v1063_v49  ;;  %v2962_v47 = vrot.slane %v2316_v26, %v2266_v58 }
 0x12b   :  { %v1584_v48 = vsel %vm1534_vm7, %v1509_v27, %v1559_v54  ;;  %v1558_v57 = vsub.f32 0.0, %v1508_v36  ;;  %v1485_v2 = vmul.f32 %v2483_v37, %v1360_v13  ;;  %v1261_v8 = vmul.f32 %v2490_v42, %v1236_v10 }
 0x12c   :  { %v2538_v38 = vadd.f32 %v2359_v32, %v2962_v47  ;;  %v1735_v40 = vcombine.low %v2526_v43, %v2532_v0  ;;  %v1008_v19 = vmul.f32 0.5, %v2337_v1  ;;  %v1113_v7 = vadd.f32 1.0, %v1088_v31 }
 0x12d   :  { %v1583_v63 = vsel %vm1533_vm8, %v1508_v36, %v1558_v57  ;;  %v1510_v30 = vsub.f32 1.0, %v1485_v2  ;;  %v1286_v61 = vadd.f32 -0.28449672, %v1261_v8  ;;  %2080 = vpow2.f32 %v1444_v46 }
 0x12e   :  { %v1632_v32 = vmul.f32 %v1607_v45, %v2406_v62  ;;  %v1609_v50 = vadd.f32 1.0, %v1584_v48  ;;  %v1608_v29 = vadd.f32 1.0, %v1583_v63  ;;  %2082 = vrcp.f32 %v1113_v7 }
 0x12f   :  { %v1560_v37 = vsub.f32 0.0, %v1510_v30  ;;  %v1311_v9 = vmul.f32 %v2490_v42, %v1286_v61  ;;  %v2549_v52 = vmul.f32 0.70710677, %v2538_v38  ;;  %v2963_v1 = vrot.slane %v2316_v26, %v2269_v59 }
 0x130   :  { %v1633_v14 = vmul.f32 %v1608_v29, %v1008_v19  ;;  %v1010_v60 = vmul.f32 0.5, %v2345_v20  ;;  %vm1535_vm9 = vcmp.ge.f32.partialorder %v2370_v24, 0.0  ;;  %v1388_v62 = vsub.f32 0.0, %v1063_v49  ;;  %v2572_v20 = vld [vmem:[%s2943_s2 + $0x10] sm:$0xff] }
 0x131   :  { %v2555_v25 = vadd.f32 %v2364_v35, %v2963_v1  ;;  %v1585_v27 = vsel %vm1535_vm9, %v1510_v30, %v1560_v37  ;;  %v1336_v34 = vadd.f32 0.2548296, %v1311_v9  ;;  %v1062_v39 = vand.u32 2147483647, %v2549_v52 }
 0x132   :  { %v2964_v18 = vrot.slane %v2316_v26, %v2280_v6  ;;  %v1634_v53 = vmul.f32 %v1609_v50, %v1009_v23  ;;  %v1944_v15 = vpack.c.bf16 %v1633_v14, %v1632_v32  ;;  %v1610_v35 = vadd.f32 1.0, %v1585_v27  ;;  %v2967_v14 = vld [vmem:[#allocation9_spill] sm:$0xff] }
 0x133   :  { %v2567_v54 = vmul.f32 0.70710677, %v2555_v25  ;;  %v1087_v24 = vmul.f32 0.3275911, %v1062_v39  ;;  %v149_v4 = vrot.slane %v2316_v26, %v2287_v11  ;;  %v145_v21 = vrot.slane %v2316_v26, %v2300_v16 }
 0x134   :  { %v2564_v33 = vadd.f32 %v2386_v28, %v2964_v18  ;;  %v1635_v28 = vmul.f32 %v1610_v35, %v1010_v60  ;;  %v1361_v3 = vmul.f32 %v2490_v42, %v1336_v34  ;;  %v153_v5 = vrot.slane %v2316_v26, %v2303_v17  ;;  %v2965_v26 = vld [vmem:[#allocation6_spill] sm:$0xff] }
 0x135   :  { %v1064_v12 = vand.u32 2147483647, %v2567_v54  ;;  %v1112_v23 = vadd.f32 1.0, %v1087_v24  ;;  %v157_v13 = vrot.slane %v2572_v20, %v2255_v55  ;;  %v165_v10 = vrot.slane %v2572_v20, %v2258_v56 }
 0x136   :  { %v2583_v36 = vmul.f32 0.70710677, %v2564_v33  ;;  %v1727_v46 = vrot.slane %v1944_v15, %v2351_v22  ;;  %v1945_v45 = vpack.c.bf16 %v1635_v28, %v1634_v53  ;;  %v1413_v31 = vmul.f32 %v1388_v62, %v1063_v49  ;;  %v2966_v49 = vld [vmem:[#allocation5_spill] sm:$0xff] }
 0x137   :  { %v1089_v42 = vmul.f32 0.3275911, %v1064_v12  ;;  %v2081_v47 = vpop.eup %2080  ;;  %2084 = vrcp.f32 %v1112_v23  ;;  %v793_v57 = vadd.f32 %v2965_v26, %v149_v4  ;;  %v161_v2 = vrot.slane %v2572_v20, %v2266_v58 }
 0x138   :  { %v1065_v48 = vand.u32 2147483647, %v2583_v36  ;;  %v2594_v8 = vpop.eup %2082  ;;  %v1734_v19 = vrot.slane %v1945_v45, %v2351_v22  ;;  %v1486_v7 = vmul.f32 %v2081_v47, %v1361_v3  ;;  %v169_v30 = vrot.slane %v2572_v20, %v2269_v59 }
 0x139   :  { %v1114_v63 = vadd.f32 1.0, %v1089_v42  ;;  %v2600_v61 = vmul.f32 0.5, %v2966_v49  ;;  %v1163_v32 = vmul.f32 1.0614054, %v2594_v8  ;;  %v173_v29 = vrot.slane %v2572_v20, %v2280_v6 }
 0x13a   :  { %v1090_v50 = vmul.f32 0.3275911, %v1065_v48  ;;  %v1736_v37 = vcombine.low %v1727_v46, %v1734_v19  ;;  %v1448_v9 = vmul.f32 1.442695, %v1413_v31  ;;  %v1387_v1 = vsub.f32 0.0, %v1062_v39  ;;  %v2968_v46 = vld [vmem:[#allocation7_spill] sm:$0xff] }
 0x13b   :  { %2086 = vrcp.f32 %v1114_v63  ;;  %vm1536_vm10 = vcmp.ge.f32.partialorder %v2967_v14, 0.0  ;;  %v1188_v60 = vadd.f32 -1.4531521, %v1163_v32  ;;  %v1389_v62 = vsub.f32 0.0, %v1064_v12  ;;  %v2969_v31 = vld [vmem:[#allocation8_spill] sm:$0xff] }
 0x13c   :  { %v1115_v27 = vadd.f32 1.0, %v1090_v50  ;;  %v2606_v34 = vmul.f32 0.70710677, %v793_v57  ;;  %v1743_v18 = vrot.slane %v1735_v40, %v2351_v22  ;;  %v1750_v53 = vrot.slane %v1736_v37, %v2351_v22 }
 0x13d   :  { %v1511_v15 = vsub.f32 1.0, %v1486_v7  ;;  %v2614_v35 = vmul.f32 0.5, %v2426_v44  ;;  %v1213_v24 = vmul.f32 %v2594_v8, %v1188_v60  ;;  %v2618_v4 = vmul.f32 0.5, %v2538_v38 }
 0x13e   :  { %2088 = vrcp.f32 %v1115_v27  ;;  %v1067_v28 = vand.u32 2147483647, %v2606_v34  ;;  %v1751_v3 = vcombine.low %v1743_v18, %v1750_v53  ;;  %v1412_v23 = vmul.f32 %v1387_v1, %v1062_v39 }
 0x13f   :  { %2090 = vpow2.f32 %v1448_v9  ;;  %v2622_v43 = vadd.f32 %v2968_v46, %v145_v21  ;;  %v1238_v0 = vadd.f32 1.4214138, %v1213_v24  ;;  %v1414_v40 = vmul.f32 %v1389_v62, %v1064_v12  ;;  %v2970_v46 = vld [vmem:[#allocation10_spill] sm:$0xff] }
 0x140   :  { %v1092_v45 = vmul.f32 0.3275911, %v1067_v28  ;;  %v2625_v44 = vadd.f32 %v2969_v31, %v153_v5  ;;  %1868 = vst [vmem:[%s2944_s3] sm:$0xff] %v1751_v3  ;;  %v1561_v38 = vsub.f32 0.0, %v1511_v15  ;;  %v2631_v42 = vmul.f32 0.5, %v2555_v25 }
 0x141   :  { %v1390_v47 = vsub.f32 0.0, %v1065_v48  ;;  %v2634_v39 = vmul.f32 0.70710677, %v2622_v43  ;;  %v2636_v21 = vpop.eup %2084  ;;  %v1263_v12 = vmul.f32 %v2594_v8, %v1238_v0  ;;  %v2640_v26 = vmul.f32 0.5, %v2564_v33 }
 0x142   :  { %v2642_v5 = vmul.f32 0.5, %v793_v57  ;;  %v1117_v19 = vadd.f32 1.0, %v1092_v45  ;;  %v1162_v7 = vmul.f32 1.0614054, %v2636_v21  ;;  %v1446_v63 = vmul.f32 1.442695, %v1412_v23 }
 0x143   :  { %v1066_v25 = vand.u32 2147483647, %v2634_v39  ;;  %v181_v49 = vrot.slane %v2572_v20, %v2287_v11  ;;  %v1288_v32 = vadd.f32 -0.28449672, %v1263_v12  ;;  %v1450_v50 = vmul.f32 1.442695, %v1414_v40 }
 0x144   :  { %2092 = vrcp.f32 %v1117_v19  ;;  %v2649_v37 = vmul.f32 0.70710677, %v2625_v44  ;;  %v1586_v33 = vsel %vm1536_vm10, %v1511_v15, %v1561_v38  ;;  %v1187_v57 = vadd.f32 -1.4531521, %v1162_v7 }
 0x145   :  { %v2651_v9 = vpop.eup %2086  ;;  %v1415_v1 = vmul.f32 %v1390_v47, %v1065_v48  ;;  %v1091_v60 = vmul.f32 0.3275911, %v1066_v25  ;;  %v1313_v62 = vmul.f32 %v2594_v8, %v1288_v32  ;;  %v1392_v18 = vsub.f32 0.0, %v1067_v28 }
 0x146   :  { %v1164_v27 = vmul.f32 1.0614054, %v2651_v9  ;;  %v1068_v53 = vand.u32 2147483647, %v2649_v37  ;;  %v1212_v24 = vmul.f32 %v2636_v21, %v1187_v57  ;;  %v1391_v23 = vsub.f32 0.0, %v1066_v25 }
 0x147   :  { %v1116_v3 = vadd.f32 1.0, %v1091_v60  ;;  %v2663_v14 = vadd.f32 %v2970_v46, %v157_v13  ;;  %v1338_v48 = vadd.f32 0.2548296, %v1313_v62  ;;  %2094 = vpow2.f32 %v1446_v63 }
 0x148   :  { %v2665_v15 = vpop.eup %2088  ;;  %v1189_v0 = vadd.f32 -1.4531521, %v1164_v27  ;;  %v1093_v40 = vmul.f32 0.3275911, %v1068_v53  ;;  %v1611_v31 = vadd.f32 1.0, %v1586_v33  ;;  %v1417_v55 = vmul.f32 %v1392_v18, %v1067_v28 }
 0x149   :  { %v2091_v45 = vpop.eup %2090  ;;  %v1237_v38 = vadd.f32 1.4214138, %v1212_v24  ;;  %v1165_v47 = vmul.f32 1.0614054, %v2665_v15  ;;  %2096 = vrcp.f32 %v1116_v3  ;;  %v1363_v12 = vmul.f32 %v2594_v8, %v1338_v48 }
 0x14a   :  { %v1214_v19 = vmul.f32 %v2651_v9, %v1189_v0  ;;  %v1118_v7 = vadd.f32 1.0, %v1093_v40  ;;  %v1452_v57 = vmul.f32 1.442695, %v1415_v1  ;;  %v2672_v63 = vmul.f32 0.70710677, %v2663_v14 }
 0x14b   :  { %v1262_v13 = vmul.f32 %v2636_v21, %v1237_v38  ;;  %v1190_v32 = vadd.f32 -1.4531521, %v1165_v47  ;;  %v1488_v60 = vmul.f32 %v2091_v45, %v1363_v12  ;;  %v1416_v33 = vmul.f32 %v1391_v23, %v1066_v25  ;;  %v2971_v25 = vld [vmem:[#allocation11_spill] sm:$0xff] }
 0x14c   :  { %v1239_v62 = vadd.f32 1.4214138, %v1214_v19  ;;  %2098 = vrcp.f32 %v1118_v7  ;;  %vm1538_vm11 = vcmp.ge.f32.partialorder %v2517_v41, 0.0  ;;  %v2677_v28 = vand.u32 2147483647, %v2672_v63 }
 0x14d   :  { %v1287_v27 = vadd.f32 -0.28449672, %v1262_v13  ;;  %2100 = vpow2.f32 %v1450_v50  ;;  %v1215_v8 = vmul.f32 %v2665_v15, %v1190_v32  ;;  %v1513_v24 = vsub.f32 1.0, %v1488_v60 }
 0x14e   :  { %v2679_v18 = vpop.eup %2092  ;;  %v1264_v1 = vmul.f32 %v2651_v9, %v1239_v62  ;;  %v1456_v3 = vmul.f32 1.442695, %v1417_v55  ;;  %v2686_v23 = vadd.f32 %v2971_v25, %v165_v10  ;;  %v1094_v0 = vmul.f32 0.3275911, %v2677_v28 }
 0x14f   :  { %v1312_v46 = vmul.f32 %v2636_v21, %v1287_v27  ;;  %v1240_v50 = vadd.f32 1.4214138, %v1215_v8  ;;  %v1167_v48 = vmul.f32 1.0614054, %v2679_v18  ;;  %2102 = vpow2.f32 %v1452_v57 }
 0x150   :  { %v1289_v40 = vadd.f32 -0.28449672, %v1264_v1  ;;  %v1454_v45 = vmul.f32 1.442695, %v1416_v33  ;;  %v1393_v38 = vsub.f32 0.0, %v1068_v53  ;;  %v1119_v55 = vadd.f32 1.0, %v1094_v0 }
 0x151   :  { %v1337_v47 = vadd.f32 0.2548296, %v1312_v46  ;;  %v1265_v12 = vmul.f32 %v2665_v15, %v1240_v50  ;;  %v1192_v19 = vadd.f32 -1.4531521, %v1167_v48  ;;  %v2095_v56 = vpop.eup %2094  ;;  %v2693_v10 = vmul.f32 %v1611_v31, %v2600_v61 }
 0x152   :  { %v1563_v7 = vsub.f32 0.0, %v1513_v24  ;;  %vm1537_vm12 = vcmp.ge.f32.partialorder %v2549_v52, 0.0  ;;  %v1314_v13 = vmul.f32 %v2651_v9, %v1289_v40  ;;  %v2698_v32 = vmul.f32 0.70710677, %v2686_v23 }
 0x153   :  { %v2700_v57 = vpop.eup %2096  ;;  %v1362_v60 = vmul.f32 %v2636_v21, %v1337_v47  ;;  %v1290_v62 = vadd.f32 -0.28449672, %v1265_v12  ;;  %v1217_v33 = vmul.f32 %v2679_v18, %v1192_v19  ;;  %2104 = vpow2.f32 %v1456_v3 }
 0x154   :  { %v1339_v27 = vadd.f32 0.2548296, %v1314_v13  ;;  %v1166_v61 = vmul.f32 1.0614054, %v2700_v57  ;;  %v1418_v31 = vmul.f32 %v1393_v38, %v1068_v53  ;;  %2106 = vrcp.f32 %v1119_v55 }
 0x155   :  { %v1487_v8 = vmul.f32 %v2095_v56, %v1362_v60  ;;  %vm1539_vm13 = vcmp.ge.f32.partialorder %v2567_v54, 0.0  ;;  %v1315_v1 = vmul.f32 %v2665_v15, %v1290_v62  ;;  %v1242_v25 = vadd.f32 1.4214138, %v1217_v33 }
 0x156   :  { %2108 = vpow2.f32 %v1454_v45  ;;  %v2707_v46 = vpop.eup %2098  ;;  %v1588_v21 = vsel %vm1538_vm11, %v1513_v24, %v1563_v7  ;;  %v1364_v50 = vmul.f32 %v2651_v9, %v1339_v27  ;;  %v1191_v3 = vadd.f32 -1.4531521, %v1166_v61 }
 0x157   :  { %v2713_v48 = vand.u32 2147483647, %v2698_v32  ;;  %v2101_v53 = vpop.eup %2100  ;;  %v1512_v0 = vsub.f32 1.0, %v1487_v8  ;;  %v1340_v40 = vadd.f32 0.2548296, %v1315_v1  ;;  %v1267_v38 = vmul.f32 %v2679_v18, %v1242_v25 }
 0x158   :  { %v1168_v47 = vmul.f32 1.0614054, %v2707_v46  ;;  %v1489_v12 = vmul.f32 %v2101_v53, %v1364_v50  ;;  %v1216_v45 = vmul.f32 %v2700_v57, %v1191_v3  ;;  %v1458_v19 = vmul.f32 1.442695, %v1418_v31 }
 0x159   :  { %v1096_v41 = vmul.f32 0.3275911, %v2713_v48  ;;  %v1562_v24 = vsub.f32 0.0, %v1512_v0  ;;  %v1365_v9 = vmul.f32 %v2665_v15, %v1340_v40  ;;  %v1292_v55 = vadd.f32 -0.28449672, %v1267_v38  ;;  %v2103_v7 = vpop.eup %2102  ;;  %v2972_v40 = vld [vmem:[#allocation12_spill] sm:$0xff] }
 0x15a   :  { %v1193_v56 = vadd.f32 -1.4531521, %v1168_v47  ;;  %v1613_v13 = vadd.f32 1.0, %v1588_v21  ;;  %v1514_v60 = vsub.f32 1.0, %v1489_v12  ;;  %v1241_v62 = vadd.f32 1.4214138, %v1216_v45 }
 0x15b   :  { %v1121_v33 = vadd.f32 1.0, %v1096_v41  ;;  %v1587_v27 = vsel %vm1537_vm12, %v1512_v0, %v1562_v24  ;;  %v1490_v61 = vmul.f32 %v2103_v7, %v1365_v9  ;;  %v1317_v8 = vmul.f32 %v2679_v18, %v1292_v55 }
 0x15c   :  { %v1218_v31 = vmul.f32 %v2707_v46, %v1193_v56  ;;  %v1612_v1 = vadd.f32 1.0, %v1587_v27  ;;  %v1564_v25 = vsub.f32 0.0, %v1514_v60  ;;  %v1266_v50 = vmul.f32 %v2700_v57, %v1241_v62 }
 0x15d   :  { %2110 = vrcp.f32 %v1121_v33  ;;  %v2105_v15 = vpop.eup %2104  ;;  %v1515_v3 = vsub.f32 1.0, %v1490_v61  ;;  %v1342_v53 = vadd.f32 0.2548296, %v1317_v8  ;;  %v2729_v52 = vadd.f32 %v2972_v40, %v161_v2 }
 0x15e   :  { %v1243_v21 = vadd.f32 1.4214138, %v1218_v31  ;;  %v2731_v0 = vpop.eup %2106  ;;  %v1637_v38 = vmul.f32 %v1612_v1, %v2618_v4  ;;  %v1589_v47 = vsel %vm1539_vm13, %v1514_v60, %v1564_v25  ;;  %v1291_v12 = vadd.f32 -0.28449672, %v1266_v50 }
 0x15f   :  { %2112 = vpow2.f32 %v1458_v19  ;;  %v1638_v41 = vmul.f32 %v1613_v13, %v2614_v35  ;;  %v1614_v24 = vadd.f32 1.0, %v1589_v47  ;;  %v1367_v9 = vmul.f32 %v2679_v18, %v1342_v53 }
 0x160   :  { %v2109_v45 = vpop.eup %2108  ;;  %v1268_v58 = vmul.f32 %v2707_v46, %v1243_v21  ;;  %v1946_v2 = vpack.c.bf16 %v1637_v38, %v2693_v10  ;;  %v1565_v55 = vsub.f32 0.0, %v1515_v3  ;;  %v1316_v56 = vmul.f32 %v2700_v57, %v1291_v12 }
 0x161   :  { %v1169_v4 = vmul.f32 1.0614054, %v2731_v0  ;;  %v1639_v54 = vmul.f32 %v1614_v24, %v2631_v42  ;;  %vm1540_vm14 = vcmp.ge.f32.partialorder %v2583_v36, 0.0  ;;  %v1492_v19 = vmul.f32 %v2105_v15, %v1367_v9 }
 0x162   :  { %v1293_v7 = vadd.f32 -0.28449672, %v1268_v58  ;;  %vm1542_vm15 = vcmp.ge.f32.partialorder %v2606_v34, 0.0  ;;  %v1341_v35 = vadd.f32 0.2548296, %v1316_v56  ;;  %v1394_v18 = vsub.f32 0.0, %v2677_v28 }
 0x163   :  { %v1194_v13 = vadd.f32 -1.4531521, %v1169_v4  ;;  %v2747_v60 = vrot.slane %v1946_v2, %v2351_v22  ;;  %v1947_v10 = vpack.c.bf16 %v1639_v54, %v1638_v41  ;;  %v1517_v62 = vsub.f32 1.0, %v1492_v19 }
 0x164   :  { %v1318_v33 = vmul.f32 %v2707_v46, %v1293_v7  ;;  %v1590_v27 = vsel %vm1540_vm14, %v1515_v3, %v1565_v55  ;;  %v1366_v42 = vmul.f32 %v2700_v57, %v1341_v35  ;;  %v2753_v61 = vmul.f32 0.70710677, %v2729_v52 }
 0x165   :  { %v1219_v36 = vmul.f32 %v2731_v0, %v1194_v13  ;;  %v2756_v8 = vrot.slane %v1947_v10, %v2351_v22  ;;  %v1567_v31 = vsub.f32 0.0, %v1517_v62  ;;  %v1016_v1 = vmul.f32 0.5, %v2622_v43 }
 0x166   :  { %v1343_v25 = vadd.f32 0.2548296, %v1318_v33  ;;  %v1491_v15 = vmul.f32 %v2109_v45, %v1366_v42  ;;  %v1419_v3 = vmul.f32 %v1394_v18, %v2677_v28  ;;  %v1070_v57 = vand.u32 2147483647, %v2753_v61  ;;  %v2973_v45 = vld [vmem:[#allocation13_spill] sm:$0xff] }
 0x167   :  { %v2759_v50 = vpop.eup %2110  ;;  %v1244_v53 = vadd.f32 1.4214138, %v1219_v36  ;;  %v1784_v21 = vcombine.low %v2747_v60, %v2756_v8  ;;  %v1615_v40 = vadd.f32 1.0, %v1590_v27  ;;  %v2772_v28 = vadd.f32 %v2973_v45, %v169_v30  ;;  %v2975_v45 = vld [vmem:[#allocation15_spill] sm:$0xff] }
 0x168   :  { %v1368_v38 = vmul.f32 %v2707_v46, %v1343_v25  ;;  %v1171_v47 = vmul.f32 1.0614054, %v2759_v50  ;;  %v1516_v41 = vsub.f32 1.0, %v1491_v15  ;;  %v1095_v24 = vmul.f32 0.3275911, %v1070_v57 }
 0x169   :  { %v2113_v12 = vpop.eup %2112  ;;  %v1269_v43 = vmul.f32 %v2731_v0, %v1244_v53  ;;  %v1592_v9 = vsel %vm1542_vm15, %v1517_v62, %v1567_v31  ;;  %vm1541_vm0 = vcmp.ge.f32.partialorder %v2634_v39, 0.0  ;;  %v1460_v56 = vmul.f32 1.442695, %v1419_v3  ;;  %v2974_v62 = vld [vmem:[#allocation14_spill] sm:$0xff] }
 0x16a   :  { %v1493_v58 = vmul.f32 %v2113_v12, %v1368_v38  ;;  %v1196_v46 = vadd.f32 -1.4531521, %v1171_v47  ;;  %v1566_v2 = vsub.f32 0.0, %v1516_v41  ;;  %v1120_v4 = vadd.f32 1.0, %v1095_v24 }
 0x16b   :  { %v1294_v55 = vadd.f32 -0.28449672, %v1269_v43  ;;  %v1640_v54 = vmul.f32 %v1615_v40, %v2640_v26  ;;  %v1396_v59 = vsub.f32 0.0, %v2713_v48  ;;  %v1617_v30 = vadd.f32 1.0, %v1592_v9 }
 0x16c   :  { %v1518_v19 = vsub.f32 1.0, %v1493_v58  ;;  %v1221_v7 = vmul.f32 %v2759_v50, %v1196_v46  ;;  %v1591_v35 = vsel %vm1541_vm0, %v1516_v41, %v1566_v2  ;;  %2114 = vrcp.f32 %v1120_v4 }
 0x16d   :  { %v2781_v34 = vmul.f32 0.70710677, %v2772_v28  ;;  %v1616_v39 = vadd.f32 1.0, %v1591_v35  ;;  %v1319_v18 = vmul.f32 %v2731_v0, %v1294_v55  ;;  %vm1543_vm1 = vcmp.ge.f32.partialorder %v2649_v37, 0.0 }
 0x16e   :  { %v1568_v13 = vsub.f32 0.0, %v1518_v19  ;;  %v1246_v10 = vadd.f32 1.4214138, %v1221_v7  ;;  %2116 = vpow2.f32 %v1460_v56  ;;  %v2790_v33 = vadd.f32 %v2974_v62, %v173_v29 }
 0x16f   :  { %v1072_v26 = vand.u32 2147483647, %v2781_v34  ;;  %v1641_v27 = vmul.f32 %v1616_v39, %v1016_v1  ;;  %v1018_v42 = vmul.f32 0.5, %v2625_v44  ;;  %v1421_v31 = vmul.f32 %v1396_v59, %v2713_v48 }
 0x170   :  { %v1593_v36 = vsel %vm1543_vm1, %v1518_v19, %v1568_v13  ;;  %v1642_v25 = vmul.f32 %v1617_v30, %v2642_v5  ;;  %v1271_v37 = vmul.f32 %v2759_v50, %v1246_v10  ;;  %v1344_v40 = vadd.f32 0.2548296, %v1319_v18  ;;  %v2976_v13 = vld [vmem:[#allocation16_spill] sm:$0xff] }
 0x171   :  { %v1618_v15 = vadd.f32 1.0, %v1593_v36  ;;  %v1097_v53 = vmul.f32 0.3275911, %v1072_v26  ;;  %v1948_v3 = vpack.c.bf16 %v1641_v27, %v1640_v54  ;;  %v1395_v38 = vsub.f32 0.0, %v1070_v57 }
 0x172   :  { %v2797_v6 = vmul.f32 0.70710677, %v2790_v33  ;;  %v1464_v1 = vmul.f32 1.442695, %v1421_v31  ;;  %v1296_v41 = vadd.f32 -0.28449672, %v1271_v37  ;;  %v1369_v5 = vmul.f32 %v2731_v0, %v1344_v40 }
 0x173   :  { %v1643_v29 = vmul.f32 %v1618_v15, %v1018_v42  ;;  %v1122_v47 = vadd.f32 1.0, %v1097_v53  ;;  %v1776_v12 = vrot.slane %v1948_v3, %v2351_v22  ;;  %v1420_v43 = vmul.f32 %v1395_v38, %v1070_v57  ;;  %v1878_v42 = vld [vmem:[%s2943_s2 + $0x18] ss:$0 sm:$0xff] }
 0x174   :  { %v1073_v44 = vand.u32 2147483647, %v2797_v6  ;;  %v2806_v9 = vadd.f32 %v2975_v45, %v181_v49  ;;  %v1397_v2 = vsub.f32 0.0, %v1072_v26  ;;  %v177_v4 = vrot.slane %v2572_v20, %v2300_v16 }
 0x175   :  { %v1949_v48 = vpack.c.bf16 %v1643_v29, %v1642_v25  ;;  %2118 = vrcp.f32 %v1122_v47  ;;  %v1321_v54 = vmul.f32 %v2759_v50, %v1296_v41  ;;  %v1462_v7 = vmul.f32 1.442695, %v1420_v43 }
 0x176   :  { %v1098_v24 = vmul.f32 0.3275911, %v1073_v44  ;;  %v2808_v58 = vpop.eup %2114  ;;  %2120 = vpow2.f32 %v1464_v1  ;;  %v2816_v11 = vmul.f32 0.70710677, %v2806_v9  ;;  %v1792_v59 = vrot.slane %v1784_v21, %v2351_v22 }
 0x177   :  { %v1783_v46 = vrot.slane %v1949_v48, %v2351_v22  ;;  %v1170_v55 = vmul.f32 1.0614054, %v2808_v58  ;;  %v1422_v16 = vmul.f32 %v1397_v2, %v1072_v26  ;;  %v2826_v18 = vadd.f32 %v2976_v13, %v177_v4 }
 0x178   :  { %v1123_v56 = vadd.f32 1.0, %v1098_v24  ;;  %v2117_v0 = vpop.eup %2116  ;;  %v1075_v35 = vand.u32 2147483647, %v2816_v11  ;;  %v1346_v62 = vadd.f32 0.2548296, %v1321_v54  ;;  %v1398_v31 = vsub.f32 0.0, %v1073_v44 }
 0x179   :  { %v1785_v57 = vcombine.low %v1776_v12, %v1783_v46  ;;  %v1494_v49 = vmul.f32 %v2117_v0, %v1369_v5  ;;  %v1195_v19 = vadd.f32 -1.4531521, %v1170_v55  ;;  %v2832_v8 = vmul.f32 0.70710677, %v2826_v18  ;;  %v2977_v12 = vld [vmem:[#allocation17_spill] sm:$0xff] }
 0x17a   :  { %2122 = vrcp.f32 %v1123_v56  ;;  %v1100_v27 = vmul.f32 0.3275911, %v1075_v35  ;;  %v1466_v26 = vmul.f32 1.442695, %v1422_v16  ;;  %v185_v15 = vrot.slane %v2572_v20, %v2303_v17 }
 0x17b   :  { %v1799_v30 = vrot.slane %v1785_v57, %v2351_v22  ;;  %v1220_v39 = vmul.f32 %v2808_v58, %v1195_v19  ;;  %v1519_v36 = vsub.f32 1.0, %v1494_v49  ;;  %2124 = vpow2.f32 %v1462_v7 }
 0x17c   :  { %v1125_v25 = vadd.f32 1.0, %v1100_v27  ;;  %v2844_v3 = vand.u32 2147483647, %v2832_v8  ;;  %v1371_v40 = vmul.f32 %v2759_v50, %v1346_v62  ;;  %v2848_v38 = vadd.f32 %v1878_v42, %v2496_v51 }
 0x17d   :  { %v1800_v10 = vcombine.low %v1792_v59, %v1799_v30  ;;  %v1245_v60 = vadd.f32 1.4214138, %v1220_v39  ;;  %v2852_v48 = vadd.f32 %v2977_v12, %v185_v15  ;;  %v1019_v20 = vmul.f32 0.5, %v2663_v14 }
 0x17e   :  { %2126 = vrcp.f32 %v1125_v25  ;;  %v1099_v1 = vmul.f32 0.3275911, %v2844_v3  ;;  %v1569_v41 = vsub.f32 0.0, %v1519_v36  ;;  %v1423_v5 = vmul.f32 %v1398_v31, %v1073_v44 }
 0x17f   :  { %v2834_v21 = vpop.eup %2118  ;;  %1869 = vst [vmem:[%s2944_s3 + $0x8] sm:$0xff] %v1800_v10  ;;  %v1270_v37 = vmul.f32 %v2808_v58, %v1245_v60  ;;  %2128 = vpow2.f32 %v1466_v26  ;;  %v1400_v24 = vsub.f32 0.0, %v1075_v35  ;;  %v2861_v55 = vmul.f32 0.70710677, %v2852_v48 }
 0x180   :  { %v1172_v53 = vmul.f32 1.0614054, %v2834_v21  ;;  %v2121_v17 = vpop.eup %2120  ;;  %v1124_v45 = vadd.f32 1.0, %v1099_v1  ;;  %v2864_v56 = vmul.f32 0.70710677, %v2848_v38  ;;  %vm1544_vm2 = vcmp.ge.f32.partialorder %v2672_v63, 0.0 }
 0x181   :  { %v1295_v29 = vadd.f32 -0.28449672, %v1270_v37  ;;  %v1496_v46 = vmul.f32 %v2121_v17, %v1371_v40  ;;  %v1594_v4 = vsel %vm1544_vm2, %v1519_v36, %v1569_v41  ;;  %v1468_v57 = vmul.f32 1.442695, %v1423_v5 }
 0x182   :  { %v1197_v47 = vadd.f32 -1.4531521, %v1172_v53  ;;  %2130 = vrcp.f32 %v1124_v45  ;;  %v2868_v54 = vand.u32 2147483647, %v2861_v55  ;;  %vm1546_vm3 = vcmp.ge.f32.partialorder %v2698_v32, 0.0 }
 0x183   :  { %v1320_v50 = vmul.f32 %v2808_v58, %v1295_v29  ;;  %v2874_v59 = vand.u32 2147483647, %v2864_v56  ;;  %v1521_v63 = vsub.f32 1.0, %v1496_v46  ;;  %v1425_v16 = vmul.f32 %v1400_v24, %v1075_v35 }
 0x184   :  { %v2855_v43 = vpop.eup %2122  ;;  %v1222_v51 = vmul.f32 %v2834_v21, %v1197_v47  ;;  %v1101_v39 = vmul.f32 0.3275911, %v2868_v54  ;;  %v1619_v13 = vadd.f32 1.0, %v1594_v4  ;;  %2132 = vpow2.f32 %v1468_v57 }
 0x185   :  { %v1173_v2 = vmul.f32 1.0614054, %v2855_v43  ;;  %v1345_v14 = vadd.f32 0.2548296, %v1320_v50  ;;  %v2125_v49 = vpop.eup %2124  ;;  %v1102_v27 = vmul.f32 0.3275911, %v2874_v59 }
 0x186   :  { %v1247_v44 = vadd.f32 1.4214138, %v1222_v51  ;;  %v1126_v60 = vadd.f32 1.0, %v1101_v39  ;;  %v1571_v37 = vsub.f32 0.0, %v1521_v63  ;;  %v1472_v40 = vmul.f32 1.442695, %v1425_v16 }
 0x187   :  { %v1198_v0 = vadd.f32 -1.4531521, %v1173_v2  ;;  %v1370_v19 = vmul.f32 %v2808_v58, %v1345_v14  ;;  %v1399_v58 = vsub.f32 0.0, %v2844_v3  ;;  %v1127_v35 = vadd.f32 1.0, %v1102_v27 }
 0x188   :  { %v1272_v7 = vmul.f32 %v2834_v21, %v1247_v44  ;;  %v2879_v42 = vpop.eup %2126  ;;  %2134 = vrcp.f32 %v1126_v60  ;;  %v1020_v12 = vmul.f32 0.5, %v2729_v52  ;;  %vm1545_vm4 = vcmp.ge.f32.partialorder %v2753_v61, 0.0 }
 0x189   :  { %v1223_v30 = vmul.f32 %v2855_v43, %v1198_v0  ;;  %v1495_v10 = vmul.f32 %v2125_v49, %v1370_v19  ;;  %v1175_v25 = vmul.f32 1.0614054, %v2879_v42  ;;  %v2129_v15 = vpop.eup %2128  ;;  %2136 = vrcp.f32 %v1127_v35 }
 0x18a   :  { %v1297_v62 = vadd.f32 -0.28449672, %v1272_v7  ;;  %v1424_v41 = vmul.f32 %v1399_v58, %v2844_v3  ;;  %v1644_v50 = vmul.f32 %v1619_v13, %v1019_v20  ;;  %v1596_v46 = vsel %vm1546_vm3, %v1521_v63, %v1571_v37 }
 0x18b   :  { %v1248_v36 = vadd.f32 1.4214138, %v1223_v30  ;;  %v1520_v26 = vsub.f32 1.0, %v1495_v10  ;;  %v1200_v1 = vadd.f32 -1.4531521, %v1175_v25  ;;  %2138 = vpow2.f32 %v1472_v40 }
 0x18c   :  { %v1322_v31 = vmul.f32 %v2834_v21, %v1297_v62  ;;  %v2888_v5 = vpop.eup %2130  ;;  %v1401_v3 = vsub.f32 0.0, %v2868_v54  ;;  %v1470_v57 = vmul.f32 1.442695, %v1424_v41  ;;  %v1402_v19 = vsub.f32 0.0, %v2874_v59 }
 0x18d   :  { %v1273_v53 = vmul.f32 %v2855_v43, %v1248_v36  ;;  %v1570_v29 = vsub.f32 0.0, %v1520_v26  ;;  %v1225_v45 = vmul.f32 %v2879_v42, %v1200_v1  ;;  %v1174_v52 = vmul.f32 1.0614054, %v2888_v5 }
 0x18e   :  { %v1347_v47 = vadd.f32 0.2548296, %v1322_v31  ;;  %v2133_v7 = vpop.eup %2132  ;;  %v1621_v63 = vadd.f32 1.0, %v1596_v46  ;;  %v1022_v13 = vmul.f32 0.5, %v2772_v28  ;;  %v1426_v27 = vmul.f32 %v1401_v3, %v2868_v54 }
 0x18f   :  { %v1298_v17 = vadd.f32 -0.28449672, %v1273_v53  ;;  %v1595_v51 = vsel %vm1545_vm4, %v1520_v26, %v1570_v29  ;;  %v1250_v44 = vadd.f32 1.4214138, %v1225_v45  ;;  %v1199_v0 = vadd.f32 -1.4531521, %v1174_v52 }
 0x190   :  { %v1372_v24 = vmul.f32 %v2834_v21, %v1347_v47  ;;  %v1620_v2 = vadd.f32 1.0, %v1595_v51  ;;  %v1021_v21 = vmul.f32 0.5, %v2686_v23  ;;  %vm1547_vm5 = vcmp.ge.f32.partialorder %v2781_v34, 0.0 }
 0x191   :  { %v1323_v14 = vmul.f32 %v2855_v43, %v1298_v17  ;;  %v1275_v32 = vmul.f32 %v2879_v42, %v1250_v44  ;;  %v1224_v39 = vmul.f32 %v2888_v5, %v1199_v0  ;;  %2140 = vpow2.f32 %v1470_v57 }
 0x192   :  { %v1497_v61 = vmul.f32 %v2129_v15, %v1372_v24  ;;  %v1645_v4 = vmul.f32 %v1620_v2, %v1020_v12  ;;  %v2135_v36 = vpop.eup %2134  ;;  %v1646_v35 = vmul.f32 %v1621_v63, %v1021_v21  ;;  %v1474_v40 = vmul.f32 1.442695, %v1426_v27 }
 0x193   :  { %v1348_v20 = vadd.f32 0.2548296, %v1323_v14  ;;  %v1300_v62 = vadd.f32 -0.28449672, %v1275_v32  ;;  %v1249_v58 = vadd.f32 1.4214138, %v1224_v39  ;;  %v2137_v60 = vpop.eup %2136 }
 0x194   :  { %v1522_v49 = vsub.f32 1.0, %v1497_v61  ;;  %v1950_v30 = vpack.c.bf16 %v1645_v4, %v1644_v50  ;;  %v1176_v25 = vmul.f32 1.0614054, %v2135_v36  ;;  %v1177_v37 = vmul.f32 1.0614054, %v2137_v60 }
 0x195   :  { %v1373_v16 = vmul.f32 %v2855_v43, %v1348_v20  ;;  %v1325_v31 = vmul.f32 %v2879_v42, %v1300_v62  ;;  %v1427_v43 = vmul.f32 %v1402_v19, %v2874_v59  ;;  %v1274_v28 = vmul.f32 %v2888_v5, %v1249_v58  ;;  %v2139_v12 = vpop.eup %2138 }
 0x196   :  { %v1572_v10 = vsub.f32 0.0, %v1522_v49  ;;  %v1201_v54 = vadd.f32 -1.4531521, %v1176_v25  ;;  %v1202_v1 = vadd.f32 -1.4531521, %v1177_v37  ;;  %v2910_v51 = vrot.slane %v1950_v30, %v2351_v22 }
 0x197   :  { %v1498_v23 = vmul.f32 %v2133_v7, %v1373_v16  ;;  %v1350_v53 = vadd.f32 0.2548296, %v1325_v31  ;;  %v1299_v47 = vadd.f32 -0.28449672, %v1274_v28  ;;  %v1476_v50 = vmul.f32 1.442695, %v1427_v43 }
 0x198   :  { %v1597_v26 = vsel %vm1547_vm5, %v1522_v49, %v1572_v10  ;;  %v1226_v41 = vmul.f32 %v2135_v36, %v1201_v54  ;;  %v1227_v45 = vmul.f32 %v2137_v60, %v1202_v1  ;;  %2142 = vpow2.f32 %v1474_v40 }
 0x199   :  { %v1622_v15 = vadd.f32 1.0, %v1597_v26  ;;  %v1523_v34 = vsub.f32 1.0, %v1498_v23  ;;  %v1375_v17 = vmul.f32 %v2879_v42, %v1350_v53  ;;  %v1324_v24 = vmul.f32 %v2888_v5, %v1299_v47 }
 0x19a   :  { %v1251_v2 = vadd.f32 1.4214138, %v1226_v41  ;;  %v1252_v44 = vadd.f32 1.4214138, %v1227_v45  ;;  %2144 = vpow2.f32 %v1476_v50  ;;  %vm1548_vm6 = vcmp.ge.f32.partialorder %v2797_v6, 0.0 }
 0x19b   :  { %v1647_v29 = vmul.f32 %v1622_v15, %v1022_v13  ;;  %v1500_v46 = vmul.f32 %v2139_v12, %v1375_v17  ;;  %v1573_v52 = vsub.f32 0.0, %v1523_v34  ;;  %v1349_v61 = vadd.f32 0.2548296, %v1324_v24  ;;  %v2141_v42 = vpop.eup %2140 }
 0x19c   :  { %v1276_v3 = vmul.f32 %v2135_v36, %v1251_v2  ;;  %v1277_v0 = vmul.f32 %v2137_v60, %v1252_v44  ;;  %v1023_v23 = vmul.f32 0.5, %v2790_v33  ;;  %vm1549_vm7 = vcmp.ge.f32.partialorder %v2832_v8, 0.0 }
 0x19d   :  { %v1951_v59 = vpack.c.bf16 %v1647_v29, %v1646_v35  ;;  %v1374_v20 = vmul.f32 %v2888_v5, %v1349_v61  ;;  %v1525_v57 = vsub.f32 1.0, %v1500_v46  ;;  %v1598_v49 = vsel %vm1548_vm6, %v1523_v34, %v1573_v52 }
 0x19e   :  { %v1301_v21 = vadd.f32 -0.28449672, %v1276_v3  ;;  %v1302_v19 = vadd.f32 -0.28449672, %v1277_v0  ;;  %v1623_v16 = vadd.f32 1.0, %v1598_v49  ;;  %vm1550_vm8 = vcmp.ge.f32.partialorder %v2816_v11, 0.0 }
 0x19f   :  { %v2914_v14 = vrot.slane %v1951_v59, %v2351_v22  ;;  %v1499_v32 = vmul.f32 %v2141_v42, %v1374_v20  ;;  %v1575_v39 = vsub.f32 0.0, %v1525_v57  ;;  %v1024_v6 = vmul.f32 0.5, %v2826_v18 }
 0x1a0   :  { %v1326_v7 = vmul.f32 %v2135_v36, %v1301_v21  ;;  %v1327_v30 = vmul.f32 %v2137_v60, %v1302_v19  ;;  %v1648_v25 = vmul.f32 %v1623_v16, %v1023_v23  ;;  %v1025_v8 = vmul.f32 0.5, %v2806_v9 }
 0x1a1   :  { %v1833_v4 = vcombine.low %v2910_v51, %v2914_v14  ;;  %v1524_v63 = vsub.f32 1.0, %v1499_v32  ;;  %v1600_v43 = vsel %vm1550_vm8, %v1525_v57, %v1575_v39  ;;  %vm1551_vm9 = vcmp.ge.f32.partialorder %v2861_v55, 0.0 }
 0x1a2   :  { %v1351_v13 = vadd.f32 0.2548296, %v1326_v7  ;;  %v1352_v62 = vadd.f32 0.2548296, %v1327_v30  ;;  %v2143_v27 = vpop.eup %2142  ;;  %v1625_v54 = vadd.f32 1.0, %v1600_v43  ;;  %vm1552_vm10 = vcmp.ge.f32.partialorder %v2864_v56, 0.0 }
 0x1a3   :  { %v1574_v10 = vsub.f32 0.0, %v1524_v63  ;;  %v1027_v1 = vmul.f32 0.5, %v2848_v38  ;;  %vm1871_vm11 = vcmask 516096  }
 0x1a4   :  { %v1376_v5 = vmul.f32 %v2135_v36, %v1351_v13  ;;  %v1377_v26 = vmul.f32 %v2137_v60, %v1352_v62  ;;  %v2145_v31 = vpop.eup %2144  ;;  %v1650_v36 = vmul.f32 %v1625_v54, %v1025_v8  ;;  %v1026_v60 = vmul.f32 0.5, %v2852_v48 }
 0x1a5   :  { %v1599_v58 = vsel %vm1549_vm7, %v1524_v63, %v1574_v10  ;;  %v1841_v48 = vrot.slane %v1833_v4, %v2351_v22 }
 0x1a6   :  { %v1624_v35 = vadd.f32 1.0, %v1599_v58  ;;  %v1501_v15 = vmul.f32 %v2143_v27, %v1376_v5  ;;  %v1502_v28 = vmul.f32 %v2145_v31, %v1377_v26 }
 0x1a8   :  { %v1649_v37 = vmul.f32 %v1624_v35, %v1024_v6  ;;  %v1526_v53 = vsub.f32 1.0, %v1501_v15  ;;  %v1527_v40 = vsub.f32 1.0, %v1502_v28 }
 0x1aa   :  { %v1952_v33 = vpack.c.bf16 %v1649_v37, %v1648_v25  ;;  %v1576_v29 = vsub.f32 0.0, %v1526_v53  ;;  %v1577_v11 = vsub.f32 0.0, %v1527_v40 }
 0x1ac   :  { %v1601_v18 = vsel %vm1551_vm9, %v1526_v53, %v1576_v29  ;;  %v1602_v47 = vsel %vm1552_vm10, %v1527_v40, %v1577_v11  ;;  %v1825_v50 = vrot.slane %v1952_v33, %v2351_v22 }
 0x1ad   :  { %v1626_v34 = vadd.f32 1.0, %v1601_v18  ;;  %v1627_v12 = vadd.f32 1.0, %v1602_v47 }
 0x1af   :  { %v1651_v17 = vmul.f32 %v1626_v34, %v1026_v60  ;;  %v1652_v41 = vmul.f32 %v1627_v12, %v1027_v1 }
 0x1b1   :  { %v1953_v51 = vpack.c.bf16 %v1651_v17, %v1650_v36  ;;  %v1677_v9 = vpack.c.bf16 %v1652_v41, %v1652_v41 }
 0x1b3   :  { %v1832_v55 = vrot.slane %v1953_v51, %v2351_v22  ;;  %v1856_v59 = vrot.slane %v1677_v9, %v2351_v22 }
 0x1b5   :  { %v1834_v24 = vcombine.low %v1825_v50, %v1832_v55  ;;  %v1863_v56 = vrot.slane %v1856_v59, %v2351_v22 }
 0x1b7   :  { %v1848_v45 = vrot.slane %v1834_v24, %v2351_v22  ;;  %1872 = vst.msk [vmem:[%s2944_s3 + $0x18] sm:$0x1] %vm1871_vm11, %v1863_v56 }
 0x1b9   :  { %v1849_v38 = vcombine.low %v1841_v48, %v1848_v45 }
 0x1bb   :  { %1870 = vst [vmem:[%s2944_s3 + $0x10] sm:$0xff] %v1849_v38 }
 0x1bc   :  { %1877 = vsyncpa [#allocation3], 1 }

// kernel: generator_forward.6
= control target key start
LH: loop header
LB: loop body
LE: loop exit
PB: predicated region body
PF: predicated region fallthrough
CT: control target
= control target key end

     0   :  { %s2437_s12 = smov 0   ;;  %s2439_s13 = smov 0   ;;  %s3437_s0 = inlined_call_operand.vmem [shape: bf16[578,128], index: 0, kind: input, shape index: {}]   ;;  %s3438_s1 = inlined_call_operand.vmem [shape: bf16[128,64], index: 1, kind: input, shape index: {}]   ;;  %s3439_s2 = inlined_call_operand.vmem [shape: f32[1,64], index: 2, kind: input, shape index: {}]   ;;  %s3440_s3 = inlined_call_operand.vmem [shape: bf16[578,64], index: 3, kind: output, shape index: {}]  }
   0x1   :  { %s2441_s14 = smov 0  }
   0x2 LB: > { %s2450_s15 = sadd.s32 4294967295, %s2383_s14   ;;  %s2452_s16 = sadd.s32 1, %s2383_s14   ;;  %s2383_s14 = sphi %s2441_s14, %s3461_s14   ;;  %s2379_s13 = sphi %s2439_s13, %s3460_s13   ;;  %s2375_s12 = sphi %s2437_s12, %s3459_s12  }
   0x3   : > { %s85_s17 = ssub.s32 %s2383_s14, %s2452_s16  ;;  %s88_s18 = sadd.s32 1, %s2379_s13 }
   0x4   : > { %p86_p0 = scmp.eq.s32.totalorder %s85_s17, 0  ;;  %p98_p1 = scmp.ne.s32.totalorder %s2379_s13, %s2375_s12 }
   0x5   : > { %p99_p2 = scmp.eq.s32.totalorder %s2450_s15, 2  ;;  %p1887_p3 = scmp.ge.s32.totalorder %s2383_s14, 1 }
   0x6   : > { %s2460_s19 = scalar_select %p86_p0, %s2379_s13, %s88_s18  }
   0x7   : > { %p2462_p4 = por %p99_p2, %p98_p1  ;;  %p146_p5 = scmp.lt.s32.totalorder %s2383_s14, 4 }
   0x9   : > { %p147_p6 = pnand %p1887_p3, %p146_p5 }
   0xb   : > { %150 = sbr.rel (%p147_p6) target bundleno = 577 (0x241), region = 32 }
  0x12   : > { %v2176_v0 = vld [vmem:[%s3438_s1] sm:$0xff]   ;;  %s2470_s23 = sshll.u32 %s2450_s15, 5  ;;  %v2177_v1 = vld [vmem:[%s3438_s1 + $0x8] sm:$0xff]   ;;  %v2178_v2 = vld [vmem:[%s3438_s1 + $0x10] sm:$0xff]   ;;  %vm1513_vm3 = vcmask 519168   ;;  %s170_s25 = sand.u32 1, %s2375_s12  }
  0x13   : > { %p178_p7 = scmp.lt.s32.totalorder %s2470_s23, 72  ;;  %2024 = vmatprep.subr.bf16.mxu0 %v2176_v0  ;;  %2072 = vmatprep.subr.bf16.mxu1 %v2176_v0  ;;  %v2179_v3 = vld [vmem:[%s3438_s1 + $0x18] sm:$0xff]   ;;  %v2180_v6 = vld [vmem:[%s3438_s1 + $0x20] sm:$0xff]   ;;  %v2181_v7 = vld [vmem:[%s3438_s1 + $0x28] sm:$0xff]   ;;  %s1888_s12 = sshll.u32 %s170_s25, 7 }
  0x14   : > { %2025 = vmatpush3.bf16.msra.mxu0 %v2176_v0  ;;  %2080 = vmatpush3.bf16.msra.mxu1 %v2176_v0  ;;  %v2182_v8 = vld [vmem:[%s3438_s1 + $0x30] sm:$0xff]   ;;  %v2183_v9 = vld [vmem:[%s3438_s1 + $0x38] sm:$0xff]   ;;  %v2519_v24 = vld [vmem:[%s3439_s2] ss:$0 sm:$0xff]  ;;  %s1997_s30 = sshll.u32 (%p2462_p4), %s2450_s15, 7 }
  0x15   : > { %s179_s26 = scalar_select %p178_p7, %s2470_s23, 72  ;;  %2026 = vmatprep.subr.bf16.mxu0 %v2177_v1  ;;  %2073 = vmatprep.subr.bf16.mxu1 %v2177_v1 }
  0x16   : > { %s3309_s6 = scalar_lea.vmem (%p2462_p4), %s3440_s3, %s1997_s30  }
  0x17   : > { %s1890_s29 = sshll.u32 %s179_s26, 2  ;;  %s2741_s26 = scalar_lea.vmem [#allocation2], %s1888_s12  }
  0x18   : > { %s2483_s5 = scalar_lea.vmem %s3437_s0, %s1890_s29  ;;  %2027 = vmatpush3.bf16.msra.mxu0 %v2177_v1  ;;  %2081 = vmatpush3.bf16.msra.mxu1 %v2177_v1  ;;  %s1554_s29 = ssub.s32 (%p2462_p4), 73, %s2470_s23 }
  0x19   : > { %2028 = vmatprep.subr.bf16.mxu0 %v2178_v2  ;;  %2074 = vmatprep.subr.bf16.mxu1 %v2178_v2  ;;  %v2184_v4 = vld [vmem:[%s2483_s5] sm:$0xff]   ;;  %v2186_v10 = vld [vmem:[%s2483_s5 + $0x8] sm:$0xff]   ;;  %v2188_v12 = vld [vmem:[%s2483_s5 + $0x10] sm:$0xff]   ;;  %p1555_p8 = scmp.lt.s32.totalorder (%p2462_p4), %s1554_s29, 32 }
  0x1a   : > { %v2185_v5 = vld [vmem:[%s2483_s5 + $0x40] sm:$0xff]   ;;  %2040 = vmatprep.mubr.bf16.mxu0 %v2184_v4  ;;  %v2187_v11 = vld [vmem:[%s2483_s5 + $0x48] sm:$0xff]   ;;  %v2189_v13 = vld [vmem:[%s2483_s5 + $0x50] sm:$0xff]  }
  0x1b   : > { %2056 = vmatprep.mubr.bf16.mxu1 %v2185_v5  ;;  %v2190_v14 = vld [vmem:[%s2483_s5 + $0x18] sm:$0xff]   ;;  %v2192_v16 = vld [vmem:[%s2483_s5 + $0x20] sm:$0xff]   ;;  %v2194_v18 = vld [vmem:[%s2483_s5 + $0x28] sm:$0xff]  }
  0x1c   : > { %2029 = vmatpush3.bf16.msra.mxu0 %v2178_v2  ;;  %2082 = vmatpush3.bf16.msra.mxu1 %v2178_v2  ;;  %v2191_v15 = vld [vmem:[%s2483_s5 + $0x58] sm:$0xff]   ;;  %v2193_v17 = vld [vmem:[%s2483_s5 + $0x60] sm:$0xff]   ;;  %v2195_v19 = vld [vmem:[%s2483_s5 + $0x68] sm:$0xff]  }
  0x1d   : > { %2030 = vmatprep.subr.bf16.mxu0 %v2179_v3  ;;  %2075 = vmatprep.subr.bf16.mxu1 %v2179_v3  ;;  %v2196_v20 = vld [vmem:[%s2483_s5 + $0x30] sm:$0xff]   ;;  %v2198_v22 = vld [vmem:[%s2483_s5 + $0x38] sm:$0xff]  }
  0x1e   : > { %v2197_v21 = vld [vmem:[%s2483_s5 + $0x70] sm:$0xff]   ;;  %v2199_v23 = vld [vmem:[%s2483_s5 + $0x78] sm:$0xff]  }
  0x20   : > { %2031 = vmatpush3.bf16.msra.mxu0 %v2179_v3  ;;  %2083 = vmatpush3.bf16.msra.mxu1 %v2179_v3 }
  0x21   : > { %2032 = vmatprep.subr.bf16.mxu0 %v2180_v6  ;;  %2076 = vmatprep.subr.bf16.mxu1 %v2180_v6 }
  0x24   : > { %2033 = vmatpush3.bf16.msra.mxu0 %v2180_v6  ;;  %2084 = vmatpush3.bf16.msra.mxu1 %v2180_v6 }
  0x25   : > { %2034 = vmatprep.subr.bf16.mxu0 %v2181_v7  ;;  %2077 = vmatprep.subr.bf16.mxu1 %v2181_v7 }
  0x28   : > { %2035 = vmatpush3.bf16.msra.mxu0 %v2181_v7  ;;  %2085 = vmatpush3.bf16.msra.mxu1 %v2181_v7 }
  0x29   : > { %2036 = vmatprep.subr.bf16.mxu0 %v2182_v8  ;;  %2078 = vmatprep.subr.bf16.mxu1 %v2182_v8 }
  0x2c   : > { %2037 = vmatpush3.bf16.msra.mxu0 %v2182_v8  ;;  %2086 = vmatpush3.bf16.msra.mxu1 %v2182_v8 }
  0x2d   : > { %2038 = vmatprep.subr.bf16.mxu0 %v2183_v9  ;;  %2079 = vmatprep.subr.bf16.mxu1 %v2183_v9 }
  0x30   : > { %2039 = vmatpush3.bf16.msra.mxu0 %v2183_v9  ;;  %2087 = vmatpush3.bf16.msra.mxu1 %v2183_v9 }
  0x33   : > { %2041 = vmatmul.mubr.bf16.vlgmr.msra.gmra.mrb[0].mxu0 %v2186_v10  ;;  %2057 = vmatmul.mubr.bf16.vlgmr.msra.gmra.mrb[0].mxu1 %v2187_v11 }
  0x34   : > { %2044 = vmatprep.mubr.bf16.mxu0 %v2188_v12  ;;  %2060 = vmatprep.mubr.bf16.mxu1 %v2189_v13 }
  0x3b   : > { %2045 = vmatmul.mubr.bf16.gmra.mrb[4].mxu0 %v2190_v14  ;;  %2061 = vmatmul.mubr.bf16.gmra.mrb[4].mxu1 %v2191_v15 }
  0x3c   : > { %2048 = vmatprep.mubr.bf16.mxu0 %v2192_v16  ;;  %2064 = vmatprep.mubr.bf16.mxu1 %v2193_v17 }
  0x43   : > { %2049 = vmatmul.mubr.bf16.gmra.mrb[8].mxu0 %v2194_v18  ;;  %2065 = vmatmul.mubr.bf16.gmra.mrb[8].mxu1 %v2195_v19 }
  0x44   : > { %2052 = vmatprep.mubr.bf16.mxu0 %v2196_v20  ;;  %2068 = vmatprep.mubr.bf16.mxu1 %v2197_v21 }
  0x4b   : > { %2053 = vmatmul.mubr.bf16.gmra.mrb[12].mxu0 %v2198_v22  ;;  %2069 = vmatmul.mubr.bf16.gmra.mrb[12].mxu1 %v2199_v23 }
 0x106   : > { %v2042_v25 = vpop.f32.mrb[0].mxu0  ;;  %v2058_v26 = vpop.f32.mrb[0].mxu1 }
 0x107   : > { %v435_v27 = vadd.f32 %v2042_v25, %v2519_v24  ;;  %v499_v28 = vadd.f32 %v2058_v26, %v2519_v24  ;;  %v426_v29 = vpop.f32.mrb[1].mxu0  ;;  %v490_v30 = vpop.f32.mrb[1].mxu1 }
 0x108   : > { %v2524_v31 = vadd.f32 %v2519_v24, %v426_v29  ;;  %v2527_v32 = vadd.f32 %v2519_v24, %v490_v30  ;;  %v2043_v33 = vpop.f32.mrb[2].mxu0  ;;  %v2059_v34 = vpop.f32.mrb[2].mxu1 }
 0x109   : > { %v2529_v35 = vmul.f32 0.70710677, %v435_v27  ;;  %v2531_v36 = vmul.f32 0.70710677, %v499_v28  ;;  %v429_v54 = vpop.f32.mrb[3].mxu0  ;;  %v493_v55 = vpop.f32.mrb[3].mxu1  ;;  %v2548_v62 = vadd.f32 %v2043_v33, %v2519_v24  ;;  %v2555_v2 = vadd.f32 %v2059_v34, %v2519_v24 }
 0x10a   : > { %v2534_v37 = vmul.f32 0.70710677, %v2524_v31  ;;  %v2537_v38 = vmul.f32 0.70710677, %v2527_v32  ;;  %v2565_v7 = vadd.f32 %v2519_v24, %v429_v54  ;;  %v2576_v15 = vadd.f32 %v2519_v24, %v493_v55 }
 0x10b   : > { %v619_v39 = vand.u32 2147483647, %v2529_v35  ;;  %v635_v40 = vand.u32 2147483647, %v2531_v36  ;;  %v2562_v6 = vmul.f32 0.70710677, %v2548_v62 }
 0x10c   : > { %v617_v41 = vand.u32 2147483647, %v2534_v37  ;;  %v633_v42 = vand.u32 2147483647, %v2537_v38  ;;  %v2572_v12 = vmul.f32 0.70710677, %v2555_v2 }
 0x10d   : > { %v651_v43 = vmul.f32 0.3275911, %v619_v39  ;;  %v1035_v44 = vsub.f32 0.0, %v619_v39  ;;  %v667_v45 = vmul.f32 0.3275911, %v635_v40  ;;  %v1051_v46 = vsub.f32 0.0, %v635_v40 }
 0x10e   : > { %v649_v47 = vmul.f32 0.3275911, %v617_v41  ;;  %v1033_v48 = vsub.f32 0.0, %v617_v41  ;;  %v1049_v49 = vsub.f32 0.0, %v633_v42  ;;  %v665_v53 = vmul.f32 0.3275911, %v633_v42 }
 0x10f   : > { %v683_v50 = vadd.f32 1.0, %v651_v43  ;;  %v1067_v51 = vmul.f32 %v1035_v44, %v619_v39  ;;  %v699_v52 = vadd.f32 1.0, %v667_v45  ;;  %v1083_v56 = vmul.f32 %v1051_v46, %v635_v40  ;;  %v2543_v58 = vpop.f32.mrb[4].mxu0  ;;  %v2545_v59 = vpop.f32.mrb[4].mxu1 }
 0x110   : > { %v1065_v57 = vmul.f32 %v1033_v48, %v617_v41  ;;  %v681_v60 = vadd.f32 1.0, %v649_v47  ;;  %v1081_v61 = vmul.f32 %v1049_v49, %v633_v42  ;;  %v2550_v63 = vpop.f32.mrb[5].mxu0  ;;  %v2552_v0 = vpop.f32.mrb[5].mxu1  ;;  %v697_v5 = vadd.f32 1.0, %v665_v53 }
 0x111   : > { %2200 = vrcp.f32 %v683_v50  ;;  %v1101_v1 = vmul.f32 1.442695, %v1067_v51  ;;  %v2557_v3 = vpop.f32.mrb[6].mxu0  ;;  %v2559_v4 = vpop.f32.mrb[6].mxu1  ;;  %v1133_v10 = vmul.f32 1.442695, %v1083_v56 }
 0x112   : > { %2202 = vrcp.f32 %v699_v52  ;;  %v2567_v8 = vpop.f32.mrb[7].mxu0  ;;  %v2569_v9 = vpop.f32.mrb[7].mxu1  ;;  %v1097_v11 = vmul.f32 1.442695, %v1065_v57  ;;  %v1129_v13 = vmul.f32 1.442695, %v1081_v61 }
 0x113   : > { %2204 = vrcp.f32 %v681_v60  ;;  %v620_v14 = vand.u32 2147483647, %v2562_v6  ;;  %v2578_v16 = vmul.f32 0.5, %v435_v27  ;;  %v636_v17 = vand.u32 2147483647, %v2572_v12 }
 0x114   : > { %2206 = vpow2.f32 %v1101_v1  ;;  %v2582_v18 = vmul.f32 0.70710677, %v2565_v7  ;;  %v2586_v20 = vmul.f32 0.5, %v499_v28  ;;  %v2596_v28 = vmul.f32 0.70710677, %v2576_v15 }
 0x115   : > { %2208 = vrcp.f32 %v697_v5  ;;  %v652_v21 = vmul.f32 0.3275911, %v620_v14  ;;  %v1036_v22 = vsub.f32 0.0, %v620_v14  ;;  %v668_v26 = vmul.f32 0.3275911, %v636_v17 }
 0x116   : > { %v2584_v19 = vpop.f32.mrb[8].mxu0  ;;  %v2588_v23 = vpop.f32.mrb[8].mxu1  ;;  %2210 = vpow2.f32 %v1133_v10  ;;  %v1052_v27 = vsub.f32 0.0, %v636_v17  ;;  %v618_v29 = vand.u32 2147483647, %v2582_v18  ;;  %v2609_v48 = vmul.f32 0.5, %v2524_v31 }
 0x117   : > { %v2590_v25 = vpop.f32.mrb[9].mxu0  ;;  %v2593_v30 = vpop.f32.mrb[9].mxu1  ;;  %2212 = vpow2.f32 %v1097_v11  ;;  %v684_v33 = vadd.f32 1.0, %v652_v21  ;;  %v1068_v34 = vmul.f32 %v1036_v22, %v620_v14  ;;  %v700_v41 = vadd.f32 1.0, %v668_v26 }
 0x118   : > { %v2598_v39 = vpop.f32.mrb[10].mxu0  ;;  %v2600_v40 = vpop.f32.mrb[10].mxu1  ;;  %v1084_v42 = vmul.f32 %v1052_v27, %v636_v17  ;;  %v650_v43 = vmul.f32 0.3275911, %v618_v29  ;;  %v1034_v44 = vsub.f32 0.0, %v618_v29  ;;  %v2612_v49 = vmul.f32 0.5, %v2527_v32 }
 0x119   : > { %3442 = vst [vmem:[#allocation3_spill] sm:$0xff] %v2598_v39  ;;  %3443 = vst [vmem:[#allocation4_spill] sm:$0xff] %v2600_v40  ;;  %v2602_v45 = vpop.f32.mrb[11].mxu0  ;;  %v2604_v46 = vpop.f32.mrb[11].mxu1  ;;  %2214 = vrcp.f32 %v684_v33  ;;  %v634_v50 = vand.u32 2147483647, %v2596_v28  ;;  %v2621_v32 = vadd.f32 %v2543_v58, %v2519_v24 }
 0x11a   : > { %3444 = vst [vmem:[#allocation5_spill] sm:$0xff] %v2602_v45  ;;  %3445 = vst [vmem:[#allocation6_spill] sm:$0xff] %v2604_v46  ;;  %v1103_v53 = vmul.f32 1.442695, %v1068_v34  ;;  %2216 = vrcp.f32 %v700_v41  ;;  %v682_v54 = vadd.f32 1.0, %v650_v43  ;;  %v1066_v57 = vmul.f32 %v1034_v44, %v618_v29 }
 0x11b   : > { %v2606_v47 = vpop.eup %2200  ;;  %v1135_v56 = vmul.f32 1.442695, %v1084_v42  ;;  %v666_v60 = vmul.f32 0.3275911, %v634_v50  ;;  %2218 = vpow2.f32 %v1129_v13  ;;  %v1050_v61 = vsub.f32 0.0, %v634_v50 }
 0x11c   : > { %v2615_v51 = vpop.eup %2202  ;;  %v747_v52 = vmul.f32 1.0614054, %v2606_v47  ;;  %2220 = vrcp.f32 %v682_v54  ;;  %v1099_v14 = vmul.f32 1.442695, %v1066_v57  ;;  %v2634_v26 = vmul.f32 0.5, %v2548_v62 }
 0x11d   : > { %v763_v55 = vmul.f32 1.0614054, %v2615_v51  ;;  %v2627_v10 = vpop.eup %2204  ;;  %v698_v17 = vadd.f32 1.0, %v666_v60  ;;  %2222 = vpow2.f32 %v1103_v53  ;;  %v1082_v29 = vmul.f32 %v1050_v61, %v634_v50 }
 0x11e   : > { %v779_v31 = vadd.f32 -1.4531521, %v747_v52  ;;  %v2623_v1 = vpop.f32.mrb[12].mxu0  ;;  %v2625_v5 = vpop.f32.mrb[12].mxu1  ;;  %v745_v13 = vmul.f32 1.0614054, %v2627_v10  ;;  %2224 = vpow2.f32 %v1135_v56  ;;  %v2655_v56 = vadd.f32 %v2545_v59, %v2519_v24 }
 0x11f   : > { %3446 = vst [vmem:[#allocation7_spill] sm:$0xff] %v2623_v1  ;;  %3447 = vst [vmem:[#allocation8_spill] sm:$0xff] %v2625_v5  ;;  %v795_v11 = vadd.f32 -1.4531521, %v763_v55  ;;  %v2629_v21 = vpop.eup %2206  ;;  %v2640_v33 = vmul.f32 0.70710677, %v2621_v32  ;;  %2226 = vrcp.f32 %v698_v17 }
 0x120   : > { %v811_v22 = vmul.f32 %v2606_v47, %v779_v31  ;;  %v2636_v58 = vpop.eup %2208  ;;  %v777_v42 = vadd.f32 -1.4531521, %v745_v13  ;;  %v2648_v52 = vmul.f32 0.5, %v2555_v2  ;;  %2228 = vpow2.f32 %v1099_v14  ;;  %v2657_v57 = vpop.f32.mrb[13].mxu0 }
 0x121   : > { %v827_v27 = vmul.f32 %v2615_v51, %v795_v11  ;;  %v2642_v34 = vpop.eup %2210  ;;  %v761_v43 = vmul.f32 1.0614054, %v2636_v58  ;;  %v623_v53 = vand.u32 2147483647, %v2640_v33  ;;  %3448 = vst [vmem:[#allocation9_spill] sm:$0xff] %v2657_v57  ;;  %vm1227_vm0 = vcmp.ge.f32.partialorder %v2529_v35, 0.0 }
 0x122   : > { %v843_v41 = vadd.f32 1.4214138, %v811_v22  ;;  %v2645_v44 = vpop.eup %2212  ;;  %v809_v54 = vmul.f32 %v2627_v10, %v777_v42  ;;  %v1131_v2 = vmul.f32 1.442695, %v1082_v29  ;;  %vm1243_vm1 = vcmp.ge.f32.partialorder %v2531_v36, 0.0 }
 0x123   : > { %v859_v62 = vadd.f32 1.4214138, %v827_v27  ;;  %v793_v55 = vadd.f32 -1.4531521, %v761_v43  ;;  %v2659_v60 = vpop.eup %2214  ;;  %v655_v61 = vmul.f32 0.3275911, %v623_v53  ;;  %v2669_v43 = vadd.f32 %v2519_v24, %v2550_v63 }
 0x124   : > { %v875_v50 = vmul.f32 %v2606_v47, %v843_v41  ;;  %v1039_v11 = vsub.f32 0.0, %v623_v53  ;;  %v2662_v14 = vpop.eup %2216  ;;  %v841_v22 = vadd.f32 1.4214138, %v809_v54  ;;  %v748_v27 = vmul.f32 1.0614054, %v2659_v60 }
 0x125   : > { %v891_v31 = vmul.f32 %v2615_v51, %v859_v62  ;;  %v825_v13 = vmul.f32 %v2636_v58, %v793_v55  ;;  %v764_v59 = vmul.f32 1.0614054, %v2662_v14  ;;  %v687_v42 = vadd.f32 1.0, %v655_v61  ;;  %v2671_v62 = vpop.eup %2218 }
 0x126   : > { %v907_v17 = vadd.f32 -0.28449672, %v875_v50  ;;  %v873_v57 = vmul.f32 %v2627_v10, %v841_v22  ;;  %v780_v54 = vadd.f32 -1.4531521, %v748_v27  ;;  %v2675_v5 = vpop.eup %2220  ;;  %2230 = vpow2.f32 %v1131_v2 }
 0x127   : > { %v923_v41 = vadd.f32 -0.28449672, %v891_v31  ;;  %v857_v50 = vadd.f32 1.4214138, %v825_v13  ;;  %v796_v31 = vadd.f32 -1.4531521, %v764_v59  ;;  %v2678_v1 = vmul.f32 %v1039_v11, %v623_v53  ;;  %v2680_v61 = vpop.eup %2222 }
 0x128   : > { %v939_v29 = vmul.f32 %v2606_v47, %v907_v17  ;;  %v905_v46 = vadd.f32 -0.28449672, %v873_v57  ;;  %v812_v17 = vmul.f32 %v2659_v60, %v780_v54  ;;  %v2684_v40 = vpop.eup %2224  ;;  %v746_v27 = vmul.f32 1.0614054, %v2675_v5 }
 0x129   : > { %v955_v55 = vmul.f32 %v2615_v51, %v923_v41  ;;  %v889_v45 = vmul.f32 %v2636_v58, %v857_v50  ;;  %v828_v13 = vmul.f32 %v2662_v14, %v796_v31  ;;  %2232 = vrcp.f32 %v687_v42  ;;  %v2689_v53 = vpop.eup %2226 }
 0x12a   : > { %v971_v63 = vadd.f32 0.2548296, %v939_v29  ;;  %v937_v57 = vmul.f32 %v2627_v10, %v905_v46  ;;  %v844_v41 = vadd.f32 1.4214138, %v812_v17  ;;  %v2694_v59 = vpop.eup %2228  ;;  %v778_v54 = vadd.f32 -1.4531521, %v746_v27 }
 0x12b   : > { %v987_v22 = vadd.f32 0.2548296, %v955_v55  ;;  %v921_v11 = vadd.f32 -0.28449672, %v889_v45  ;;  %v860_v50 = vadd.f32 1.4214138, %v828_v13 }
 0x12c   : > { %v1003_v2 = vmul.f32 %v2606_v47, %v971_v63  ;;  %v762_v55 = vmul.f32 1.0614054, %v2689_v53  ;;  %v969_v31 = vadd.f32 0.2548296, %v937_v57  ;;  %v876_v47 = vmul.f32 %v2659_v60, %v844_v41  ;;  %v2705_v17 = vpop.f32.mrb[13].mxu1 }
 0x12d   : > { %v1019_v29 = vmul.f32 %v2615_v51, %v987_v22  ;;  %v953_v39 = vmul.f32 %v2636_v58, %v921_v11  ;;  %vm1225_vm2 = vcmp.ge.f32.partialorder %v2534_v37, 0.0  ;;  %v892_v45 = vmul.f32 %v2662_v14, %v860_v50 }
 0x12e   : > { %v1163_v42 = vmul.f32 %v2629_v21, %v1003_v2  ;;  %v810_v46 = vmul.f32 %v2675_v5, %v778_v54  ;;  %v794_v51 = vadd.f32 -1.4531521, %v762_v55  ;;  %v1001_v21 = vmul.f32 %v2627_v10, %v969_v31 }
 0x12f   : > { %v1179_v63 = vmul.f32 %v2642_v34, %v1019_v29  ;;  %v985_v13 = vadd.f32 0.2548296, %v953_v39  ;;  %v908_v27 = vadd.f32 -0.28449672, %v876_v47  ;;  %vm1241_vm4 = vcmp.ge.f32.partialorder %v2537_v38, 0.0 }
 0x130   : > { %v1195_v22 = vsub.f32 1.0, %v1163_v42  ;;  %v924_v34 = vadd.f32 -0.28449672, %v892_v45  ;;  %v842_v57 = vadd.f32 1.4214138, %v810_v46  ;;  %v826_v11 = vmul.f32 %v2689_v53, %v794_v51  ;;  %v2714_v55 = vpop.eup %2230 }
 0x131   : > { %v1211_v2 = vsub.f32 1.0, %v1179_v63  ;;  %v1161_v29 = vmul.f32 %v2645_v44, %v1001_v21  ;;  %v1017_v50 = vmul.f32 %v2636_v58, %v985_v13  ;;  %v940_v54 = vmul.f32 %v2659_v60, %v908_v27 }
 0x132   : > { %v1259_v41 = vsub.f32 0.0, %v1195_v22  ;;  %v956_v39 = vmul.f32 %v2662_v14, %v924_v34  ;;  %v874_v42 = vmul.f32 %v2675_v5, %v842_v57  ;;  %v858_v31 = vadd.f32 1.4214138, %v826_v11 }
 0x133   : > { %v1275_v10 = vsub.f32 0.0, %v1211_v2  ;;  %v1193_v63 = vsub.f32 1.0, %v1161_v29  ;;  %v1177_v45 = vmul.f32 %v2671_v62, %v1017_v50  ;;  %v972_v46 = vadd.f32 0.2548296, %v940_v54  ;;  %v2721_v44 = vpop.eup %2232 }
 0x134   : > { %v1291_v47 = vsel %vm1227_vm0, %v1195_v22, %v1259_v41  ;;  %vm1228_vm5 = vcmp.ge.f32.partialorder %v2562_v6, 0.0  ;;  %v988_v21 = vadd.f32 0.2548296, %v956_v39  ;;  %v906_v13 = vadd.f32 -0.28449672, %v874_v42 }
 0x135   : > { %v1323_v58 = vadd.f32 1.0, %v1291_v47  ;;  %v1307_v51 = vsel %vm1243_vm1, %v1211_v2, %v1275_v10  ;;  %v1257_v34 = vsub.f32 0.0, %v1193_v63  ;;  %v1209_v57 = vsub.f32 1.0, %v1177_v45  ;;  %v2732_v2 = vpop.f32.mrb[14].mxu0 }
 0x136   : > { %v1339_v27 = vadd.f32 1.0, %v1307_v51  ;;  %v1004_v35 = vmul.f32 %v2659_v60, %v972_v46  ;;  %vm1244_vm6 = vcmp.ge.f32.partialorder %v2572_v12, 0.0  ;;  %v1020_v22 = vmul.f32 %v2662_v14, %v988_v21 }
 0x137   : > { %v1355_v62 = vmul.f32 %v1323_v58, %v2578_v16  ;;  %v938_v11 = vmul.f32 %v2675_v5, %v906_v13  ;;  %v890_v36 = vmul.f32 %v2689_v53, %v858_v31  ;;  %v1289_v29 = vsel %vm1225_vm2, %v1193_v63, %v1257_v34  ;;  %v2747_v63 = vpop.f32.mrb[14].mxu1 }
 0x138   : > { %v1371_v41 = vmul.f32 %v1339_v27, %v2586_v20  ;;  %v1273_v50 = vsub.f32 0.0, %v1209_v57  ;;  %v1164_v60 = vmul.f32 %v2680_v61, %v1004_v35  ;;  %v1321_v10 = vadd.f32 1.0, %v1289_v29 }
 0x139   : > { %v1967_v54 = vpack.c.bf16 %v1355_v62, %v1355_v62  ;;  %v1180_v16 = vmul.f32 %v2684_v40, %v1020_v22  ;;  %v970_v39 = vadd.f32 0.2548296, %v938_v11  ;;  %v922_v47 = vadd.f32 -0.28449672, %v890_v36  ;;  %v2768_v36 = vpop.f32.mrb[15].mxu0 }
 0x13a   : > { %v1983_v14 = vpack.c.bf16 %v1371_v41, %v1371_v41  ;;  %v1305_v42 = vsel %vm1241_vm4, %v1209_v57, %v1273_v50  ;;  %v1196_v31 = vsub.f32 1.0, %v1164_v60  ;;  %v1353_v37 = vmul.f32 %v1321_v10, %v2609_v48 }
 0x13b   : > { %1516 = vst.msk [vmem:[%s2741_s26 + $0x8] sm:$0xf] %vm1513_vm3, %v1967_v54  ;;  %v1337_v20 = vadd.f32 1.0, %v1305_v42  ;;  %v1212_v61 = vsub.f32 1.0, %v1180_v16  ;;  %v1002_v40 = vmul.f32 %v2675_v5, %v970_v39  ;;  %v954_v45 = vmul.f32 %v2689_v53, %v922_v47 }
 0x13c   : > { %1532 = vst.msk [vmem:[%s2741_s26 + $0x48] sm:$0xf] %vm1513_vm3, %v1983_v14  ;;  %v1260_v38 = vsub.f32 0.0, %v1196_v31  ;;  %v751_v46 = vmul.f32 1.0614054, %v2721_v44  ;;  %v1965_v51 = vpack.c.bf16 %v1353_v37, %v1353_v37  ;;  %v554_v29 = vmul.f32 0.5, %v2565_v7 }
 0x13d   : > { %v1109_v58 = vmul.f32 1.442695, %v2678_v1  ;;  %v1369_v21 = vmul.f32 %v1337_v20, %v2612_v49  ;;  %v1276_v48 = vsub.f32 0.0, %v1212_v61  ;;  %v1162_v13 = vmul.f32 %v2694_v59, %v1002_v40 }
 0x13e   : > { %v1292_v5 = vsel %vm1228_vm5, %v1196_v31, %v1260_v38  ;;  %v986_v27 = vadd.f32 0.2548296, %v954_v45  ;;  %v783_v34 = vadd.f32 -1.4531521, %v751_v46  ;;  %v2759_v57 = vmul.f32 0.70710677, %v2655_v56 }
 0x13f   : > { %1514 = vst.msk [vmem:[%s2741_s26] sm:$0xf] %vm1513_vm3, %v1965_v51  ;;  %v1981_v35 = vpack.c.bf16 %v1369_v21, %v1369_v21  ;;  %v1324_v62 = vadd.f32 1.0, %v1292_v5  ;;  %v1308_v1 = vsel %vm1244_vm6, %v1212_v61, %v1276_v48  ;;  %v1194_v49 = vsub.f32 1.0, %v1162_v13  ;;  %v2784_v31 = vpop.f32.mrb[15].mxu1 }
 0x140   : > { %v1340_v22 = vadd.f32 1.0, %v1308_v1  ;;  %v1018_v11 = vmul.f32 %v2689_v53, %v986_v27  ;;  %v815_v59 = vmul.f32 %v2721_v44, %v783_v34  ;;  %v639_v6 = vand.u32 2147483647, %v2759_v57 }
 0x141   : > { %1530 = vst.msk [vmem:[%s2741_s26 + $0x40] sm:$0xf] %vm1513_vm3, %v1981_v35  ;;  %v1356_v41 = vmul.f32 %v1324_v62, %v2634_v26  ;;  %vm1226_vm7 = vcmp.ge.f32.partialorder %v2582_v18, 0.0  ;;  %v1258_v12 = vsub.f32 0.0, %v1194_v49  ;;  %2234 = vpow2.f32 %v1109_v58 }
 0x142   : > { %v1372_v50 = vmul.f32 %v1340_v22, %v2648_v52  ;;  %v1178_v53 = vmul.f32 %v2714_v55, %v1018_v11  ;;  %v847_v60 = vadd.f32 1.4214138, %v815_v59  ;;  %v671_v54 = vmul.f32 0.3275911, %v639_v6 }
 0x143   : > { %v1968_v10 = vpack.c.bf16 %v1356_v41, %v1356_v41  ;;  %v1290_v16 = vsel %vm1226_vm7, %v1194_v49, %v1258_v12  ;;  %v2778_v39 = vmul.f32 0.70710677, %v2669_v43  ;;  %v2790_v20 = vadd.f32 %v2519_v24, %v2552_v0 }
 0x144   : > { %v1984_v26 = vpack.c.bf16 %v1372_v50, %v1372_v50  ;;  %v1322_v14 = vadd.f32 1.0, %v1290_v16  ;;  %v1210_v42 = vsub.f32 1.0, %v1178_v53  ;;  %v879_v7 = vmul.f32 %v2721_v44, %v847_v60 }
 0x145   : > { %1517 = vst.msk [vmem:[%s2741_s26 + $0xc] sm:$0xf] %vm1513_vm3, %v1968_v10  ;;  %v703_v18 = vadd.f32 1.0, %v671_v54  ;;  %v621_v52 = vand.u32 2147483647, %v2778_v39  ;;  %vm1242_vm8 = vcmp.ge.f32.partialorder %v2596_v28, 0.0  ;;  %v2802_v28 = vadd.f32 %v2557_v3, %v2519_v24 }
 0x146   : > { %1533 = vst.msk [vmem:[%s2741_s26 + $0x4c] sm:$0xf] %vm1513_vm3, %v1984_v26  ;;  %v1354_v55 = vmul.f32 %v1322_v14, %v554_v29  ;;  %v1274_v47 = vsub.f32 0.0, %v1210_v42  ;;  %v911_v37 = vadd.f32 -0.28449672, %v879_v7  ;;  %v570_v46 = vmul.f32 0.5, %v2576_v15 }
 0x147   : > { %2236 = vrcp.f32 %v703_v18  ;;  %v653_v61 = vmul.f32 0.3275911, %v621_v52  ;;  %v1055_v51 = vsub.f32 0.0, %v639_v6  ;;  %v2798_v0 = vmul.f32 0.70710677, %v2790_v20 }
 0x148   : > { %v1966_v40 = vpack.c.bf16 %v1354_v55, %v1354_v55  ;;  %v1306_v38 = vsel %vm1242_vm8, %v1210_v42, %v1274_v47  ;;  %v943_v45 = vmul.f32 %v2721_v44, %v911_v37  ;;  %v2806_v13 = vadd.f32 %v2559_v4, %v2519_v24 }
 0x149   : > { %v1338_v58 = vadd.f32 1.0, %v1306_v38  ;;  %v685_v21 = vadd.f32 1.0, %v653_v61  ;;  %v2810_v15 = vadd.f32 %v2519_v24, %v2567_v8  ;;  %v637_v34 = vand.u32 2147483647, %v2798_v0 }
 0x14a   : > { %1515 = vst.msk [vmem:[%s2741_s26 + $0x4] sm:$0xf] %vm1513_vm3, %v1966_v40  ;;  %v975_v48 = vadd.f32 0.2548296, %v943_v45  ;;  %v2815_v1 = vmul.f32 0.70710677, %v2802_v28  ;;  %v1087_v49 = vmul.f32 %v1055_v51, %v639_v6 }
 0x14b   : > { %v1370_v5 = vmul.f32 %v1338_v58, %v570_v46  ;;  %2238 = vrcp.f32 %v685_v21  ;;  %v2235_v35 = vpop.eup %2234  ;;  %v669_v22 = vmul.f32 0.3275911, %v637_v34  ;;  %v2818_v4 = vmul.f32 0.70710677, %v2806_v13 }
 0x14c   : > { %v1007_v27 = vmul.f32 %v2721_v44, %v975_v48  ;;  %v1037_v11 = vsub.f32 0.0, %v621_v52  ;;  %v624_v8 = vand.u32 2147483647, %v2815_v1  ;;  %v2824_v44 = vmul.f32 0.70710677, %v2810_v15 }
 0x14d   : > { %v1982_v62 = vpack.c.bf16 %v1370_v5, %v1370_v5  ;;  %v559_v59 = vmul.f32 0.5, %v2621_v32  ;;  %v701_v29 = vadd.f32 1.0, %v669_v22  ;;  %v640_v12 = vand.u32 2147483647, %v2818_v4 }
 0x14e   : > { %v1167_v3 = vmul.f32 %v2235_v35, %v1007_v27  ;;  %vm1231_vm9 = vcmp.ge.f32.partialorder %v2640_v33, 0.0  ;;  %v2832_v6 = vmul.f32 0.5, %v2655_v56  ;;  %v656_v53 = vmul.f32 0.3275911, %v624_v8 }
 0x14f   : > { %1531 = vst.msk [vmem:[%s2741_s26 + $0x44] sm:$0xf] %vm1513_vm3, %v1982_v62  ;;  %v622_v60 = vand.u32 2147483647, %v2824_v44  ;;  %v1141_v16 = vmul.f32 1.442695, %v1087_v49  ;;  %2240 = vrcp.f32 %v701_v29  ;;  %v1069_v32 = vmul.f32 %v1037_v11, %v621_v52 }
 0x150   : > { %v1199_v41 = vsub.f32 1.0, %v1167_v3  ;;  %v1053_v26 = vsub.f32 0.0, %v637_v34  ;;  %v688_v14 = vadd.f32 1.0, %v656_v53  ;;  %v672_v42 = vmul.f32 0.3275911, %v640_v12 }
 0x151   : > { %v2828_v50 = vpop.eup %2236  ;;  %v1040_v55 = vsub.f32 0.0, %v624_v8  ;;  %v654_v47 = vmul.f32 0.3275911, %v622_v60  ;;  %v2839_v37 = vmul.f32 0.5, %v2669_v43  ;;  %v1056_v52 = vsub.f32 0.0, %v640_v12 }
 0x152   : > { %v1263_v54 = vsub.f32 0.0, %v1199_v41  ;;  %v767_v10 = vmul.f32 1.0614054, %v2828_v50  ;;  %2242 = vrcp.f32 %v688_v14  ;;  %v704_v61 = vadd.f32 1.0, %v672_v42 }
 0x153   : > { %v686_v45 = vadd.f32 1.0, %v654_v47  ;;  %2244 = vpow2.f32 %v1141_v16  ;;  %v1105_v58 = vmul.f32 1.442695, %v1069_v32  ;;  %v1085_v51 = vmul.f32 %v1053_v26, %v637_v34 }
 0x154   : > { %v1295_v7 = vsel %vm1231_vm9, %v1199_v41, %v1263_v54  ;;  %v799_v18 = vadd.f32 -1.4531521, %v767_v10  ;;  %v1072_v5 = vmul.f32 %v1040_v55, %v624_v8  ;;  %2246 = vrcp.f32 %v704_v61 }
 0x155   : > { %v2836_v33 = vpop.eup %2238  ;;  %v1327_v56 = vadd.f32 1.0, %v1295_v7  ;;  %2248 = vrcp.f32 %v686_v45  ;;  %v1038_v43 = vsub.f32 0.0, %v622_v60  ;;  %v2845_v35 = vadd.f32 %v2519_v24, %v2569_v9 }
 0x156   : > { %v831_v40 = vmul.f32 %v2828_v50, %v799_v18  ;;  %v749_v38 = vmul.f32 1.0614054, %v2836_v33  ;;  %v1088_v49 = vmul.f32 %v1056_v52, %v640_v12  ;;  %v2851_v22 = vadd.f32 %v2584_v19, %v2519_v24 }
 0x157   : > { %v1359_v46 = vmul.f32 %v1327_v56, %v559_v59  ;;  %v2856_v34 = vmul.f32 0.5, %v2790_v20  ;;  %v1137_v11 = vmul.f32 1.442695, %v1085_v51  ;;  %v2859_v8 = vmul.f32 0.5, %v2802_v28 }
 0x158   : > { %v863_v21 = vadd.f32 1.4214138, %v831_v40  ;;  %v781_v48 = vadd.f32 -1.4531521, %v749_v38  ;;  %v2862_v9 = vmul.f32 0.70710677, %v2845_v35  ;;  %2250 = vpow2.f32 %v1105_v58 }
 0x159   : > { %v1971_v27 = vpack.c.bf16 %v1359_v46, %v1359_v46  ;;  %v2864_v59 = vpop.eup %2240  ;;  %v1111_v12 = vmul.f32 1.442695, %v1072_v5  ;;  %v2868_v53 = vmul.f32 0.5, %v2806_v13  ;;  %v1070_v20 = vmul.f32 %v1038_v43, %v622_v60 }
 0x15a   : > { %v895_v62 = vmul.f32 %v2828_v50, %v863_v21  ;;  %v813_v3 = vmul.f32 %v2836_v33, %v781_v48  ;;  %v765_v19 = vmul.f32 1.0614054, %v2864_v59  ;;  %v2871_v54 = vand.u32 2147483647, %v2862_v9 }
 0x15b   : > { %1520 = vst.msk [vmem:[%s2741_s26 + $0x18] sm:$0xf] %vm1513_vm3, %v1971_v27  ;;  %v1143_v16 = vmul.f32 1.442695, %v1088_v49  ;;  %v2876_v32 = vmul.f32 0.70710677, %v2851_v22  ;;  %2252 = vpow2.f32 %v1137_v11  ;;  %v2899_v21 = vadd.f32 %v2588_v23, %v2519_v24 }
 0x15c   : > { %v927_v41 = vadd.f32 -0.28449672, %v895_v62  ;;  %v845_v29 = vadd.f32 1.4214138, %v813_v3  ;;  %v2878_v26 = vpop.eup %2242  ;;  %v797_v14 = vadd.f32 -1.4531521, %v765_v19  ;;  %2254 = vpow2.f32 %v1111_v12 }
 0x15d   : > { %v2881_v42 = vmul.f32 0.5, %v2810_v15  ;;  %v670_v13 = vmul.f32 0.3275911, %v2871_v54  ;;  %v752_v18 = vmul.f32 1.0614054, %v2878_v26  ;;  %v2245_v55 = vpop.eup %2244  ;;  %vm1247_vm10 = vcmp.ge.f32.partialorder %v2759_v57, 0.0 }
 0x15e   : > { %v959_v28 = vmul.f32 %v2828_v50, %v927_v41  ;;  %v877_v10 = vmul.f32 %v2836_v33, %v845_v29  ;;  %v829_v47 = vmul.f32 %v2864_v59, %v797_v14  ;;  %v1107_v56 = vmul.f32 1.442695, %v1070_v20  ;;  %v2890_v38 = vpop.eup %2246 }
 0x15f   : > { %v702_v61 = vadd.f32 1.0, %v670_v13  ;;  %v2888_v40 = vand.u32 2147483647, %v2876_v32  ;;  %v784_v45 = vadd.f32 -1.4531521, %v752_v18  ;;  %2256 = vpow2.f32 %v1143_v16  ;;  %v2894_v46 = vpop.eup %2248 }
 0x160   : > { %v991_v60 = vadd.f32 0.2548296, %v959_v28  ;;  %v909_v7 = vadd.f32 -0.28449672, %v877_v10  ;;  %v861_v58 = vadd.f32 1.4214138, %v829_v47 }
 0x161   : > { %v768_v51 = vmul.f32 1.0614054, %v2890_v38  ;;  %2258 = vrcp.f32 %v702_v61  ;;  %v816_v27 = vmul.f32 %v2878_v26, %v784_v45  ;;  %vm1229_vm11 = vcmp.ge.f32.partialorder %v2778_v39, 0.0 }
 0x162   : > { %v1023_v15 = vmul.f32 %v2828_v50, %v991_v60  ;;  %v941_v52 = vmul.f32 %v2836_v33, %v909_v7  ;;  %v750_v50 = vmul.f32 1.0614054, %v2894_v46  ;;  %v893_v43 = vmul.f32 %v2864_v59, %v861_v58  ;;  %v2251_v49 = vpop.eup %2250 }
 0x163   : > { %v800_v62 = vadd.f32 -1.4531521, %v768_v51  ;;  %2260 = vpow2.f32 %v1107_v56  ;;  %v659_v3 = vmul.f32 0.3275911, %v2888_v40  ;;  %v848_v23 = vadd.f32 1.4214138, %v816_v27 }
 0x164   : > { %v1183_v48 = vmul.f32 %v2245_v55, %v1023_v15  ;;  %v973_v5 = vadd.f32 0.2548296, %v941_v52  ;;  %v782_v29 = vadd.f32 -1.4531521, %v750_v50  ;;  %v925_v12 = vadd.f32 -0.28449672, %v893_v43 }
 0x165   : > { %v832_v19 = vmul.f32 %v2890_v38, %v800_v62  ;;  %v1054_v20 = vsub.f32 0.0, %v2871_v54  ;;  %v691_v28 = vadd.f32 1.0, %v659_v3  ;;  %v880_v14 = vmul.f32 %v2878_v26, %v848_v23  ;;  %v2253_v60 = vpop.eup %2252 }
 0x166   : > { %v1215_v11 = vsub.f32 1.0, %v1183_v48  ;;  %v1005_v41 = vmul.f32 %v2836_v33, %v973_v5  ;;  %v814_v13 = vmul.f32 %v2894_v46, %v782_v29  ;;  %v957_v7 = vmul.f32 %v2864_v59, %v925_v12  ;;  %v2255_v55 = vpop.eup %2254 }
 0x167   : > { %v864_v18 = vadd.f32 1.4214138, %v832_v19  ;;  %2262 = vrcp.f32 %v691_v28  ;;  %v2914_v33 = vadd.f32 %v2519_v24, %v2590_v25  ;;  %v912_v61 = vadd.f32 -0.28449672, %v880_v14 }
 0x168   : > { %v1279_v10 = vsub.f32 0.0, %v1215_v11  ;;  %v1165_v16 = vmul.f32 %v2251_v49, %v1005_v41  ;;  %v846_v15 = vadd.f32 1.4214138, %v814_v13  ;;  %v989_v45 = vadd.f32 0.2548296, %v957_v7 }
 0x169   : > { %v896_v58 = vmul.f32 %v2890_v38, %v864_v18  ;;  %v1086_v51 = vmul.f32 %v1054_v20, %v2871_v54  ;;  %v2257_v48 = vpop.eup %2256  ;;  %vm1245_vm12 = vcmp.ge.f32.partialorder %v2798_v0, 0.0  ;;  %v944_v24 = vmul.f32 %v2878_v26, %v912_v61 }
 0x16a   : > { %v1311_v47 = vsel %vm1247_vm10, %v1215_v11, %v1279_v10  ;;  %v1197_v56 = vsub.f32 1.0, %v1165_v16  ;;  %v878_v25 = vmul.f32 %v2894_v46, %v846_v15  ;;  %v2924_v57 = vmul.f32 0.70710677, %v2899_v21 }
 0x16b   : > { %v1343_v52 = vadd.f32 1.0, %v1311_v47  ;;  %v2926_v27 = vpop.eup %2258  ;;  %v1021_v43 = vmul.f32 %v2864_v59, %v989_v45  ;;  %v928_v62 = vadd.f32 -0.28449672, %v896_v58  ;;  %v1043_v54 = vsub.f32 0.0, %v2888_v40 }
 0x16c   : > { %v1261_v5 = vsub.f32 0.0, %v1197_v56  ;;  %v976_v49 = vadd.f32 0.2548296, %v944_v24  ;;  %v910_v11 = vadd.f32 -0.28449672, %v878_v25  ;;  %vm1232_vm13 = vcmp.ge.f32.partialorder %v2815_v1, 0.0 }
 0x16d   : > { %v1375_v50 = vmul.f32 %v1343_v52, %v2832_v6  ;;  %v766_v41 = vmul.f32 1.0614054, %v2926_v27  ;;  %v2261_v23 = vpop.eup %2260  ;;  %v1181_v19 = vmul.f32 %v2253_v60, %v1021_v43  ;;  %v960_v6 = vmul.f32 %v2890_v38, %v928_v62 }
 0x16e   : > { %v1293_v3 = vsel %vm1229_vm11, %v1197_v56, %v1261_v5  ;;  %v1008_v59 = vmul.f32 %v2878_v26, %v976_v49  ;;  %v942_v20 = vmul.f32 %v2894_v46, %v910_v11  ;;  %v2939_v39 = vand.u32 2147483647, %v2924_v57 }
 0x16f   : > { %v1987_v29 = vpack.c.bf16 %v1375_v50, %v1375_v50  ;;  %v1325_v12 = vadd.f32 1.0, %v1293_v3  ;;  %v798_v28 = vadd.f32 -1.4531521, %v766_v41  ;;  %v1213_v16 = vsub.f32 1.0, %v1181_v19 }
 0x170   : > { %v992_v14 = vadd.f32 0.2548296, %v960_v6  ;;  %v1139_v13 = vmul.f32 1.442695, %v1086_v51  ;;  %v1168_v60 = vmul.f32 %v2255_v55, %v1008_v59  ;;  %vm1248_vm14 = vcmp.ge.f32.partialorder %v2818_v4, 0.0 }
 0x171   : > { %1536 = vst.msk [vmem:[%s2741_s26 + $0x58] sm:$0xf] %vm1513_vm3, %v1987_v29  ;;  %v1357_v10 = vmul.f32 %v1325_v12, %v2839_v37  ;;  %v974_v7 = vadd.f32 0.2548296, %v942_v20  ;;  %v830_v26 = vmul.f32 %v2926_v27, %v798_v28  ;;  %v675_v18 = vmul.f32 0.3275911, %v2939_v39  ;;  %v2947_v47 = vpop.eup %2262 }
 0x172   : > { %v1277_v61 = vsub.f32 0.0, %v1213_v16  ;;  %v1024_v15 = vmul.f32 %v2890_v38, %v992_v14  ;;  %vm1230_vm15 = vcmp.ge.f32.partialorder %v2824_v44, 0.0  ;;  %v1075_v37 = vmul.f32 %v1043_v54, %v2888_v40 }
 0x173   : > { %v1969_v56 = vpack.c.bf16 %v1357_v10, %v1357_v10  ;;  %v1200_v52 = vsub.f32 1.0, %v1168_v60  ;;  %v1006_v55 = vmul.f32 %v2894_v46, %v974_v7  ;;  %v862_v45 = vadd.f32 1.4214138, %v830_v26 }
 0x174   : > { %v755_v58 = vmul.f32 1.0614054, %v2947_v47  ;;  %v1309_v51 = vsel %vm1245_vm12, %v1213_v16, %v1277_v61  ;;  %v1184_v5 = vmul.f32 %v2257_v48, %v1024_v15  ;;  %2264 = vpow2.f32 %v1139_v13 }
 0x175   : > { %1518 = vst.msk [vmem:[%s2741_s26 + $0x10] sm:$0xf] %vm1513_vm3, %v1969_v56  ;;  %v707_v24 = vadd.f32 1.0, %v675_v18  ;;  %v1341_v25 = vadd.f32 1.0, %v1309_v51  ;;  %v1264_v38 = vsub.f32 0.0, %v1200_v52  ;;  %v1166_v50 = vmul.f32 %v2261_v23, %v1006_v55  ;;  %v3449_v55 = vld [vmem:[#allocation3_spill] sm:$0xff] }
 0x176   : > { %v894_v43 = vmul.f32 %v2926_v27, %v862_v45  ;;  %v1216_v40 = vsub.f32 1.0, %v1184_v5  ;;  %v787_v62 = vadd.f32 -1.4531521, %v755_v58  ;;  %v1117_v54 = vmul.f32 1.442695, %v1075_v37 }
 0x177   : > { %2266 = vrcp.f32 %v707_v24  ;;  %v1373_v46 = vmul.f32 %v1341_v25, %v2856_v34  ;;  %v1296_v3 = vsel %vm1232_vm13, %v1200_v52, %v1264_v38  ;;  %v1198_v0 = vsub.f32 1.0, %v1166_v50  ;;  %v2966_v23 = vld [vmem:[%s3439_s2] ss:$0 sm:$0xff] }
 0x178   : > { %v926_v49 = vadd.f32 -0.28449672, %v894_v43  ;;  %v1328_v48 = vadd.f32 1.0, %v1296_v3  ;;  %v1280_v11 = vsub.f32 0.0, %v1216_v40  ;;  %v819_v41 = vmul.f32 %v2947_v47, %v787_v62  ;;  %v3450_v3 = vld [vmem:[#allocation4_spill] sm:$0xff] }
 0x179   : > { %v2970_v29 = vadd.f32 %v2966_v23, %v2593_v30  ;;  %v1985_v34 = vpack.c.bf16 %v1373_v46, %v1373_v46  ;;  %v1262_v12 = vsub.f32 0.0, %v1198_v0  ;;  %v2974_v19 = vmul.f32 0.70710677, %v2914_v33 }
 0x17a   : > { %v958_v1 = vmul.f32 %v2926_v27, %v926_v49  ;;  %v1360_v6 = vmul.f32 %v1328_v48, %v2859_v8  ;;  %v1312_v59 = vsel %vm1248_vm14, %v1216_v40, %v1280_v11  ;;  %v851_v20 = vadd.f32 1.4214138, %v819_v41 }
 0x17b   : > { %2268 = vpow2.f32 %v1117_v54  ;;  %1534 = vst.msk [vmem:[%s2741_s26 + $0x50] sm:$0xf] %vm1513_vm3, %v1985_v34  ;;  %v1344_v28 = vadd.f32 1.0, %v1312_v59  ;;  %v1294_v30 = vsel %vm1230_vm15, %v1198_v0, %v1262_v12  ;;  %v2984_v16 = vand.u32 2147483647, %v2974_v19 }
 0x17c   : > { %v990_v10 = vadd.f32 0.2548296, %v958_v1  ;;  %v1972_v14 = vpack.c.bf16 %v1360_v6, %v1360_v6  ;;  %v1326_v13 = vadd.f32 1.0, %v1294_v30  ;;  %v883_v8 = vmul.f32 %v2947_v47, %v851_v20 }
 0x17d   : > { %v1059_v4 = vsub.f32 0.0, %v2939_v39  ;;  %v1376_v60 = vmul.f32 %v1344_v28, %v2868_v53  ;;  %v657_v26 = vmul.f32 0.3275911, %v2984_v16  ;;  %v2995_v61 = vmul.f32 0.70710677, %v2970_v29 }
 0x17e   : > { %v1022_v7 = vmul.f32 %v2926_v27, %v990_v10  ;;  %v2265_v18 = vpop.eup %2264  ;;  %1521 = vst.msk [vmem:[%s2741_s26 + $0x1c] sm:$0xf] %vm1513_vm3, %v1972_v14  ;;  %v1358_v44 = vmul.f32 %v1326_v13, %v2881_v42  ;;  %v915_v56 = vadd.f32 -0.28449672, %v883_v8  ;;  %v2999_v53 = vadd.f32 %v2966_v23, %v3449_v55  ;;  %v3451_v14 = vld [vmem:[#allocation5_spill] sm:$0xff] }
 0x17f   : > { %v1988_v15 = vpack.c.bf16 %v1376_v60, %v1376_v60  ;;  %v689_v52 = vadd.f32 1.0, %v657_v26  ;;  %v1091_v51 = vmul.f32 %v1059_v4, %v2939_v39  ;;  %v641_v42 = vand.u32 2147483647, %v2995_v61 }
 0x180   : > { %v1182_v37 = vmul.f32 %v2265_v18, %v1022_v7  ;;  %v1970_v45 = vpack.c.bf16 %v1358_v44, %v1358_v44  ;;  %v947_v58 = vmul.f32 %v2947_v47, %v915_v56  ;;  %vm1246_vm0 = vcmp.ge.f32.partialorder %v2862_v9, 0.0 }
 0x181   : > { %v3001_v27 = vpop.eup %2266  ;;  %1537 = vst.msk [vmem:[%s2741_s26 + $0x5c] sm:$0xf] %vm1513_vm3, %v1988_v15  ;;  %2270 = vrcp.f32 %v689_v52  ;;  %v673_v38 = vmul.f32 0.3275911, %v641_v42  ;;  %v3013_v40 = vmul.f32 0.70710677, %v2999_v53  ;;  %v3018_v0 = vadd.f32 %v2966_v23, %v3450_v3 }
 0x182   : > { %v1214_v5 = vsub.f32 1.0, %v1182_v37  ;;  %v771_v24 = vmul.f32 1.0614054, %v3001_v27  ;;  %1519 = vst.msk [vmem:[%s2741_s26 + $0x14] sm:$0xf] %vm1513_vm3, %v1970_v45  ;;  %v574_v49 = vmul.f32 0.5, %v2845_v35 }
 0x183   : > { %v979_v25 = vadd.f32 0.2548296, %v947_v58  ;;  %v1149_v54 = vmul.f32 1.442695, %v1091_v51  ;;  %v705_v46 = vadd.f32 1.0, %v673_v38  ;;  %v563_v34 = vmul.f32 0.5, %v2851_v22 }
 0x184   : > { %v1278_v50 = vsub.f32 0.0, %v1214_v5  ;;  %v803_v43 = vadd.f32 -1.4531521, %v771_v24  ;;  %v628_v9 = vand.u32 2147483647, %v3013_v40  ;;  %v1041_v6 = vsub.f32 0.0, %v2984_v16 }
 0x185   : > { %v2269_v39 = vpop.eup %2268  ;;  %v1011_v62 = vmul.f32 %v2947_v47, %v979_v25  ;;  %2272 = vrcp.f32 %v705_v46  ;;  %v3025_v47 = vmul.f32 0.5, %v2899_v21  ;;  %v3029_v35 = vmul.f32 0.70710677, %v3018_v0  ;;  %v3452_v51 = vld [vmem:[#allocation6_spill] sm:$0xff] }
 0x186   : > { %v1310_v48 = vsel %vm1246_vm0, %v1214_v5, %v1278_v50  ;;  %v835_v11 = vmul.f32 %v3001_v27, %v803_v43  ;;  %v660_v59 = vmul.f32 0.3275911, %v628_v9  ;;  %2274 = vpow2.f32 %v1149_v54 }
 0x187   : > { %v1342_v41 = vadd.f32 1.0, %v1310_v48  ;;  %v1171_v12 = vmul.f32 %v2269_v39, %v1011_v62  ;;  %v3033_v22 = vmul.f32 0.5, %v2914_v33  ;;  %v3037_v21 = vadd.f32 %v2966_v23, %v3451_v14 }
 0x188   : > { %v867_v1 = vadd.f32 1.4214138, %v835_v11  ;;  %v692_v10 = vadd.f32 1.0, %v660_v59  ;;  %v1057_v4 = vsub.f32 0.0, %v641_v42  ;;  %v644_v60 = vand.u32 2147483647, %v3029_v35 }
 0x189   : > { %v1374_v20 = vmul.f32 %v1342_v41, %v574_v49  ;;  %v1203_v28 = vsub.f32 1.0, %v1171_v12  ;;  %vm1235_vm1 = vcmp.ge.f32.partialorder %v2876_v32, 0.0  ;;  %v1073_v18 = vmul.f32 %v1041_v6, %v2984_v16  ;;  %v3453_v59 = vld [vmem:[#allocation7_spill] sm:$0xff] }
 0x18a   : > { %v899_v30 = vmul.f32 %v3001_v27, %v867_v1  ;;  %2276 = vrcp.f32 %v692_v10  ;;  %v1044_v56 = vsub.f32 0.0, %v628_v9  ;;  %v676_v15 = vmul.f32 0.3275911, %v644_v60 }
 0x18b   : > { %v1986_v13 = vpack.c.bf16 %v1374_v20, %v1374_v20  ;;  %v1267_v8 = vsub.f32 0.0, %v1203_v28  ;;  %v3040_v7 = vpop.eup %2270  ;;  %v3049_v55 = vmul.f32 0.5, %v2970_v29  ;;  %v3052_v45 = vmul.f32 0.70710677, %v3037_v21 }
 0x18c   : > { %v931_v26 = vadd.f32 -0.28449672, %v899_v30  ;;  %v753_v44 = vmul.f32 1.0614054, %v3040_v7  ;;  %v1089_v58 = vmul.f32 %v1057_v4, %v641_v42  ;;  %v708_v16 = vadd.f32 1.0, %v676_v15 }
 0x18d   : > { %1535 = vst.msk [vmem:[%s2741_s26 + $0x54] sm:$0xf] %vm1513_vm3, %v1986_v13  ;;  %v1299_v33 = vsel %vm1235_vm1, %v1203_v28, %v1267_v8  ;;  %v3056_v5 = vadd.f32 %v2966_v23, %v3452_v51  ;;  %v1113_v38 = vmul.f32 1.442695, %v1073_v18  ;;  %v626_v50 = vand.u32 2147483647, %v3052_v45 }
 0x18e   : > { %v1331_v37 = vadd.f32 1.0, %v1299_v33  ;;  %v963_v52 = vmul.f32 %v3001_v27, %v931_v26  ;;  %v785_v32 = vadd.f32 -1.4531521, %v753_v44  ;;  %vm1251_vm2 = vcmp.ge.f32.partialorder %v2924_v57, 0.0 }
 0x18f   : > { %v3059_v43 = vpop.eup %2272  ;;  %v1076_v39 = vmul.f32 %v1044_v56, %v628_v9  ;;  %2278 = vrcp.f32 %v708_v16  ;;  %v1060_v42 = vsub.f32 0.0, %v644_v60  ;;  %v658_v3 = vmul.f32 0.3275911, %v626_v50 }
 0x190   : > { %v1363_v24 = vmul.f32 %v1331_v37, %v563_v34  ;;  %v995_v25 = vadd.f32 0.2548296, %v963_v52  ;;  %v817_v29 = vmul.f32 %v3040_v7, %v785_v32  ;;  %v769_v46 = vmul.f32 1.0614054, %v3059_v43  ;;  %v2275_v49 = vpop.eup %2274 }
 0x191   : > { %v1145_v11 = vmul.f32 1.442695, %v1089_v58  ;;  %v3066_v41 = vmul.f32 0.70710677, %v3056_v5  ;;  %2280 = vpow2.f32 %v1113_v38  ;;  %v690_v9 = vadd.f32 1.0, %v658_v3 }
 0x192   : > { %v1975_v62 = vpack.c.bf16 %v1363_v24, %v1363_v24  ;;  %v1027_v54 = vmul.f32 %v3001_v27, %v995_v25  ;;  %v849_v48 = vadd.f32 1.4214138, %v817_v29  ;;  %v801_v12 = vadd.f32 -1.4531521, %v769_v46 }
 0x193   : > { %v1119_v6 = vmul.f32 1.442695, %v1076_v39  ;;  %v642_v27 = vand.u32 2147483647, %v3066_v41  ;;  %v3074_v20 = vadd.f32 %v2966_v23, %v3453_v59  ;;  %v1092_v14 = vmul.f32 %v1060_v42, %v644_v60 }
 0x194   : > { %1524 = vst.msk [vmem:[%s2741_s26 + $0x28] sm:$0xf] %vm1513_vm3, %v1975_v62  ;;  %v1187_v34 = vmul.f32 %v2275_v49, %v1027_v54  ;;  %v881_v1 = vmul.f32 %v3040_v7, %v849_v48  ;;  %v3076_v28 = vpop.eup %2276  ;;  %v833_v10 = vmul.f32 %v3059_v43, %v801_v12  ;;  %2282 = vrcp.f32 %v690_v9 }
 0x195   : > { %2284 = vpow2.f32 %v1145_v11  ;;  %v3080_v8 = vmul.f32 0.5, %v2999_v53  ;;  %v756_v4 = vmul.f32 1.0614054, %v3076_v28  ;;  %v1042_v33 = vsub.f32 0.0, %v626_v50  ;;  %v3454_v11 = vld [vmem:[#allocation8_spill] sm:$0xff] }
 0x196   : > { %v1219_v30 = vsub.f32 1.0, %v1187_v34  ;;  %v913_v13 = vadd.f32 -0.28449672, %v881_v1  ;;  %v865_v18 = vadd.f32 1.4214138, %v833_v10  ;;  %2286 = vpow2.f32 %v1119_v6 }
 0x197   : > { %v674_v44 = vmul.f32 0.3275911, %v642_v27  ;;  %v788_v15 = vadd.f32 -1.4531521, %v756_v4  ;;  %v3085_v37 = vmul.f32 0.70710677, %v3074_v20  ;;  %v1074_v39 = vmul.f32 %v1042_v33, %v626_v50 }
 0x198   : > { %v1283_v26 = vsub.f32 0.0, %v1219_v30  ;;  %v945_v56 = vmul.f32 %v3040_v7, %v913_v13  ;;  %v897_v52 = vmul.f32 %v3059_v43, %v865_v18  ;;  %v1151_v53 = vmul.f32 1.442695, %v1092_v14 }
 0x199   : > { %v706_v32 = vadd.f32 1.0, %v674_v44  ;;  %v3090_v58 = vpop.eup %2278  ;;  %v820_v24 = vmul.f32 %v3076_v28, %v788_v15  ;;  %v631_v25 = vand.u32 2147483647, %v3085_v37  ;;  %vm1233_vm4 = vcmp.ge.f32.partialorder %v2974_v19, 0.0 }
 0x19a   : > { %v1315_v60 = vsel %vm1251_vm2, %v1219_v30, %v1283_v26  ;;  %v977_v51 = vadd.f32 0.2548296, %v945_v56  ;;  %v929_v38 = vadd.f32 -0.28449672, %v897_v52  ;;  %v772_v29 = vmul.f32 1.0614054, %v3090_v58 }
 0x19b   : > { %v1347_v16 = vadd.f32 1.0, %v1315_v60  ;;  %2288 = vrcp.f32 %v706_v32  ;;  %v852_v62 = vadd.f32 1.4214138, %v820_v24  ;;  %v663_v54 = vmul.f32 0.3275911, %v631_v25  ;;  %v2281_v46 = vpop.eup %2280 }
 0x19c   : > { %v1009_v42 = vmul.f32 %v3040_v7, %v977_v51  ;;  %v961_v3 = vmul.f32 %v3059_v43, %v929_v38  ;;  %v804_v49 = vadd.f32 -1.4531521, %v772_v29  ;;  %v1058_v48 = vsub.f32 0.0, %v642_v27 }
 0x19d   : > { %v1379_v57 = vmul.f32 %v1347_v16, %v3025_v47  ;;  %v3101_v34 = vadd.f32 %v2966_v23, %v3454_v11  ;;  %v884_v50 = vmul.f32 %v3076_v28, %v852_v62  ;;  %v695_v1 = vadd.f32 1.0, %v663_v54 }
 0x19e   : > { %v1169_v9 = vmul.f32 %v2281_v46, %v1009_v42  ;;  %v3104_v47 = vpop.eup %2282  ;;  %v993_v7 = vadd.f32 0.2548296, %v961_v3  ;;  %v3107_v6 = vmul.f32 0.5, %v3018_v0  ;;  %v836_v59 = vmul.f32 %v3090_v58, %v804_v49 }
 0x19f   : > { %v1991_v12 = vpack.c.bf16 %v1379_v57, %v1379_v57  ;;  %v1115_v30 = vmul.f32 1.442695, %v1074_v39  ;;  %v2285_v10 = vpop.eup %2284  ;;  %vm1249_vm5 = vcmp.ge.f32.partialorder %v2995_v61, 0.0  ;;  %v916_v13 = vadd.f32 -0.28449672, %v884_v50 }
 0x1a0   : > { %v1201_v14 = vsub.f32 1.0, %v1169_v9  ;;  %v754_v4 = vmul.f32 1.0614054, %v3104_v47  ;;  %2290 = vrcp.f32 %v695_v1  ;;  %v1025_v26 = vmul.f32 %v3059_v43, %v993_v7  ;;  %v2287_v0 = vpop.eup %2286 }
 0x1a1   : > { %1540 = vst.msk [vmem:[%s2741_s26 + $0x68] sm:$0xf] %vm1513_vm3, %v1991_v12  ;;  %v868_v18 = vadd.f32 1.4214138, %v836_v59  ;;  %2292 = vpow2.f32 %v1151_v53  ;;  %v1090_v33 = vmul.f32 %v1058_v48, %v642_v27  ;;  %v948_v56 = vmul.f32 %v3076_v28, %v916_v13  ;;  %v3455_v59 = vld [vmem:[#allocation9_spill] sm:$0xff] }
 0x1a2   : > { %v1265_v44 = vsub.f32 0.0, %v1201_v14  ;;  %v786_v15 = vadd.f32 -1.4531521, %v754_v4  ;;  %v3117_v60 = vmul.f32 0.70710677, %v3101_v34  ;;  %v1185_v52 = vmul.f32 %v2285_v10, %v1025_v26 }
 0x1a3   : > { %v900_v32 = vmul.f32 %v3090_v58, %v868_v18  ;;  %2294 = vpow2.f32 %v1115_v30  ;;  %v1047_v16 = vsub.f32 0.0, %v631_v25  ;;  %v980_v43 = vadd.f32 0.2548296, %v948_v56 }
 0x1a4   : > { %v1297_v51 = vsel %vm1233_vm4, %v1201_v14, %v1265_v44  ;;  %v818_v53 = vmul.f32 %v3104_v47, %v786_v15  ;;  %v647_v27 = vand.u32 2147483647, %v3117_v60  ;;  %v1217_v29 = vsub.f32 1.0, %v1185_v52 }
 0x1a5   : > { %v3124_v24 = vpop.eup %2288  ;;  %v1329_v38 = vadd.f32 1.0, %v1297_v51  ;;  %vm1236_vm6 = vcmp.ge.f32.partialorder %v3013_v40, 0.0  ;;  %v932_v39 = vadd.f32 -0.28449672, %v900_v32  ;;  %v1147_v57 = vmul.f32 1.442695, %v1090_v33 }
 0x1a6   : > { %v1012_v42 = vmul.f32 %v3076_v28, %v980_v43  ;;  %v850_v62 = vadd.f32 1.4214138, %v818_v53  ;;  %v770_v54 = vmul.f32 1.0614054, %v3124_v24  ;;  %v679_v19 = vmul.f32 0.3275911, %v647_v27 }
 0x1a7   : > { %v1361_v46 = vmul.f32 %v1329_v38, %v3033_v22  ;;  %v1281_v3 = vsub.f32 0.0, %v1217_v29  ;;  %v964_v49 = vmul.f32 %v3090_v58, %v932_v39  ;;  %v1079_v48 = vmul.f32 %v1047_v16, %v631_v25 }
 0x1a8   : > { %v1172_v11 = vmul.f32 %v2287_v0, %v1012_v42  ;;  %v882_v12 = vmul.f32 %v3104_v47, %v850_v62  ;;  %v802_v9 = vadd.f32 -1.4531521, %v770_v54  ;;  %v711_v50 = vadd.f32 1.0, %v679_v19 }
 0x1a9   : > { %v1973_v1 = vpack.c.bf16 %v1361_v46, %v1361_v46  ;;  %v1313_v28 = vsel %vm1249_vm5, %v1217_v29, %v1281_v3  ;;  %v996_v7 = vadd.f32 0.2548296, %v964_v49  ;;  %v3136_v30 = vadd.f32 %v2966_v23, %v3455_v59 }
 0x1aa   : > { %v3138_v22 = vpop.eup %2290  ;;  %v1345_v10 = vadd.f32 1.0, %v1313_v28  ;;  %v1204_v14 = vsub.f32 1.0, %v1172_v11  ;;  %v914_v13 = vadd.f32 -0.28449672, %v882_v12  ;;  %v834_v25 = vmul.f32 %v3124_v24, %v802_v9 }
 0x1ab   : > { %v2293_v4 = vpop.eup %2292  ;;  %1522 = vst.msk [vmem:[%s2741_s26 + $0x20] sm:$0xf] %vm1513_vm3, %v1973_v1  ;;  %v1028_v26 = vmul.f32 %v3090_v58, %v996_v7  ;;  %v759_v61 = vmul.f32 1.0614054, %v3138_v22  ;;  %2296 = vrcp.f32 %v711_v50  ;;  %v1063_v18 = vsub.f32 0.0, %v647_v27 }
 0x1ac   : > { %v1377_v33 = vmul.f32 %v1345_v10, %v3049_v55  ;;  %v1268_v0 = vsub.f32 0.0, %v1204_v14  ;;  %v946_v44 = vmul.f32 %v3104_v47, %v914_v13  ;;  %v866_v56 = vadd.f32 1.4214138, %v834_v25 }
 0x1ad   : > { %v2295_v15 = vpop.eup %2294  ;;  %v1188_v52 = vmul.f32 %v2293_v4, %v1028_v26  ;;  %2298 = vpow2.f32 %v1147_v57  ;;  %v791_v32 = vadd.f32 -1.4531521, %v759_v61  ;;  %v1125_v16 = vmul.f32 1.442695, %v1079_v48 }
 0x1ae   : > { %v1989_v51 = vpack.c.bf16 %v1377_v33, %v1377_v33  ;;  %v1300_v58 = vsel %vm1236_vm6, %v1204_v14, %v1268_v0  ;;  %v978_v43 = vadd.f32 0.2548296, %v946_v44  ;;  %v898_v53 = vmul.f32 %v3124_v24, %v866_v56 }
 0x1af   : > { %v1332_v38 = vadd.f32 1.0, %v1300_v58  ;;  %v1220_v29 = vsub.f32 1.0, %v1188_v52  ;;  %v823_v55 = vmul.f32 %v3138_v22, %v791_v32  ;;  %v3152_v39 = vmul.f32 0.70710677, %v3136_v30 }
 0x1b0   : > { %1538 = vst.msk [vmem:[%s2741_s26 + $0x60] sm:$0xf] %vm1513_vm3, %v1989_v51  ;;  %v1010_v57 = vmul.f32 %v3104_v47, %v978_v43  ;;  %v930_v42 = vadd.f32 -0.28449672, %v898_v53  ;;  %v1095_v62 = vmul.f32 %v1063_v18, %v647_v27  ;;  %v3159_v40 = vadd.f32 %v2966_v23, %v2705_v17 }
 0x1b1   : > { %v1364_v54 = vmul.f32 %v1332_v38, %v3080_v8  ;;  %v1284_v19 = vsub.f32 0.0, %v1220_v29  ;;  %v855_v46 = vadd.f32 1.4214138, %v823_v55  ;;  %v629_v3 = vand.u32 2147483647, %v3152_v39 }
 0x1b2   : > { %vm1252_vm7 = vcmp.ge.f32.partialorder %v3029_v35, 0.0  ;;  %v1170_v49 = vmul.f32 %v2295_v15, %v1010_v57  ;;  %v962_v48 = vmul.f32 %v3124_v24, %v930_v42  ;;  %2300 = vpow2.f32 %v1125_v16 }
 0x1b3   : > { %v1976_v47 = vpack.c.bf16 %v1364_v54, %v1364_v54  ;;  %v1316_v11 = vsel %vm1252_vm7, %v1220_v29, %v1284_v19  ;;  %v887_v27 = vmul.f32 %v3138_v22, %v855_v46  ;;  %v661_v12 = vmul.f32 0.3275911, %v629_v3 }
 0x1b4   : > { %v1348_v17 = vadd.f32 1.0, %v1316_v11  ;;  %v1202_v9 = vsub.f32 1.0, %v1170_v49  ;;  %v994_v50 = vadd.f32 0.2548296, %v962_v48  ;;  %v1157_v8 = vmul.f32 1.442695, %v1095_v62 }
 0x1b5   : > { %v3166_v1 = vpop.eup %2296  ;;  %1525 = vst.msk [vmem:[%s2741_s26 + $0x2c] sm:$0xf] %vm1513_vm3, %v1976_v47  ;;  %vm1234_vm8 = vcmp.ge.f32.partialorder %v3052_v45, 0.0  ;;  %v919_v35 = vadd.f32 -0.28449672, %v887_v27  ;;  %v693_v28 = vadd.f32 1.0, %v661_v12  ;;  %v3183_v45 = vadd.f32 %v2966_v23, %v2732_v2 }
 0x1b6   : > { %v3172_v7 = vmul.f32 0.70710677, %v3159_v40  ;;  %v1380_v59 = vmul.f32 %v1348_v17, %v3107_v6  ;;  %v1266_v10 = vsub.f32 0.0, %v1202_v9  ;;  %v1026_v14 = vmul.f32 %v3124_v24, %v994_v50 }
 0x1b7   : > { %v775_v13 = vmul.f32 1.0614054, %v3166_v1  ;;  %v2299_v25 = vpop.eup %2298  ;;  %v951_v4 = vmul.f32 %v3138_v22, %v919_v35  ;;  %2302 = vrcp.f32 %v693_v28  ;;  %v562_v0 = vmul.f32 0.5, %v3037_v21 }
 0x1b8   : > { %v3179_v26 = vand.u32 2147483647, %v3172_v7  ;;  %v1992_v61 = vpack.c.bf16 %v1380_v59, %v1380_v59  ;;  %v1298_v18 = vsel %vm1234_vm8, %v1202_v9, %v1266_v10  ;;  %v1186_v6 = vmul.f32 %v2299_v25, %v1026_v14 }
 0x1b9   : > { %v807_v33 = vadd.f32 -1.4531521, %v775_v13  ;;  %v1330_v24 = vadd.f32 1.0, %v1298_v18  ;;  %v983_v44 = vadd.f32 0.2548296, %v951_v4  ;;  %v1045_v56 = vsub.f32 0.0, %v629_v3 }
 0x1ba   : > { %1541 = vst.msk [vmem:[%s2741_s26 + $0x6c] sm:$0xf] %vm1513_vm3, %v1992_v61  ;;  %v1218_v15 = vsub.f32 1.0, %v1186_v6  ;;  %v677_v32 = vmul.f32 0.3275911, %v3179_v26  ;;  %vm1250_vm9 = vcmp.ge.f32.partialorder %v3066_v41, 0.0  ;;  %2304 = vpow2.f32 %v1157_v8 }
 0x1bb   : > { %v839_v52 = vmul.f32 %v3166_v1, %v807_v33  ;;  %v1362_v16 = vmul.f32 %v1330_v24, %v562_v0  ;;  %v1015_v2 = vmul.f32 %v3138_v22, %v983_v44  ;;  %v3193_v53 = vmul.f32 0.70710677, %v3183_v45 }
 0x1bc   : > { %v2301_v51 = vpop.eup %2300  ;;  %v1282_v58 = vsub.f32 0.0, %v1218_v15  ;;  %v709_v43 = vadd.f32 1.0, %v677_v32  ;;  %v1077_v55 = vmul.f32 %v1045_v56, %v629_v3  ;;  %v3197_v57 = vadd.f32 %v2966_v23, %v2747_v63 }
 0x1bd   : > { %v871_v21 = vadd.f32 1.4214138, %v839_v52  ;;  %v1974_v38 = vpack.c.bf16 %v1362_v16, %v1362_v16  ;;  %v1175_v29 = vmul.f32 %v2301_v51, %v1015_v2  ;;  %v632_v22 = vand.u32 2147483647, %v3193_v53 }
 0x1be   : > { %v1314_v42 = vsel %vm1250_vm9, %v1218_v15, %v1282_v58  ;;  %2306 = vrcp.f32 %v709_v43  ;;  %v578_v62 = vmul.f32 0.5, %v3056_v5  ;;  %v567_v46 = vmul.f32 0.5, %v3074_v20 }
 0x1bf   : > { %v903_v41 = vmul.f32 %v3166_v1, %v871_v21  ;;  %1523 = vst.msk [vmem:[%s2741_s26 + $0x24] sm:$0xf] %vm1513_vm3, %v1974_v38  ;;  %v1346_v54 = vadd.f32 1.0, %v1314_v42  ;;  %v1207_v19 = vsub.f32 1.0, %v1175_v29  ;;  %vm1239_vm10 = vcmp.ge.f32.partialorder %v3085_v37, 0.0 }
 0x1c0   : > { %v664_v49 = vmul.f32 0.3275911, %v632_v22  ;;  %v1121_v11 = vmul.f32 1.442695, %v1077_v55  ;;  %v3209_v27 = vmul.f32 0.70710677, %v3197_v57  ;;  %v3215_v20 = vadd.f32 %v2966_v23, %v2768_v36 }
 0x1c1   : > { %v935_v3 = vadd.f32 -0.28449672, %v903_v41  ;;  %v3206_v63 = vpop.eup %2302  ;;  %v1378_v48 = vmul.f32 %v1346_v54, %v578_v62  ;;  %v1271_v47 = vsub.f32 0.0, %v1207_v19  ;;  %v1061_v50 = vsub.f32 0.0, %v3179_v26 }
 0x1c2   : > { %v757_v5 = vmul.f32 1.0614054, %v3206_v63  ;;  %v696_v17 = vadd.f32 1.0, %v664_v49  ;;  %v648_v8 = vand.u32 2147483647, %v3209_v27  ;;  %v3229_v6 = vadd.f32 %v2966_v23, %v2784_v31 }
 0x1c3   : > { %v967_v12 = vmul.f32 %v3166_v1, %v935_v3  ;;  %v1990_v37 = vpack.c.bf16 %v1378_v48, %v1378_v48  ;;  %v1303_v9 = vsel %vm1239_vm10, %v1207_v19, %v1271_v47  ;;  %v3224_v4 = vmul.f32 0.70710677, %v3215_v20 }
 0x1c4   : > { %v1335_v35 = vadd.f32 1.0, %v1303_v9  ;;  %v789_v59 = vadd.f32 -1.4531521, %v757_v5  ;;  %2308 = vrcp.f32 %v696_v17  ;;  %v2305_v10 = vpop.eup %2304  ;;  %v680_v14 = vmul.f32 0.3275911, %v648_v8 }
 0x1c5   : > { %v999_v28 = vadd.f32 0.2548296, %v967_v12  ;;  %1539 = vst.msk [vmem:[%s2741_s26 + $0x64] sm:$0xf] %vm1513_vm3, %v1990_v37  ;;  %2310 = vpow2.f32 %v1121_v11  ;;  %v1093_v61 = vmul.f32 %v1061_v50, %v3179_v26  ;;  %v1048_v15 = vsub.f32 0.0, %v632_v22 }
 0x1c6   : > { %v1367_v13 = vmul.f32 %v1335_v35, %v567_v46  ;;  %v821_v36 = vmul.f32 %v3206_v63, %v789_v59  ;;  %v712_v18 = vadd.f32 1.0, %v680_v14  ;;  %v3239_v31 = vmul.f32 0.70710677, %v3229_v6 }
 0x1c7   : > { %v1031_v25 = vmul.f32 %v3166_v1, %v999_v28  ;;  %v630_v1 = vand.u32 2147483647, %v3224_v4  ;;  %v1153_v51 = vmul.f32 1.442695, %v1093_v61  ;;  %vm1255_vm11 = vcmp.ge.f32.partialorder %v3117_v60, 0.0 }
 0x1c8   : > { %v3231_v33 = vpop.eup %2306  ;;  %v1979_v0 = vpack.c.bf16 %v1367_v13, %v1367_v13  ;;  %v853_v44 = vadd.f32 1.4214138, %v821_v36  ;;  %2312 = vrcp.f32 %v712_v18  ;;  %v1080_v43 = vmul.f32 %v1048_v15, %v632_v22 }
 0x1c9   : > { %v1191_v24 = vmul.f32 %v2305_v10, %v1031_v25  ;;  %v773_v56 = vmul.f32 1.0614054, %v3231_v33  ;;  %v662_v32 = vmul.f32 0.3275911, %v630_v1  ;;  %v3244_v38 = vand.u32 2147483647, %v3239_v31 }
 0x1ca   : > { %1528 = vst.msk [vmem:[%s2741_s26 + $0x38] sm:$0xf] %vm1513_vm3, %v1979_v0  ;;  %v885_v26 = vmul.f32 %v3206_v63, %v853_v44  ;;  %v1064_v41 = vsub.f32 0.0, %v648_v8  ;;  %v583_v62 = vmul.f32 0.5, %v3101_v34  ;;  %v1127_v12 = vmul.f32 1.442695, %v1080_v43 }
 0x1cb   : > { %v1223_v52 = vsub.f32 1.0, %v1191_v24  ;;  %v805_v16 = vadd.f32 -1.4531521, %v773_v56  ;;  %v694_v58 = vadd.f32 1.0, %v662_v32  ;;  %v678_v22 = vmul.f32 0.3275911, %v3244_v38 }
 0x1cc   : > { %v917_v2 = vadd.f32 -0.28449672, %v885_v26  ;;  %v1096_v5 = vmul.f32 %v1064_v41, %v648_v8  ;;  %v1046_v59 = vsub.f32 0.0, %v630_v1  ;;  %v565_v18 = vmul.f32 0.5, %v3136_v30 }
 0x1cd   : > { %v1287_v23 = vsub.f32 0.0, %v1223_v52  ;;  %v837_v21 = vmul.f32 %v3231_v33, %v805_v16  ;;  %2314 = vrcp.f32 %v694_v58  ;;  %v710_v17 = vadd.f32 1.0, %v678_v22 }
 0x1ce   : > { %v3246_v29 = vpop.eup %2308  ;;  %v949_v42 = vmul.f32 %v3206_v63, %v917_v2  ;;  %2316 = vpow2.f32 %v1153_v51  ;;  %v1159_v13 = vmul.f32 1.442695, %v1096_v5  ;;  %v1078_v44 = vmul.f32 %v1046_v59, %v630_v1 }
 0x1cf   : > { %v1319_v55 = vsel %vm1255_vm11, %v1223_v52, %v1287_v23  ;;  %v869_v19 = vadd.f32 1.4214138, %v837_v21  ;;  %v760_v46 = vmul.f32 1.0614054, %v3246_v29  ;;  %v2311_v3 = vpop.eup %2310  ;;  %2318 = vrcp.f32 %v710_v17 }
 0x1d0   : > { %v1351_v54 = vadd.f32 1.0, %v1319_v55  ;;  %v981_v60 = vadd.f32 0.2548296, %v949_v42  ;;  %2320 = vpow2.f32 %v1127_v12  ;;  %vm1237_vm12 = vcmp.ge.f32.partialorder %v3152_v39, 0.0 }
 0x1d1   : > { %v901_v48 = vmul.f32 %v3231_v33, %v869_v19  ;;  %v792_v47 = vadd.f32 -1.4531521, %v760_v46  ;;  %2322 = vpow2.f32 %v1159_v13  ;;  %v1062_v23 = vsub.f32 0.0, %v3244_v38 }
 0x1d2   : > { %v1383_v49 = vmul.f32 %v1351_v54, %v583_v62  ;;  %v1013_v11 = vmul.f32 %v3206_v63, %v981_v60  ;;  %v3254_v34 = vpop.eup %2312  ;;  %v1123_v21 = vmul.f32 1.442695, %v1078_v44  ;;  %vm1253_vm13 = vcmp.ge.f32.partialorder %v3172_v7, 0.0 }
 0x1d3   : > { %v933_v9 = vadd.f32 -0.28449672, %v901_v48  ;;  %v824_v50 = vmul.f32 %v3246_v29, %v792_v47  ;;  %v776_v28 = vmul.f32 1.0614054, %v3254_v34  ;;  %v1094_v62 = vmul.f32 %v1062_v23, %v3244_v38 }
 0x1d4   : > { %v1995_v37 = vpack.c.bf16 %v1383_v49, %v1383_v49  ;;  %v1173_v35 = vmul.f32 %v2311_v3, %v1013_v11  ;;  %2324 = vpow2.f32 %v1123_v21  ;;  %v581_v38 = vmul.f32 0.5, %v3159_v40 }
 0x1d5   : > { %v965_v10 = vmul.f32 %v3231_v33, %v933_v9  ;;  %v856_v14 = vadd.f32 1.4214138, %v824_v50  ;;  %v808_v8 = vadd.f32 -1.4531521, %v776_v28  ;;  %v1155_v9 = vmul.f32 1.442695, %v1094_v62 }
 0x1d6   : > { %1544 = vst.msk [vmem:[%s2741_s26 + $0x78] sm:$0xf] %vm1513_vm3, %v1995_v37  ;;  %v1205_v63 = vsub.f32 1.0, %v1173_v35  ;;  %vm1240_vm14 = vcmp.ge.f32.partialorder %v3193_v53, 0.0  ;;  %vm1256_vm15 = vcmp.ge.f32.partialorder %v3209_v27, 0.0  ;;  %vm1238_vm0 = vcmp.ge.f32.partialorder %v3224_v4, 0.0 }
 0x1d7   : > { %v997_v25 = vadd.f32 0.2548296, %v965_v10  ;;  %v888_v36 = vmul.f32 %v3246_v29, %v856_v14  ;;  %v3262_v61 = vpop.eup %2314  ;;  %v840_v24 = vmul.f32 %v3254_v34, %v808_v8  ;;  %2326 = vpow2.f32 %v1155_v9 }
 0x1d8   : > { %v1269_v0 = vsub.f32 0.0, %v1205_v63  ;;  %v758_v52 = vmul.f32 1.0614054, %v3262_v61  ;;  %v2317_v26 = vpop.eup %2316  ;;  %v566_v21 = vmul.f32 0.5, %v3215_v20  ;;  %vm1254_vm1 = vcmp.ge.f32.partialorder %v3239_v31, 0.0 }
 0x1d9   : > { %v1029_v56 = vmul.f32 %v3231_v33, %v997_v25  ;;  %v920_v15 = vadd.f32 -0.28449672, %v888_v36  ;;  %v872_v16 = vadd.f32 1.4214138, %v840_v24  ;;  %v2319_v42 = vpop.eup %2318  ;;  %v568_v25 = vmul.f32 0.5, %v3183_v45 }
 0x1da   : > { %v1301_v32 = vsel %vm1237_vm12, %v1205_v63, %v1269_v0  ;;  %v790_v58 = vadd.f32 -1.4531521, %v758_v52  ;;  %v2321_v22 = vpop.eup %2320  ;;  %v774_v49 = vmul.f32 1.0614054, %v2319_v42 }
 0x1db   : > { %v1333_v2 = vadd.f32 1.0, %v1301_v32  ;;  %v1189_v51 = vmul.f32 %v2317_v26, %v1029_v56  ;;  %v952_v30 = vmul.f32 %v3246_v29, %v920_v15  ;;  %v904_v1 = vmul.f32 %v3254_v34, %v872_v16  ;;  %v2323_v7 = vpop.eup %2322 }
 0x1dc   : > { %v822_v55 = vmul.f32 %v3262_v61, %v790_v58  ;;  %v806_v17 = vadd.f32 -1.4531521, %v774_v49  ;;  %v584_v16 = vmul.f32 0.5, %v3197_v57 }
 0x1dd   : > { %v1365_v39 = vmul.f32 %v1333_v2, %v565_v18  ;;  %v1221_v33 = vsub.f32 1.0, %v1189_v51  ;;  %v984_v43 = vadd.f32 0.2548296, %v952_v30  ;;  %v936_v41 = vadd.f32 -0.28449672, %v904_v1 }
 0x1de   : > { %v854_v60 = vadd.f32 1.4214138, %v822_v55  ;;  %v838_v28 = vmul.f32 %v2319_v42, %v806_v17  ;;  %v2325_v24 = vpop.eup %2324 }
 0x1df   : > { %v1977_v54 = vpack.c.bf16 %v1365_v39, %v1365_v39  ;;  %v1285_v19 = vsub.f32 0.0, %v1221_v33  ;;  %v1016_v46 = vmul.f32 %v3246_v29, %v984_v43  ;;  %v968_v3 = vmul.f32 %v3254_v34, %v936_v41 }
 0x1e0   : > { %v886_v11 = vmul.f32 %v3262_v61, %v854_v60  ;;  %v870_v40 = vadd.f32 1.4214138, %v838_v28 }
 0x1e1   : > { %1526 = vst.msk [vmem:[%s2741_s26 + $0x30] sm:$0xf] %vm1513_vm3, %v1977_v54  ;;  %v1317_v48 = vsel %vm1253_vm13, %v1221_v33, %v1285_v19  ;;  %v1176_v47 = vmul.f32 %v2321_v22, %v1016_v46  ;;  %v1000_v5 = vadd.f32 0.2548296, %v968_v3  ;;  %v2327_v58 = vpop.eup %2326 }
 0x1e2   : > { %v1349_v12 = vadd.f32 1.0, %v1317_v48  ;;  %v918_v37 = vadd.f32 -0.28449672, %v886_v11 }
 0x1e3   : > { %v1208_v29 = vsub.f32 1.0, %v1176_v47  ;;  %v1032_v35 = vmul.f32 %v3254_v34, %v1000_v5  ;;  %v902_v34 = vmul.f32 %v2319_v42, %v870_v40 }
 0x1e4   : > { %v1381_v50 = vmul.f32 %v1349_v12, %v581_v38  ;;  %v950_v10 = vmul.f32 %v3262_v61, %v918_v37 }
 0x1e5   : > { %v1272_v59 = vsub.f32 0.0, %v1208_v29  ;;  %v1192_v63 = vmul.f32 %v2323_v7, %v1032_v35  ;;  %v934_v15 = vadd.f32 -0.28449672, %v902_v34 }
 0x1e6   : > { %v1993_v14 = vpack.c.bf16 %v1381_v50, %v1381_v50  ;;  %v982_v13 = vadd.f32 0.2548296, %v950_v10 }
 0x1e7   : > { %v1304_v8 = vsel %vm1240_vm14, %v1208_v29, %v1272_v59  ;;  %v1224_v18 = vsub.f32 1.0, %v1192_v63  ;;  %v966_v32 = vmul.f32 %v2319_v42, %v934_v15 }
 0x1e8   : > { %1542 = vst.msk [vmem:[%s2741_s26 + $0x70] sm:$0xf] %vm1513_vm3, %v1993_v14  ;;  %v1336_v36 = vadd.f32 1.0, %v1304_v8  ;;  %v1014_v0 = vmul.f32 %v3262_v61, %v982_v13 }
 0x1e9   : > { %v1288_v56 = vsub.f32 0.0, %v1224_v18  ;;  %v998_v2 = vadd.f32 0.2548296, %v966_v32 }
 0x1ea   : > { %v1368_v44 = vmul.f32 %v1336_v36, %v568_v25  ;;  %v1174_v53 = vmul.f32 %v2325_v24, %v1014_v0 }
 0x1eb   : > { %v1320_v26 = vsel %vm1256_vm15, %v1224_v18, %v1288_v56  ;;  %v1030_v30 = vmul.f32 %v2319_v42, %v998_v2  ;;  %v582_v42 = vmul.f32 0.5, %v3229_v6 }
 0x1ec   : > { %v1980_v52 = vpack.c.bf16 %v1368_v44, %v1368_v44  ;;  %v1352_v45 = vadd.f32 1.0, %v1320_v26  ;;  %v1206_v23 = vsub.f32 1.0, %v1174_v53 }
 0x1ed   : > { %v1190_v33 = vmul.f32 %v2327_v58, %v1030_v30 }
 0x1ee   : > { %1529 = vst.msk [vmem:[%s2741_s26 + $0x3c] sm:$0xf] %vm1513_vm3, %v1980_v52  ;;  %v1384_v51 = vmul.f32 %v1352_v45, %v584_v16  ;;  %v1270_v61 = vsub.f32 0.0, %v1206_v23 }
 0x1ef   : > { %v1222_v43 = vsub.f32 1.0, %v1190_v33 }
 0x1f0   : > { %v1996_v27 = vpack.c.bf16 %v1384_v51, %v1384_v51  ;;  %v1302_v1 = vsel %vm1238_vm0, %v1206_v23, %v1270_v61 }
 0x1f1   : > { %v1334_v39 = vadd.f32 1.0, %v1302_v1  ;;  %v1286_v41 = vsub.f32 0.0, %v1222_v43 }
 0x1f2   : > { %1545 = vst.msk [vmem:[%s2741_s26 + $0x7c] sm:$0xf] %vm1513_vm3, %v1996_v27 }
 0x1f3   : > { %v1366_v57 = vmul.f32 %v1334_v39, %v566_v21  ;;  %v1318_v4 = vsel %vm1254_vm1, %v1222_v43, %v1286_v41 }
 0x1f4   : > { %v1350_v62 = vadd.f32 1.0, %v1318_v4  ;;  %1552 = sbr.rel (!%p2462_p4) target bundleno = 577 (0x241), region = 36 }
 0x1f5   : > { %v1978_v55 = vpack.c.bf16 %v1366_v57, %v1366_v57 }
 0x1f6   : > { %v1382_v54 = vmul.f32 %v1350_v62, %v582_v42 }
 0x1f7   : > { %1527 = vst.msk [vmem:[%s2741_s26 + $0x34] sm:$0xf] %vm1513_vm3, %v1978_v55 }
 0x1f8   : > { %v1994_v19 = vpack.c.bf16 %v1382_v54, %v1382_v54 }
 0x1fa   : > { %1543 = vst.msk [vmem:[%s2741_s26 + $0x74] sm:$0xf] %vm1513_vm3, %v1994_v19 }
 0x1fb   : > { %s3463_s29 = smov (!%p1555_p8, %s1554_s29), 32 }
 0x1fc   : > { %s1950_s7 = sshll.u32 %s3463_s29, 6 }
 0x1fd   : > { %p1953_p9 = scmp.eq.s32.totalorder %s1950_s7, 0 }
 0x1fe   : > { %s3315_s8 = sshrl.u32 (!%p1953_p9), %s3463_s29, 5 }
 0x1ff   : > { %1563 = sbr.rel (%p1953_p9) target bundleno = 577 (0x241), region = 40  ;;  %p1954_p10 = scmp.le.s32.totalorder (!%p1953_p9), %s3315_s8, 0 }
 0x206   : > { %1840 = sbr.rel (%p1954_p10) target bundleno = 556 (0x22c), region = 112  ;;  %s3456_s15 = smov (!%p1954_p10), %s3309_s6 }
 0x207   : > { %s3457_s20 = smov (!%p1954_p10), %s2741_s26  ;;  %s3324_s23 = smov (!%p1954_p10), 0  }
 0x208   : > { %s3326_s9 = smov (!%p1954_p10), 0  }
 0x20d LB: >> { %v1579_v20 = vld [vmem:[%s2391_s20] sm:$0xf]  ;;  %v1581_v6 = vld [vmem:[%s2391_s20 + $0x4] sm:$0xf]  ;;  %v1583_v31 = vld [vmem:[%s2391_s20 + $0x8] sm:$0xf]  ;;  %s2399_s9 = sphi %s3326_s9, %s1573_s9   ;;  %s2395_s23 = sphi %s3324_s23, %s3458_s23   ;;  %s2391_s20 = sphi %s3457_s20, %s1648_s20   ;;  %s2387_s15 = sphi %s3456_s15, %s1649_s15  }
 0x20e   : >> { %1580 = vst [vmem:[%s2387_s15] sm:$0xf] %v1579_v20  ;;  %1582 = vst [vmem:[%s2387_s15 + $0x4] sm:$0xf] %v1581_v6  ;;  %v1585_v46 = vld [vmem:[%s2391_s20 + $0xc] sm:$0xf]  ;;  %s1643_s10 = sadd.s32 1, %s2395_s23 }
 0x20f   : >> { %1584 = vst [vmem:[%s2387_s15 + $0x8] sm:$0xf] %v1583_v31  ;;  %v1587_v60 = vld [vmem:[%s2391_s20 + $0x10] sm:$0xf]  ;;  %v1589_v22 = vld [vmem:[%s2391_s20 + $0x14] sm:$0xf]  ;;  %p1644_p11 = scmp.ge.s32.totalorder %s1643_s10, %s3315_s8 }
 0x210   : >> { %1586 = vst [vmem:[%s2387_s15 + $0xc] sm:$0xf] %v1585_v46  ;;  %1588 = vst [vmem:[%s2387_s15 + $0x10] sm:$0xf] %v1587_v60  ;;  %v1591_v3 = vld [vmem:[%s2391_s20 + $0x18] sm:$0xf] }
 0x211   : >> { %1590 = vst [vmem:[%s2387_s15 + $0x14] sm:$0xf] %v1589_v22  ;;  %v1593_v49 = vld [vmem:[%s2391_s20 + $0x1c] sm:$0xf]  ;;  %v1595_v48 = vld [vmem:[%s2391_s20 + $0x20] sm:$0xf] }
 0x212   : >> { %1592 = vst [vmem:[%s2387_s15 + $0x18] sm:$0xf] %v1591_v3  ;;  %1594 = vst [vmem:[%s2387_s15 + $0x1c] sm:$0xf] %v1593_v49  ;;  %v1597_v47 = vld [vmem:[%s2391_s20 + $0x24] sm:$0xf] }
 0x213   : >> { %1596 = vst [vmem:[%s2387_s15 + $0x20] sm:$0xf] %v1595_v48  ;;  %v1599_v11 = vld [vmem:[%s2391_s20 + $0x28] sm:$0xf]  ;;  %v1601_v38 = vld [vmem:[%s2391_s20 + $0x2c] sm:$0xf] }
 0x214   : >> { %1598 = vst [vmem:[%s2387_s15 + $0x24] sm:$0xf] %v1597_v47  ;;  %1600 = vst [vmem:[%s2387_s15 + $0x28] sm:$0xf] %v1599_v11  ;;  %v1603_v12 = vld [vmem:[%s2391_s20 + $0x30] sm:$0xf] }
 0x215   : >> { %1602 = vst [vmem:[%s2387_s15 + $0x2c] sm:$0xf] %v1601_v38  ;;  %v1605_v5 = vld [vmem:[%s2391_s20 + $0x34] sm:$0xf]  ;;  %v1607_v17 = vld [vmem:[%s2391_s20 + $0x38] sm:$0xf] }
 0x216   : >> { %1604 = vst [vmem:[%s2387_s15 + $0x30] sm:$0xf] %v1603_v12  ;;  %1606 = vst [vmem:[%s2387_s15 + $0x34] sm:$0xf] %v1605_v5  ;;  %v1609_v29 = vld [vmem:[%s2391_s20 + $0x3c] sm:$0xf] }
 0x217   : >> { %1608 = vst [vmem:[%s2387_s15 + $0x38] sm:$0xf] %v1607_v17  ;;  %v1611_v37 = vld [vmem:[%s2391_s20 + $0x40] sm:$0xf]  ;;  %v1613_v9 = vld [vmem:[%s2391_s20 + $0x44] sm:$0xf] }
 0x218   : >> { %1610 = vst [vmem:[%s2387_s15 + $0x3c] sm:$0xf] %v1609_v29  ;;  %1612 = vst [vmem:[%s2387_s15 + $0x40] sm:$0xf] %v1611_v37  ;;  %v1615_v7 = vld [vmem:[%s2391_s20 + $0x48] sm:$0xf] }
 0x219   : >> { %1614 = vst [vmem:[%s2387_s15 + $0x44] sm:$0xf] %v1613_v9  ;;  %v1617_v50 = vld [vmem:[%s2391_s20 + $0x4c] sm:$0xf]  ;;  %v1619_v35 = vld [vmem:[%s2391_s20 + $0x50] sm:$0xf] }
 0x21a   : >> { %1616 = vst [vmem:[%s2387_s15 + $0x48] sm:$0xf] %v1615_v7  ;;  %1618 = vst [vmem:[%s2387_s15 + $0x4c] sm:$0xf] %v1617_v50  ;;  %v1621_v28 = vld [vmem:[%s2391_s20 + $0x54] sm:$0xf] }
 0x21b   : >> { %1620 = vst [vmem:[%s2387_s15 + $0x50] sm:$0xf] %v1619_v35  ;;  %v1623_v59 = vld [vmem:[%s2391_s20 + $0x58] sm:$0xf]  ;;  %v1625_v10 = vld [vmem:[%s2391_s20 + $0x5c] sm:$0xf] }
 0x21c   : >> { %1622 = vst [vmem:[%s2387_s15 + $0x54] sm:$0xf] %v1621_v28  ;;  %1624 = vst [vmem:[%s2387_s15 + $0x58] sm:$0xf] %v1623_v59  ;;  %v1627_v14 = vld [vmem:[%s2391_s20 + $0x60] sm:$0xf] }
 0x21d   : >> { %1626 = vst [vmem:[%s2387_s15 + $0x5c] sm:$0xf] %v1625_v10  ;;  %v1629_v63 = vld [vmem:[%s2391_s20 + $0x64] sm:$0xf]  ;;  %v1631_v40 = vld [vmem:[%s2391_s20 + $0x68] sm:$0xf] }
 0x21e   : >> { %1628 = vst [vmem:[%s2387_s15 + $0x60] sm:$0xf] %v1627_v14  ;;  %1630 = vst [vmem:[%s2387_s15 + $0x64] sm:$0xf] %v1629_v63  ;;  %v1633_v8 = vld [vmem:[%s2391_s20 + $0x6c] sm:$0xf] }
 0x21f   : >> { %1632 = vst [vmem:[%s2387_s15 + $0x68] sm:$0xf] %v1631_v40  ;;  %v1635_v13 = vld [vmem:[%s2391_s20 + $0x70] sm:$0xf]  ;;  %v1637_v25 = vld [vmem:[%s2391_s20 + $0x74] sm:$0xf] }
 0x220   : >> { %1634 = vst [vmem:[%s2387_s15 + $0x6c] sm:$0xf] %v1633_v8  ;;  %1636 = vst [vmem:[%s2387_s15 + $0x70] sm:$0xf] %v1635_v13  ;;  %v1639_v36 = vld [vmem:[%s2391_s20 + $0x78] sm:$0xf] }
 0x221   : >> { %1638 = vst [vmem:[%s2387_s15 + $0x74] sm:$0xf] %v1637_v25  ;;  %v1641_v18 = vld [vmem:[%s2391_s20 + $0x7c] sm:$0xf]  ;;  %1640 = vst [vmem:[%s2387_s15 + $0x78] sm:$0xf] %v1639_v36 }
 0x222   : >> { %1642 = vst [vmem:[%s2387_s15 + $0x7c] sm:$0xf] %v1641_v18  ;;  %s3465_s10 = smov (%p1644_p11, %s1643_s10), 0  ;;  %s1573_s9 = sadd.s32 1, %s2399_s9  }
 0x223   : >> { %s1955_s11 = sshll.u32 %s3465_s10, 7  ;;  %p1572_p12 = scmp.ge.s32.totalorder %s1573_s9, %s3315_s8 }
 0x224   : >> { %s1648_s20 = scalar_lea.vmem %s2741_s26, %s1955_s11 [#allocation2]   ;;  %s1649_s15 = scalar_lea.vmem %s3309_s6, %s1955_s11  }
 0x225   : >> { %s3458_s23 = smov %s3465_s10  ;;  %1575 = sbr.rel (!%p1572_p12) target bundleno = 525 (0x20d), region = 118 }
 0x22c PF: > { %s3419_s14 = sand.u32 31, %s3463_s29   ;;  %s1998_s17 = sshll.u32 %s3315_s8, 7 }
 0x22d   : > { %s1654_s18 = scalar_lea.vmem %s2741_s26, %s1998_s17 [#allocation2]   ;;  %s1656_s21 = scalar_lea.vmem %s3309_s6, %s1998_s17  }
 0x22e   : > { %p1960_p13 = scmp.le.s32.totalorder %s3419_s14, 0 }
 0x22f   : > { %s2401_s22 = smov (!%p1960_p13), %s1656_s21   ;;  %s2405_s24 = smov (!%p1960_p13), %s1654_s18  }
 0x230   : > { %1854 = sbr.rel (%p1960_p13) target bundleno = 577 (0x241), region = 123  ;;  %s2409_s25 = smov (!%p1960_p13), 0  }
 0x231   : > { %s2413_s12 = smov (!%p1960_p13), 0  }
 0x237 LB: >> { %v1666_v34 = vld [vmem:[%s2407_s24] sm:$0xf]  ;;  %s1668_s27 = sadd.s32 1, %s2411_s25  ;;  %s1660_s12 = sadd.s32 1, %s2415_s12   ;;  %s2415_s12 = sphi %s2413_s12, %s1660_s12   ;;  %s2411_s25 = sphi %s2409_s25, %s2410_s25   ;;  %s2407_s24 = sphi %s2405_s24, %s1673_s24   ;;  %s2403_s22 = sphi %s2401_s22, %s1674_s22  }
 0x238   : >> { %1667 = vst [vmem:[%s2403_s22] sm:$0xf] %v1666_v34  ;;  %p1669_p0 = scmp.ge.s32.totalorder %s1668_s27, %s3419_s14  ;;  %p1659_p1 = scmp.ge.s32.totalorder %s1660_s12, %s3419_s14 }
 0x23a   : >> { %s3467_s27 = smov (%p1669_p0, %s1668_s27), 0  ;;  %1662 = sbr.rel (!%p1659_p1) target bundleno = 567 (0x237), region = 129 }
 0x23b   : >> { %s1961_s26 = sshll.u32 %s3467_s27, 2  ;;  %s2410_s25 = smov %s3467_s27  }
 0x23c   : >> { %s1673_s24 = scalar_lea.vmem %s1654_s18, %s1961_s26 [#allocation2]   ;;  %s1674_s22 = scalar_lea.vmem %s1656_s21, %s1961_s26  }
 0x241 PF: > { %p10_p2 = scmp.ge.s32.totalorder %s2452_s16, 5   ;;  %s3459_s12 = smov %s2379_s13 }
 0x242   : > { %s3460_s13 = smov %s2460_s19  ;;  %s3461_s14 = smov %s2452_s16 }
 0x243   :  { %12 = sbr.rel (!%p10_p2) target bundleno = 2 (0x2), region = 140 }

// kernel: generator_forward.7
= control target key start
LH: loop header
LB: loop body
LE: loop exit
PB: predicated region body
PF: predicated region fallthrough
CT: control target
= control target key end

     0   :  { %s2411_s0 = inlined_call_operand.vmem [shape: bf16[1568,784], index: 0, kind: input, shape index: {}]   ;;  %s2412_s1 = inlined_call_operand.vmem [shape: f32[1,784], index: 1, kind: input, shape index: {}]   ;;  %s2413_s2 = inlined_call_operand.<no memory space> [shape: f32[1,1], index: 2, kind: input, shape index: {}]   ;;  %s2414_s3 = inlined_call_operand.vmem [shape: f32[1568,1], index: 3, kind: output, shape index: {}]  }
   0x1   :  { %v8_v0 = vstv %s2413_s2 }
   0x2   :  { %9 = vst [vmem:[#allocation2] sm:$0x1] %v8_v0 }
   0x3   :  { %s1743_s14 = smov 0   ;;  %s1745_s15 = smov 0  }
   0x4   :  { %s1747_s16 = smov 0  }
   0x5 LB: > { %s1756_s2 = sadd.s32 4294967295, %s1686_s16   ;;  %s1758_s17 = sadd.s32 1, %s1686_s16   ;;  %s1686_s16 = sphi %s1747_s16, %s2423_s16   ;;  %s1682_s15 = sphi %s1745_s15, %s2422_s15   ;;  %s1678_s14 = sphi %s1743_s14, %s2421_s14  }
   0x6   : > { %s87_s18 = ssub.s32 %s1686_s16, %s1758_s17  ;;  %s90_s19 = sadd.s32 1, %s1682_s15 }
   0x7   : > { %p88_p0 = scmp.eq.s32.totalorder %s87_s18, 0  ;;  %p100_p1 = scmp.ne.s32.totalorder %s1682_s15, %s1678_s14 }
   0x8   : > { %p101_p2 = scmp.eq.s32.totalorder %s1756_s2, 6  ;;  %p1518_p3 = scmp.ge.s32.totalorder %s1686_s16, 1 }
   0x9   : > { %s1766_s20 = scalar_select %p88_p0, %s1682_s15, %s90_s19  }
   0xa   : > { %p1768_p4 = por %p101_p2, %p100_p1  ;;  %p151_p5 = scmp.lt.s32.totalorder %s1686_s16, 8 }
   0xc   : > { %p152_p6 = pnand %p1518_p3, %p151_p5 }
   0xd   : > { %s1773_s22 = sshll.u32 (!%p152_p6), %s1756_s2, 5  ;;  %v556_v1 = vlaneseq (!%p152_p6)  ;;  %v554_v3 = vld [vmem:[%s2412_s1] sm:$0x7f] (!%p152_p6)  ;;  %vm820_vm0 = vcmask (!%p152_p6), 130048   ;;  %s177_s30 = sand.u32 (!%p152_p6), 1, %s1678_s14   ;;  %vm1143_vm1 = vcmask (!%p152_p6), 7168  }
   0xe   : > { %155 = sbr.rel (%p152_p6) target bundleno = 404 (0x194), region = 32  ;;  %p186_p7 = scmp.lt.s32.totalorder (!%p152_p6), %s1773_s22, 195 }
   0xf   : > { %v557_v2 = vshrl.u32 (!%p152_p6), %v556_v1, 7  ;;  %s1519_s4 = sshll.u32 (!%p152_p6), %s177_s30, 8 }
  0x10   : > { %s2175_s5 = scalar_lea.vmem (!%p152_p6), [#allocation3], %s1519_s4  }
  0x11   : > { %v558_v4 = vsub.s32 (!%p152_p6), 0, %v557_v2  ;;  %v562_v5 = vsub.s32 (!%p152_p6), 1, %v557_v2  ;;  %v566_v6 = vsub.s32 (!%p152_p6), 2, %v557_v2  ;;  %v570_v7 = vsub.s32 (!%p152_p6), 3, %v557_v2 }
  0x12   : > { %v574_v8 = vsub.s32 (!%p152_p6), 4, %v557_v2  ;;  %v582_v9 = vsub.s32 (!%p152_p6), 6, %v557_v2  ;;  %v578_v10 = vsub.s32 (!%p152_p6), 5, %v557_v2 }
  0x13   : > { %v1785_v11 = vrot.slane (!%p152_p6), %v554_v3, %v558_v4  ;;  %v1787_v12 = vrot.slane (!%p152_p6), %v554_v3, %v562_v5  ;;  %v1789_v13 = vrot.slane (!%p152_p6), %v554_v3, %v566_v6  ;;  %v1794_v17 = vrot.slane (!%p152_p6), %v554_v3, %v570_v7 }
  0x14   : > { %v1796_v18 = vrot.slane (!%p152_p6), %v554_v3, %v574_v8  ;;  %v1798_v19 = vrot.slane (!%p152_p6), %v554_v3, %v582_v9  ;;  %v1802_v28 = vrot.slane (!%p152_p6), %v554_v3, %v578_v10 }
  0x15   : > { %s187_s23 = scalar_select %p186_p7, %s1773_s22, 195 }
  0x16   : > { %s1184_s6 = ssub.s32 (%p1768_p4), 196, %s1773_s22  ;;  %s1540_s7 = sshll.u32 (%p1768_p4), %s1756_s2, 8 }
  0x17   : > { %s1543_s26 = smul.u32 28, %s187_s23  ;;  %p1185_p8 = scmp.lt.s32.totalorder (%p1768_p4), %s1184_s6, 32 }
  0x18   : > { %s2279_s10 = scalar_lea.vmem (%p1768_p4), %s2414_s3, %s1540_s7  }
  0x19   : > { %s1783_s29 = scalar_lea.vmem %s2411_s0, %s1543_s26 }
  0x1a   : > { %v210_v14 = vld [vmem:[%s1783_s29 + $0x38] sm:$0xff]  ;;  %v211_v15 = vld [vmem:[%s1783_s29 + $0x40] sm:$0xff]  ;;  %v212_v16 = vld [vmem:[%s1783_s29 + $0x48] sm:$0xff] }
  0x1b   : > { %v213_v20 = vld [vmem:[%s1783_s29 + $0x18] ss:$56 sps:$4 sm:$0xff]   ;;  %v344_v21 = vunpack.c.l.bf16 %v210_v14  ;;  %v345_v22 = vunpack.c.h.bf16 %v210_v14  ;;  %v346_v23 = vunpack.c.l.bf16 %v211_v15  ;;  %v347_v24 = vunpack.c.h.bf16 %v211_v15  ;;  %v202_v25 = vld [vmem:[%s1783_s29] sm:$0xff]  ;;  %v203_v29 = vld [vmem:[%s1783_s29 + $0x8] sm:$0xff] }
  0x1c   : > { %v348_v26 = vunpack.c.l.bf16 %v212_v16  ;;  %v350_v27 = vunpack.c.h.bf16 %v213_v20  ;;  %v330_v30 = vunpack.c.l.bf16 %v202_v25  ;;  %v349_v31 = vunpack.c.h.bf16 %v212_v16  ;;  %v204_v35 = vld [vmem:[%s1783_s29 + $0x10] sm:$0xff]  ;;  %v215_v48 = vld [vmem:[%s1783_s29 + $0x5c] sm:$0xff]  ;;  %v216_v53 = vld [vmem:[%s1783_s29 + $0x64] sm:$0xff] }
  0x1d   : > { %v605_v32 = vmul.f32 %v1785_v11, %v344_v21  ;;  %v606_v33 = vmul.f32 %v1787_v12, %v345_v22  ;;  %v607_v34 = vmul.f32 %v1789_v13, %v346_v23  ;;  %v608_v36 = vmul.f32 %v1794_v17, %v347_v24  ;;  %v214_v43 = vld [vmem:[%s1783_s29 + $0x54] sm:$0xff]  ;;  %v206_v7 = vld [vmem:[%s1783_s29 + $0x1c] sm:$0xff]  ;;  %v207_v8 = vld [vmem:[%s1783_s29 + $0x24] sm:$0xff] }
  0x1e   : > { %v611_v37 = vmul.f32 %v1798_v19, %v350_v27  ;;  %v331_v38 = vunpack.c.h.bf16 %v202_v25  ;;  %v609_v39 = vmul.f32 %v1796_v18, %v348_v26  ;;  %v332_v41 = vunpack.c.l.bf16 %v203_v29  ;;  %v217_v57 = vld [vmem:[%s1783_s29 + $0x34] ss:$56 sps:$4 sm:$0xff]  }
  0x1f   : > { %v834_v40 = vadd.f32 %v606_v33, %v605_v32  ;;  %v333_v42 = vunpack.c.h.bf16 %v203_v29  ;;  %v334_v44 = vunpack.c.l.bf16 %v204_v35  ;;  %v335_v45 = vunpack.c.h.bf16 %v204_v35  ;;  %v208_v23 = vld [vmem:[%s1783_s29 + $0x2c] sm:$0xff] }
  0x20   : > { %v336_v46 = vunpack.c.l.bf16 %v213_v20  ;;  %v591_v47 = vmul.f32 %v1785_v11, %v330_v30  ;;  %v610_v49 = vmul.f32 %v1802_v28, %v349_v31  ;;  %v592_v51 = vmul.f32 %v1787_v12, %v331_v38 }
  0x21   : > { %v835_v50 = vadd.f32 %v834_v40, %v607_v34  ;;  %v593_v52 = vmul.f32 %v1789_v13, %v332_v41  ;;  %v839_v54 = vsel %vm820_vm0, %v611_v37, 0.0  ;;  %v594_v55 = vmul.f32 %v1794_v17, %v333_v42  ;;  %v222_v37 = vld [vmem:[%s1783_s29 + $0x8c] sm:$0xff]  ;;  %v223_v42 = vld [vmem:[%s1783_s29 + $0x94] sm:$0xff] }
  0x22   : > { %v597_v56 = vmul.f32 %v1798_v19, %v336_v46  ;;  %v351_v58 = vunpack.c.l.bf16 %v214_v43  ;;  %v815_v60 = vadd.f32 %v592_v51, %v591_v47  ;;  %v352_v61 = vunpack.c.h.bf16 %v214_v43  ;;  %v224_v47 = vld [vmem:[%s1783_s29 + $0x9c] sm:$0xff]  ;;  %v225_v51 = vld [vmem:[%s1783_s29 + $0x88] ss:$28 sps:$4 sm:$0xff]  }
  0x23   : > { %v836_v59 = vadd.f32 %v835_v50, %v608_v36  ;;  %v353_v62 = vunpack.c.l.bf16 %v215_v48  ;;  %v595_v63 = vmul.f32 %v1796_v18, %v334_v44  ;;  %v596_v0 = vmul.f32 %v1802_v28, %v335_v45 }
  0x24   : > { %v354_v1 = vunpack.c.h.bf16 %v215_v48  ;;  %v355_v2 = vunpack.c.l.bf16 %v216_v53  ;;  %v816_v4 = vadd.f32 %v815_v60, %v593_v52  ;;  %v357_v5 = vunpack.c.h.bf16 %v217_v57 }
  0x25   : > { %v837_v3 = vadd.f32 %v836_v59, %v609_v39  ;;  %v612_v6 = vmul.f32 %v1785_v11, %v351_v58  ;;  %v821_v9 = vsel %vm820_vm0, %v597_v56, 0.0  ;;  %v356_v10 = vunpack.c.h.bf16 %v216_v53 }
  0x26   : > { %v613_v14 = vmul.f32 %v1787_v12, %v352_v61  ;;  %v614_v15 = vmul.f32 %v1789_v13, %v353_v62  ;;  %v817_v20 = vadd.f32 %v816_v4, %v594_v55  ;;  %v615_v21 = vmul.f32 %v1794_v17, %v354_v1  ;;  %v218_v1 = vld [vmem:[%s1783_s29 + $0x70] sm:$0xff] }
  0x27   : > { %v838_v16 = vadd.f32 %v837_v3, %v610_v49  ;;  %v618_v22 = vmul.f32 %v1798_v19, %v357_v5  ;;  %v337_v25 = vunpack.c.l.bf16 %v206_v7  ;;  %v338_v26 = vunpack.c.h.bf16 %v206_v7  ;;  %v220_v7 = vld [vmem:[%s1783_s29 + $0x80] sm:$0xff] }
  0x28   : > { %v843_v24 = vadd.f32 %v613_v14, %v612_v6  ;;  %v339_v27 = vunpack.c.l.bf16 %v207_v8  ;;  %v818_v30 = vadd.f32 %v817_v20, %v595_v63  ;;  %v616_v31 = vmul.f32 %v1796_v18, %v355_v2  ;;  %v219_v2 = vld [vmem:[%s1783_s29 + $0x78] sm:$0xff] }
  0x29   : > { %v840_v29 = vadd.f32 %v839_v54, %v838_v16  ;;  %v340_v32 = vunpack.c.h.bf16 %v207_v8  ;;  %v341_v34 = vunpack.c.l.bf16 %v208_v23  ;;  %v342_v35 = vunpack.c.h.bf16 %v208_v23 }
  0x2a   : > { %v844_v33 = vadd.f32 %v843_v24, %v614_v15  ;;  %v343_v36 = vunpack.c.l.bf16 %v217_v57  ;;  %v819_v38 = vadd.f32 %v818_v30, %v596_v0  ;;  %v598_v39 = vmul.f32 %v1785_v11, %v337_v25 }
  0x2b   : > { %841 = vadd.xlane.f32.xlu1 %v840_v29  ;;  %v599_v40 = vmul.f32 %v1787_v12, %v338_v26  ;;  %v600_v41 = vmul.f32 %v1789_v13, %v339_v27  ;;  %v617_v43 = vmul.f32 %v1802_v28, %v356_v10  ;;  %v848_v45 = vsel %vm820_vm0, %v618_v22, 0.0 }
  0x2c   : > { %v845_v44 = vadd.f32 %v844_v33, %v615_v21  ;;  %v601_v46 = vmul.f32 %v1794_v17, %v340_v32  ;;  %v822_v48 = vadd.f32 %v821_v9, %v819_v38  ;;  %v604_v49 = vmul.f32 %v1798_v19, %v343_v36  ;;  %v231_v36 = vld [vmem:[%s1783_s29 + $0xcc] sm:$0xff] }
  0x2d   : > { %v825_v50 = vadd.f32 %v599_v40, %v598_v39  ;;  %v365_v52 = vunpack.c.l.bf16 %v222_v37  ;;  %v366_v54 = vunpack.c.h.bf16 %v222_v37  ;;  %v367_v55 = vunpack.c.l.bf16 %v223_v42 }
  0x2e   : > { %v846_v53 = vadd.f32 %v845_v44, %v616_v31  ;;  %v368_v56 = vunpack.c.h.bf16 %v223_v42  ;;  %823 = vadd.xlane.f32.xlu0 %v822_v48  ;;  %v602_v57 = vmul.f32 %v1796_v18, %v341_v34  ;;  %v603_v58 = vmul.f32 %v1802_v28, %v342_v35  ;;  %v230_v31 = vld [vmem:[%s1783_s29 + $0xc4] sm:$0xff]  ;;  %v233_v42 = vld [vmem:[%s1783_s29 + $0xc0] ss:$28 sps:$4 sm:$0xff]  }
  0x2f   : > { %v826_v59 = vadd.f32 %v825_v50, %v600_v41  ;;  %v369_v60 = vunpack.c.l.bf16 %v224_v47  ;;  %v371_v62 = vunpack.c.h.bf16 %v225_v51  ;;  %v626_v63 = vmul.f32 %v1785_v11, %v365_v52  ;;  %v232_v41 = vld [vmem:[%s1783_s29 + $0xd4] sm:$0xff] }
  0x30   : > { %v847_v61 = vadd.f32 %v846_v53, %v617_v43  ;;  %v627_v0 = vmul.f32 %v1787_v12, %v366_v54  ;;  %v830_v4 = vsel %vm820_vm0, %v604_v49, 0.0  ;;  %v370_v5 = vunpack.c.h.bf16 %v224_v47 }
  0x31   : > { %v827_v3 = vadd.f32 %v826_v59, %v601_v46  ;;  %v628_v6 = vmul.f32 %v1789_v13, %v367_v55  ;;  %v629_v9 = vmul.f32 %v1794_v17, %v368_v56  ;;  %v632_v10 = vmul.f32 %v1798_v19, %v371_v62  ;;  %v226_v55 = vld [vmem:[%s1783_s29 + $0xa8] sm:$0xff] }
  0x32   : > { %v849_v8 = vadd.f32 %v848_v45, %v847_v61  ;;  %v861_v14 = vadd.f32 %v627_v0, %v626_v63  ;;  %v358_v16 = vunpack.c.l.bf16 %v218_v1  ;;  %v359_v20 = vunpack.c.h.bf16 %v218_v1  ;;  %v228_v1 = vld [vmem:[%s1783_s29 + $0xb8] sm:$0xff] }
  0x33   : > { %v828_v15 = vadd.f32 %v827_v3, %v602_v57  ;;  %v360_v21 = vunpack.c.l.bf16 %v219_v2  ;;  %v630_v22 = vmul.f32 %v1796_v18, %v369_v60  ;;  %v361_v24 = vunpack.c.h.bf16 %v219_v2  ;;  %v227_v60 = vld [vmem:[%s1783_s29 + $0xb0] sm:$0xff] }
  0x34   : > { %850 = vadd.xlane.f32.xlu1 %v849_v8  ;;  %v862_v23 = vadd.f32 %v861_v14, %v628_v6  ;;  %v362_v25 = vunpack.c.l.bf16 %v220_v7  ;;  %v363_v27 = vunpack.c.h.bf16 %v220_v7  ;;  %v364_v29 = vunpack.c.l.bf16 %v225_v51 }
  0x35   : > { %v829_v26 = vadd.f32 %v828_v15, %v603_v58  ;;  %v619_v30 = vmul.f32 %v1785_v11, %v358_v16  ;;  %v631_v32 = vmul.f32 %v1802_v28, %v370_v5  ;;  %v620_v34 = vmul.f32 %v1787_v12, %v359_v20  ;;  %v238_v20 = vld [vmem:[%s1783_s29 + $0xfc] sm:$0xff] }
  0x36   : > { %v863_v33 = vadd.f32 %v862_v23, %v629_v9  ;;  %v621_v35 = vmul.f32 %v1789_v13, %v360_v21  ;;  %v866_v38 = vsel %vm820_vm0, %v632_v10, 0.0  ;;  %v622_v39 = vmul.f32 %v1794_v17, %v361_v24 }
  0x37   : > { %v831_v37 = vadd.f32 %v830_v4, %v829_v26  ;;  %v625_v40 = vmul.f32 %v1798_v19, %v364_v29  ;;  %v852_v44 = vadd.f32 %v620_v34, %v619_v30  ;;  %v379_v45 = vunpack.c.l.bf16 %v230_v31 }
  0x38   : > { %v864_v43 = vadd.f32 %v863_v33, %v630_v22  ;;  %v380_v46 = vunpack.c.h.bf16 %v230_v31  ;;  %v623_v47 = vmul.f32 %v1796_v18, %v362_v25  ;;  %v624_v48 = vmul.f32 %v1802_v28, %v363_v27  ;;  %v239_v25 = vld [vmem:[%s1783_s29 + $0x104] sm:$0xff]  ;;  %v240_v31 = vld [vmem:[%s1783_s29 + $0x10c] sm:$0xff] }
  0x39   : > { %832 = vadd.xlane.f32.xlu0 %v831_v37  ;;  %v381_v49 = vunpack.c.l.bf16 %v231_v36  ;;  %v382_v50 = vunpack.c.h.bf16 %v231_v36  ;;  %v853_v52 = vadd.f32 %v852_v44, %v621_v35  ;;  %v383_v53 = vunpack.c.l.bf16 %v232_v41  ;;  %v241_v35 = vld [vmem:[%s1783_s29 + $0xf8] ss:$28 sps:$4 sm:$0xff]  }
  0x3a   : > { %v865_v51 = vadd.f32 %v864_v43, %v631_v32  ;;  %v385_v54 = vunpack.c.h.bf16 %v233_v42  ;;  %v857_v56 = vsel %vm820_vm0, %v625_v40, 0.0  ;;  %v640_v57 = vmul.f32 %v1785_v11, %v379_v45 }
  0x3b   : > { %v641_v58 = vmul.f32 %v1787_v12, %v380_v46  ;;  %v642_v59 = vmul.f32 %v1789_v13, %v381_v49  ;;  %v854_v62 = vadd.f32 %v853_v52, %v622_v39  ;;  %v384_v63 = vunpack.c.h.bf16 %v232_v41  ;;  %v234_v49 = vld [vmem:[%s1783_s29 + $0xe0] sm:$0xff] }
  0x3c   : > { %v867_v61 = vadd.f32 %v866_v38, %v865_v51  ;;  %v643_v0 = vmul.f32 %v1794_v17, %v382_v50  ;;  %v646_v2 = vmul.f32 %v1798_v19, %v385_v54  ;;  %v372_v4 = vunpack.c.l.bf16 %v226_v55  ;;  %v235_v50 = vld [vmem:[%s1783_s29 + $0xe8] sm:$0xff] }
  0x3d   : > { %v879_v3 = vadd.f32 %v641_v58, %v640_v57  ;;  %v373_v5 = vunpack.c.h.bf16 %v226_v55  ;;  %v855_v6 = vadd.f32 %v854_v62, %v623_v47  ;;  %v644_v7 = vmul.f32 %v1796_v18, %v383_v53  ;;  %v236_v55 = vld [vmem:[%s1783_s29 + $0xf0] sm:$0xff] }
  0x3e   : > { %868 = vadd.xlane.f32.xlu1 %v867_v61  ;;  %v374_v8 = vunpack.c.l.bf16 %v227_v60  ;;  %v375_v9 = vunpack.c.h.bf16 %v227_v60  ;;  %v376_v14 = vunpack.c.l.bf16 %v228_v1  ;;  %v377_v15 = vunpack.c.h.bf16 %v228_v1 }
  0x3f   : > { %v880_v10 = vadd.f32 %v879_v3, %v642_v59  ;;  %v378_v16 = vunpack.c.l.bf16 %v233_v42  ;;  %v856_v21 = vadd.f32 %v855_v6, %v624_v48  ;;  %v633_v22 = vmul.f32 %v1785_v11, %v372_v4 }
  0x40   : > { %v634_v23 = vmul.f32 %v1787_v12, %v373_v5  ;;  %v635_v24 = vmul.f32 %v1789_v13, %v374_v8  ;;  %v645_v26 = vmul.f32 %v1802_v28, %v384_v63  ;;  %v884_v29 = vsel %vm820_vm0, %v646_v2, 0.0  ;;  %v246_v8 = vld [vmem:[%s1783_s29 + $0x134] sm:$0xff] }
  0x41   : > { %v881_v27 = vadd.f32 %v880_v10, %v643_v0  ;;  %v636_v30 = vmul.f32 %v1794_v17, %v375_v9  ;;  %v858_v32 = vadd.f32 %v857_v56, %v856_v21  ;;  %v639_v33 = vmul.f32 %v1798_v19, %v378_v16  ;;  %v247_v16 = vld [vmem:[%s1783_s29 + $0x13c] sm:$0xff] }
  0x42   : > { %v870_v34 = vadd.f32 %v634_v23, %v633_v22  ;;  %v393_v36 = vunpack.c.l.bf16 %v238_v20  ;;  %v394_v38 = vunpack.c.h.bf16 %v238_v20  ;;  %v395_v39 = vunpack.c.l.bf16 %v239_v25 }
  0x43   : > { %v882_v37 = vadd.f32 %v881_v27, %v644_v7  ;;  %v396_v40 = vunpack.c.h.bf16 %v239_v25  ;;  %859 = vadd.xlane.f32.xlu0 %v858_v32  ;;  %v637_v41 = vmul.f32 %v1796_v18, %v376_v14  ;;  %v638_v42 = vmul.f32 %v1802_v28, %v377_v15  ;;  %v249_v25 = vld [vmem:[%s1783_s29 + $0x130] ss:$28 sps:$4 sm:$0xff]  }
  0x44   : > { %v871_v43 = vadd.f32 %v870_v34, %v635_v24  ;;  %v397_v44 = vunpack.c.l.bf16 %v240_v31  ;;  %v399_v46 = vunpack.c.h.bf16 %v241_v35  ;;  %v654_v47 = vmul.f32 %v1785_v11, %v393_v36  ;;  %v248_v24 = vld [vmem:[%s1783_s29 + $0x144] sm:$0xff] }
  0x45   : > { %v883_v45 = vadd.f32 %v882_v37, %v645_v26  ;;  %v655_v48 = vmul.f32 %v1787_v12, %v394_v38  ;;  %v875_v52 = vsel %vm820_vm0, %v639_v33, 0.0  ;;  %v398_v53 = vunpack.c.h.bf16 %v240_v31 }
  0x46   : > { %v872_v51 = vadd.f32 %v871_v43, %v636_v30  ;;  %v656_v54 = vmul.f32 %v1789_v13, %v395_v39  ;;  %v657_v57 = vmul.f32 %v1794_v17, %v396_v40  ;;  %v660_v58 = vmul.f32 %v1798_v19, %v399_v46  ;;  %v242_v39 = vld [vmem:[%s1783_s29 + $0x118] sm:$0xff] }
  0x47   : > { %v885_v56 = vadd.f32 %v884_v29, %v883_v45  ;;  %v897_v59 = vadd.f32 %v655_v48, %v654_v47  ;;  %v386_v61 = vunpack.c.l.bf16 %v234_v49  ;;  %v387_v62 = vunpack.c.h.bf16 %v234_v49  ;;  %v244_v49 = vld [vmem:[%s1783_s29 + $0x128] sm:$0xff] }
  0x48   : > { %v873_v60 = vadd.f32 %v872_v51, %v637_v41  ;;  %v388_v63 = vunpack.c.l.bf16 %v235_v50  ;;  %v658_v0 = vmul.f32 %v1796_v18, %v397_v44  ;;  %v389_v2 = vunpack.c.h.bf16 %v235_v50  ;;  %v243_v44 = vld [vmem:[%s1783_s29 + $0x120] sm:$0xff] }
  0x49   : > { %886 = vadd.xlane.f32.xlu1 %v885_v56  ;;  %v898_v1 = vadd.f32 %v897_v59, %v656_v54  ;;  %v390_v3 = vunpack.c.l.bf16 %v236_v55  ;;  %v391_v5 = vunpack.c.h.bf16 %v236_v55  ;;  %v392_v6 = vunpack.c.l.bf16 %v241_v35 }
  0x4a   : > { %v874_v4 = vadd.f32 %v873_v60, %v638_v42  ;;  %v647_v7 = vmul.f32 %v1785_v11, %v386_v61  ;;  %v659_v9 = vmul.f32 %v1802_v28, %v398_v53  ;;  %v648_v14 = vmul.f32 %v1787_v12, %v387_v62  ;;  %v254_v62 = vld [vmem:[%s1783_s29 + $0x16c] sm:$0xff] }
  0x4b   : > { %v899_v10 = vadd.f32 %v898_v1, %v657_v57  ;;  %v649_v15 = vmul.f32 %v1789_v13, %v388_v63  ;;  %v902_v21 = vsel %vm820_vm0, %v660_v58, 0.0  ;;  %v650_v22 = vmul.f32 %v1794_v17, %v389_v2 }
  0x4c   : > { %v876_v20 = vadd.f32 %v875_v52, %v874_v4  ;;  %v653_v23 = vmul.f32 %v1798_v19, %v392_v6  ;;  %v888_v27 = vadd.f32 %v648_v14, %v647_v7  ;;  %v407_v29 = vunpack.c.l.bf16 %v246_v8 }
  0x4d   : > { %v900_v26 = vadd.f32 %v899_v10, %v658_v0  ;;  %v408_v30 = vunpack.c.h.bf16 %v246_v8  ;;  %v651_v31 = vmul.f32 %v1796_v18, %v390_v3  ;;  %v652_v32 = vmul.f32 %v1802_v28, %v391_v5  ;;  %v255_v3 = vld [vmem:[%s1783_s29 + $0x174] sm:$0xff]  ;;  %v256_v8 = vld [vmem:[%s1783_s29 + $0x17c] sm:$0xff] }
  0x4e   : > { %877 = vadd.xlane.f32.xlu0 %v876_v20  ;;  %v409_v33 = vunpack.c.l.bf16 %v247_v16  ;;  %v410_v34 = vunpack.c.h.bf16 %v247_v16  ;;  %v889_v36 = vadd.f32 %v888_v27, %v649_v15  ;;  %v411_v37 = vunpack.c.l.bf16 %v248_v24  ;;  %v257_v15 = vld [vmem:[%s1783_s29 + $0x168] ss:$28 sps:$4 sm:$0xff]  }
  0x4f   : > { %v901_v35 = vadd.f32 %v900_v26, %v659_v9  ;;  %v413_v38 = vunpack.c.h.bf16 %v249_v25  ;;  %v893_v40 = vsel %vm820_vm0, %v653_v23, 0.0  ;;  %v668_v41 = vmul.f32 %v1785_v11, %v407_v29 }
  0x50   : > { %v669_v42 = vmul.f32 %v1787_v12, %v408_v30  ;;  %v670_v43 = vmul.f32 %v1789_v13, %v409_v33  ;;  %v890_v46 = vadd.f32 %v889_v36, %v650_v22  ;;  %v412_v47 = vunpack.c.h.bf16 %v248_v24  ;;  %v250_v33 = vld [vmem:[%s1783_s29 + $0x150] sm:$0xff] }
  0x51   : > { %v903_v45 = vadd.f32 %v902_v21, %v901_v35  ;;  %v671_v48 = vmul.f32 %v1794_v17, %v410_v34  ;;  %v674_v50 = vmul.f32 %v1798_v19, %v413_v38  ;;  %v400_v52 = vunpack.c.l.bf16 %v242_v39  ;;  %v251_v34 = vld [vmem:[%s1783_s29 + $0x158] sm:$0xff] }
  0x52   : > { %v915_v51 = vadd.f32 %v669_v42, %v668_v41  ;;  %v401_v53 = vunpack.c.h.bf16 %v242_v39  ;;  %v891_v54 = vadd.f32 %v890_v46, %v651_v31  ;;  %v672_v55 = vmul.f32 %v1796_v18, %v411_v37  ;;  %v252_v39 = vld [vmem:[%s1783_s29 + $0x160] sm:$0xff] }
  0x53   : > { %904 = vadd.xlane.f32.xlu1 %v903_v45  ;;  %v402_v56 = vunpack.c.l.bf16 %v243_v44  ;;  %v403_v57 = vunpack.c.h.bf16 %v243_v44  ;;  %v404_v59 = vunpack.c.l.bf16 %v244_v49  ;;  %v405_v60 = vunpack.c.h.bf16 %v244_v49 }
  0x54   : > { %v916_v58 = vadd.f32 %v915_v51, %v670_v43  ;;  %v406_v61 = vunpack.c.l.bf16 %v249_v25  ;;  %v892_v63 = vadd.f32 %v891_v54, %v652_v32  ;;  %v661_v0 = vmul.f32 %v1785_v11, %v400_v52 }
  0x55   : > { %v662_v1 = vmul.f32 %v1787_v12, %v401_v53  ;;  %v663_v2 = vmul.f32 %v1789_v13, %v402_v56  ;;  %v673_v4 = vmul.f32 %v1802_v28, %v412_v47  ;;  %v920_v6 = vsel %vm820_vm0, %v674_v50, 0.0  ;;  %v262_v56 = vld [vmem:[%s1783_s29 + $0x1a4] sm:$0xff] }
  0x56   : > { %v917_v5 = vadd.f32 %v916_v58, %v671_v48  ;;  %v664_v7 = vmul.f32 %v1794_v17, %v403_v57  ;;  %v894_v9 = vadd.f32 %v893_v40, %v892_v63  ;;  %v667_v10 = vmul.f32 %v1798_v19, %v406_v61  ;;  %v263_v61 = vld [vmem:[%s1783_s29 + $0x1ac] sm:$0xff] }
  0x57   : > { %v906_v14 = vadd.f32 %v662_v1, %v661_v0  ;;  %v421_v16 = vunpack.c.l.bf16 %v254_v62  ;;  %v422_v21 = vunpack.c.h.bf16 %v254_v62  ;;  %v423_v22 = vunpack.c.l.bf16 %v255_v3 }
  0x58   : > { %v918_v20 = vadd.f32 %v917_v5, %v672_v55  ;;  %v424_v23 = vunpack.c.h.bf16 %v255_v3  ;;  %895 = vadd.xlane.f32.xlu0 %v894_v9  ;;  %v665_v24 = vmul.f32 %v1796_v18, %v404_v59  ;;  %v666_v25 = vmul.f32 %v1802_v28, %v405_v60  ;;  %v265_v3 = vld [vmem:[%s1783_s29 + $0x1a0] ss:$28 sps:$4 sm:$0xff]  }
  0x59   : > { %v907_v26 = vadd.f32 %v906_v14, %v663_v2  ;;  %v425_v27 = vunpack.c.l.bf16 %v256_v8  ;;  %v427_v30 = vunpack.c.h.bf16 %v257_v15  ;;  %v682_v31 = vmul.f32 %v1785_v11, %v421_v16  ;;  %v264_v2 = vld [vmem:[%s1783_s29 + $0x1b4] sm:$0xff] }
  0x5a   : > { %v919_v29 = vadd.f32 %v918_v20, %v673_v4  ;;  %v683_v32 = vmul.f32 %v1787_v12, %v422_v21  ;;  %v911_v36 = vsel %vm820_vm0, %v667_v10, 0.0  ;;  %v426_v37 = vunpack.c.h.bf16 %v256_v8 }
  0x5b   : > { %v908_v35 = vadd.f32 %v907_v26, %v664_v7  ;;  %v684_v38 = vmul.f32 %v1789_v13, %v423_v22  ;;  %v685_v41 = vmul.f32 %v1794_v17, %v424_v23  ;;  %v688_v42 = vmul.f32 %v1798_v19, %v427_v30  ;;  %v258_v22 = vld [vmem:[%s1783_s29 + $0x188] sm:$0xff] }
  0x5c   : > { %v921_v40 = vadd.f32 %v920_v6, %v919_v29  ;;  %v933_v43 = vadd.f32 %v683_v32, %v682_v31  ;;  %v414_v45 = vunpack.c.l.bf16 %v250_v33  ;;  %v415_v46 = vunpack.c.h.bf16 %v250_v33  ;;  %v260_v33 = vld [vmem:[%s1783_s29 + $0x198] sm:$0xff] }
  0x5d   : > { %v909_v44 = vadd.f32 %v908_v35, %v665_v24  ;;  %v416_v47 = vunpack.c.l.bf16 %v251_v34  ;;  %v686_v48 = vmul.f32 %v1796_v18, %v425_v27  ;;  %v417_v50 = vunpack.c.h.bf16 %v251_v34  ;;  %v259_v27 = vld [vmem:[%s1783_s29 + $0x190] sm:$0xff] }
  0x5e   : > { %922 = vadd.xlane.f32.xlu1 %v921_v40  ;;  %v934_v49 = vadd.f32 %v933_v43, %v684_v38  ;;  %v418_v51 = vunpack.c.l.bf16 %v252_v39  ;;  %v419_v53 = vunpack.c.h.bf16 %v252_v39  ;;  %v420_v54 = vunpack.c.l.bf16 %v257_v15 }
  0x5f   : > { %v910_v52 = vadd.f32 %v909_v44, %v666_v25  ;;  %v675_v55 = vmul.f32 %v1785_v11, %v414_v45  ;;  %v687_v57 = vmul.f32 %v1802_v28, %v426_v37  ;;  %v676_v59 = vmul.f32 %v1787_v12, %v415_v46  ;;  %v270_v46 = vld [vmem:[%s1783_s29 + $0x1dc] sm:$0xff] }
  0x60   : > { %v935_v58 = vadd.f32 %v934_v49, %v685_v41  ;;  %v677_v60 = vmul.f32 %v1789_v13, %v416_v47  ;;  %v938_v63 = vsel %vm820_vm0, %v688_v42, 0.0  ;;  %v678_v0 = vmul.f32 %v1794_v17, %v417_v50 }
  0x61   : > { %v912_v62 = vadd.f32 %v911_v36, %v910_v52  ;;  %v681_v1 = vmul.f32 %v1798_v19, %v420_v54  ;;  %v924_v5 = vadd.f32 %v676_v59, %v675_v55  ;;  %v435_v6 = vunpack.c.l.bf16 %v262_v56 }
  0x62   : > { %v936_v4 = vadd.f32 %v935_v58, %v686_v48  ;;  %v436_v7 = vunpack.c.h.bf16 %v262_v56  ;;  %v679_v8 = vmul.f32 %v1796_v18, %v418_v51  ;;  %v680_v9 = vmul.f32 %v1802_v28, %v419_v53  ;;  %v271_v51 = vld [vmem:[%s1783_s29 + $0x1e4] sm:$0xff]  ;;  %v272_v56 = vld [vmem:[%s1783_s29 + $0x1ec] sm:$0xff] }
  0x63   : > { %913 = vadd.xlane.f32.xlu0 %v912_v62  ;;  %v437_v10 = vunpack.c.l.bf16 %v263_v61  ;;  %v438_v14 = vunpack.c.h.bf16 %v263_v61  ;;  %v925_v16 = vadd.f32 %v924_v5, %v677_v60  ;;  %v439_v20 = vunpack.c.l.bf16 %v264_v2  ;;  %v273_v60 = vld [vmem:[%s1783_s29 + $0x1d8] ss:$28 sps:$4 sm:$0xff]  }
  0x64   : > { %v937_v15 = vadd.f32 %v936_v4, %v687_v57  ;;  %v441_v21 = vunpack.c.h.bf16 %v265_v3  ;;  %v929_v23 = vsel %vm820_vm0, %v681_v1, 0.0  ;;  %v696_v24 = vmul.f32 %v1785_v11, %v435_v6 }
  0x65   : > { %v697_v25 = vmul.f32 %v1787_v12, %v436_v7  ;;  %v698_v26 = vmul.f32 %v1789_v13, %v437_v10  ;;  %v926_v30 = vadd.f32 %v925_v16, %v678_v0  ;;  %v440_v31 = vunpack.c.h.bf16 %v264_v2  ;;  %v266_v10 = vld [vmem:[%s1783_s29 + $0x1c0] sm:$0xff] }
  0x66   : > { %v939_v29 = vadd.f32 %v938_v63, %v937_v15  ;;  %v699_v32 = vmul.f32 %v1794_v17, %v438_v14  ;;  %v702_v34 = vmul.f32 %v1798_v19, %v441_v21  ;;  %v428_v36 = vunpack.c.l.bf16 %v258_v22  ;;  %v267_v14 = vld [vmem:[%s1783_s29 + $0x1c8] sm:$0xff] }
  0x67   : > { %v951_v35 = vadd.f32 %v697_v25, %v696_v24  ;;  %v429_v37 = vunpack.c.h.bf16 %v258_v22  ;;  %v927_v38 = vadd.f32 %v926_v30, %v679_v8  ;;  %v700_v39 = vmul.f32 %v1796_v18, %v439_v20  ;;  %v268_v22 = vld [vmem:[%s1783_s29 + $0x1d0] sm:$0xff] }
  0x68   : > { %940 = vadd.xlane.f32.xlu1 %v939_v29  ;;  %v430_v40 = vunpack.c.l.bf16 %v259_v27  ;;  %v431_v41 = vunpack.c.h.bf16 %v259_v27  ;;  %v432_v43 = vunpack.c.l.bf16 %v260_v33  ;;  %v433_v44 = vunpack.c.h.bf16 %v260_v33 }
  0x69   : > { %v952_v42 = vadd.f32 %v951_v35, %v698_v26  ;;  %v434_v45 = vunpack.c.l.bf16 %v265_v3  ;;  %v928_v47 = vadd.f32 %v927_v38, %v680_v9  ;;  %v689_v48 = vmul.f32 %v1785_v11, %v428_v36 }
  0x6a   : > { %v690_v49 = vmul.f32 %v1787_v12, %v429_v37  ;;  %v691_v50 = vmul.f32 %v1789_v13, %v430_v40  ;;  %v701_v52 = vmul.f32 %v1802_v28, %v440_v31  ;;  %v956_v54 = vsel %vm820_vm0, %v702_v34, 0.0  ;;  %v278_v40 = vld [vmem:[%s1783_s29 + $0x214] sm:$0xff] }
  0x6b   : > { %v953_v53 = vadd.f32 %v952_v42, %v699_v32  ;;  %v692_v55 = vmul.f32 %v1794_v17, %v431_v41  ;;  %v930_v57 = vadd.f32 %v929_v23, %v928_v47  ;;  %v695_v58 = vmul.f32 %v1798_v19, %v434_v45  ;;  %v279_v45 = vld [vmem:[%s1783_s29 + $0x21c] sm:$0xff] }
  0x6c   : > { %v942_v59 = vadd.f32 %v690_v49, %v689_v48  ;;  %v449_v61 = vunpack.c.l.bf16 %v270_v46  ;;  %v450_v63 = vunpack.c.h.bf16 %v270_v46  ;;  %v451_v0 = vunpack.c.l.bf16 %v271_v51 }
  0x6d   : > { %v954_v62 = vadd.f32 %v953_v53, %v700_v39  ;;  %v452_v1 = vunpack.c.h.bf16 %v271_v51  ;;  %931 = vadd.xlane.f32.xlu0 %v930_v57  ;;  %v693_v2 = vmul.f32 %v1796_v18, %v432_v43  ;;  %v694_v3 = vmul.f32 %v1802_v28, %v433_v44  ;;  %v281_v51 = vld [vmem:[%s1783_s29 + $0x210] ss:$28 sps:$4 sm:$0xff]  }
  0x6e   : > { %v943_v4 = vadd.f32 %v942_v59, %v691_v50  ;;  %v453_v5 = vunpack.c.l.bf16 %v272_v56  ;;  %v455_v7 = vunpack.c.h.bf16 %v273_v60  ;;  %v710_v8 = vmul.f32 %v1785_v11, %v449_v61  ;;  %v280_v50 = vld [vmem:[%s1783_s29 + $0x224] sm:$0xff] }
  0x6f   : > { %v955_v6 = vadd.f32 %v954_v62, %v701_v52  ;;  %v711_v9 = vmul.f32 %v1787_v12, %v450_v63  ;;  %v947_v16 = vsel %vm820_vm0, %v695_v58, 0.0  ;;  %v454_v20 = vunpack.c.h.bf16 %v272_v56 }
  0x70   : > { %v944_v15 = vadd.f32 %v943_v4, %v692_v55  ;;  %v712_v21 = vmul.f32 %v1789_v13, %v451_v0  ;;  %v713_v24 = vmul.f32 %v1794_v17, %v452_v1  ;;  %v716_v25 = vmul.f32 %v1798_v19, %v455_v7  ;;  %v274_v0 = vld [vmem:[%s1783_s29 + $0x1f8] sm:$0xff] }
  0x71   : > { %v957_v23 = vadd.f32 %v956_v54, %v955_v6  ;;  %v969_v26 = vadd.f32 %v711_v9, %v710_v8  ;;  %v442_v29 = vunpack.c.l.bf16 %v266_v10  ;;  %v443_v30 = vunpack.c.h.bf16 %v266_v10  ;;  %v276_v10 = vld [vmem:[%s1783_s29 + $0x208] sm:$0xff] }
  0x72   : > { %v945_v27 = vadd.f32 %v944_v15, %v693_v2  ;;  %v444_v31 = vunpack.c.l.bf16 %v267_v14  ;;  %v714_v32 = vmul.f32 %v1796_v18, %v453_v5  ;;  %v445_v34 = vunpack.c.h.bf16 %v267_v14  ;;  %v275_v5 = vld [vmem:[%s1783_s29 + $0x200] sm:$0xff] }
  0x73   : > { %958 = vadd.xlane.f32.xlu1 %v957_v23  ;;  %v970_v33 = vadd.f32 %v969_v26, %v712_v21  ;;  %v446_v35 = vunpack.c.l.bf16 %v268_v22  ;;  %v447_v37 = vunpack.c.h.bf16 %v268_v22  ;;  %v448_v38 = vunpack.c.l.bf16 %v273_v60 }
  0x74   : > { %v946_v36 = vadd.f32 %v945_v27, %v694_v3  ;;  %v703_v39 = vmul.f32 %v1785_v11, %v442_v29  ;;  %v715_v41 = vmul.f32 %v1802_v28, %v454_v20  ;;  %v704_v43 = vmul.f32 %v1787_v12, %v443_v30  ;;  %v286_v30 = vld [vmem:[%s1783_s29 + $0x24c] sm:$0xff] }
  0x75   : > { %v971_v42 = vadd.f32 %v970_v33, %v713_v24  ;;  %v705_v44 = vmul.f32 %v1789_v13, %v444_v31  ;;  %v974_v47 = vsel %vm820_vm0, %v716_v25, 0.0  ;;  %v706_v48 = vmul.f32 %v1794_v17, %v445_v34 }
  0x76   : > { %v948_v46 = vadd.f32 %v947_v16, %v946_v36  ;;  %v709_v49 = vmul.f32 %v1798_v19, %v448_v38  ;;  %v960_v53 = vadd.f32 %v704_v43, %v703_v39  ;;  %v463_v54 = vunpack.c.l.bf16 %v278_v40 }
  0x77   : > { %v972_v52 = vadd.f32 %v971_v42, %v714_v32  ;;  %v464_v55 = vunpack.c.h.bf16 %v278_v40  ;;  %v707_v56 = vmul.f32 %v1796_v18, %v446_v35  ;;  %v708_v57 = vmul.f32 %v1802_v28, %v447_v37  ;;  %v287_v35 = vld [vmem:[%s1783_s29 + $0x254] sm:$0xff]  ;;  %v288_v40 = vld [vmem:[%s1783_s29 + $0x25c] sm:$0xff] }
  0x78   : > { %949 = vadd.xlane.f32.xlu0 %v948_v46  ;;  %v465_v58 = vunpack.c.l.bf16 %v279_v45  ;;  %v466_v59 = vunpack.c.h.bf16 %v279_v45  ;;  %v961_v61 = vadd.f32 %v960_v53, %v705_v44  ;;  %v467_v62 = vunpack.c.l.bf16 %v280_v50  ;;  %v289_v44 = vld [vmem:[%s1783_s29 + $0x248] ss:$28 sps:$4 sm:$0xff]  }
  0x79   : > { %v973_v60 = vadd.f32 %v972_v52, %v715_v41  ;;  %v469_v63 = vunpack.c.h.bf16 %v281_v51  ;;  %v965_v1 = vsel %vm820_vm0, %v709_v49, 0.0  ;;  %v724_v2 = vmul.f32 %v1785_v11, %v463_v54 }
  0x7a   : > { %v725_v3 = vmul.f32 %v1787_v12, %v464_v55  ;;  %v726_v4 = vmul.f32 %v1789_v13, %v465_v58  ;;  %v962_v7 = vadd.f32 %v961_v61, %v706_v48  ;;  %v468_v8 = vunpack.c.h.bf16 %v280_v50  ;;  %v282_v58 = vld [vmem:[%s1783_s29 + $0x230] sm:$0xff] }
  0x7b   : > { %v975_v6 = vadd.f32 %v974_v47, %v973_v60  ;;  %v727_v9 = vmul.f32 %v1794_v17, %v466_v59  ;;  %v730_v14 = vmul.f32 %v1798_v19, %v469_v63  ;;  %v456_v16 = vunpack.c.l.bf16 %v274_v0  ;;  %v283_v59 = vld [vmem:[%s1783_s29 + $0x238] sm:$0xff] }
  0x7c   : > { %v987_v15 = vadd.f32 %v725_v3, %v724_v2  ;;  %v457_v20 = vunpack.c.h.bf16 %v274_v0  ;;  %v963_v21 = vadd.f32 %v962_v7, %v707_v56  ;;  %v728_v22 = vmul.f32 %v1796_v18, %v467_v62  ;;  %v284_v0 = vld [vmem:[%s1783_s29 + $0x240] sm:$0xff] }
  0x7d   : > { %976 = vadd.xlane.f32.xlu1 %v975_v6  ;;  %v458_v23 = vunpack.c.l.bf16 %v275_v5  ;;  %v459_v24 = vunpack.c.h.bf16 %v275_v5  ;;  %v460_v26 = vunpack.c.l.bf16 %v276_v10  ;;  %v461_v27 = vunpack.c.h.bf16 %v276_v10 }
  0x7e   : > { %v988_v25 = vadd.f32 %v987_v15, %v726_v4  ;;  %v462_v29 = vunpack.c.l.bf16 %v281_v51  ;;  %v964_v31 = vadd.f32 %v963_v21, %v708_v57  ;;  %v717_v32 = vmul.f32 %v1785_v11, %v456_v16 }
  0x7f   : > { %v718_v33 = vmul.f32 %v1787_v12, %v457_v20  ;;  %v719_v34 = vmul.f32 %v1789_v13, %v458_v23  ;;  %v729_v36 = vmul.f32 %v1802_v28, %v468_v8  ;;  %v992_v38 = vsel %vm820_vm0, %v730_v14, 0.0  ;;  %v294_v23 = vld [vmem:[%s1783_s29 + $0x284] sm:$0xff] }
  0x80   : > { %v989_v37 = vadd.f32 %v988_v25, %v727_v9  ;;  %v720_v39 = vmul.f32 %v1794_v17, %v459_v24  ;;  %v966_v41 = vadd.f32 %v965_v1, %v964_v31  ;;  %v723_v42 = vmul.f32 %v1798_v19, %v462_v29  ;;  %v295_v29 = vld [vmem:[%s1783_s29 + $0x28c] sm:$0xff] }
  0x81   : > { %v978_v43 = vadd.f32 %v718_v33, %v717_v32  ;;  %v477_v45 = vunpack.c.l.bf16 %v286_v30  ;;  %v478_v47 = vunpack.c.h.bf16 %v286_v30  ;;  %v479_v48 = vunpack.c.l.bf16 %v287_v35 }
  0x82   : > { %v990_v46 = vadd.f32 %v989_v37, %v728_v22  ;;  %v480_v49 = vunpack.c.h.bf16 %v287_v35  ;;  %967 = vadd.xlane.f32.xlu0 %v966_v41  ;;  %v721_v50 = vmul.f32 %v1796_v18, %v460_v26  ;;  %v722_v51 = vmul.f32 %v1802_v28, %v461_v27  ;;  %v297_v35 = vld [vmem:[%s1783_s29 + $0x280] ss:$28 sps:$4 sm:$0xff]  }
  0x83   : > { %v979_v52 = vadd.f32 %v978_v43, %v719_v34  ;;  %v481_v53 = vunpack.c.l.bf16 %v288_v40  ;;  %v483_v55 = vunpack.c.h.bf16 %v289_v44  ;;  %v738_v56 = vmul.f32 %v1785_v11, %v477_v45  ;;  %v296_v34 = vld [vmem:[%s1783_s29 + $0x294] sm:$0xff] }
  0x84   : > { %v991_v54 = vadd.f32 %v990_v46, %v729_v36  ;;  %v739_v57 = vmul.f32 %v1787_v12, %v478_v47  ;;  %v983_v61 = vsel %vm820_vm0, %v723_v42, 0.0  ;;  %v482_v62 = vunpack.c.h.bf16 %v288_v40 }
  0x85   : > { %v980_v60 = vadd.f32 %v979_v52, %v720_v39  ;;  %v740_v63 = vmul.f32 %v1789_v13, %v479_v48  ;;  %v741_v2 = vmul.f32 %v1794_v17, %v480_v49  ;;  %v744_v3 = vmul.f32 %v1798_v19, %v483_v55  ;;  %v290_v48 = vld [vmem:[%s1783_s29 + $0x268] sm:$0xff] }
  0x86   : > { %v993_v1 = vadd.f32 %v992_v38, %v991_v54  ;;  %v1005_v4 = vadd.f32 %v739_v57, %v738_v56  ;;  %v470_v6 = vunpack.c.l.bf16 %v282_v58  ;;  %v471_v7 = vunpack.c.h.bf16 %v282_v58  ;;  %v292_v58 = vld [vmem:[%s1783_s29 + $0x278] sm:$0xff] }
  0x87   : > { %v981_v5 = vadd.f32 %v980_v60, %v721_v50  ;;  %v472_v8 = vunpack.c.l.bf16 %v283_v59  ;;  %v742_v9 = vmul.f32 %v1796_v18, %v481_v53  ;;  %v473_v14 = vunpack.c.h.bf16 %v283_v59  ;;  %v291_v53 = vld [vmem:[%s1783_s29 + $0x270] sm:$0xff] }
  0x88   : > { %994 = vadd.xlane.f32.xlu1 %v993_v1  ;;  %v1006_v10 = vadd.f32 %v1005_v4, %v740_v63  ;;  %v474_v15 = vunpack.c.l.bf16 %v284_v0  ;;  %v475_v20 = vunpack.c.h.bf16 %v284_v0  ;;  %v476_v21 = vunpack.c.l.bf16 %v289_v44 }
  0x89   : > { %v982_v16 = vadd.f32 %v981_v5, %v722_v51  ;;  %v731_v22 = vmul.f32 %v1785_v11, %v470_v6  ;;  %v743_v24 = vmul.f32 %v1802_v28, %v482_v62  ;;  %v732_v26 = vmul.f32 %v1787_v12, %v471_v7  ;;  %v302_v7 = vld [vmem:[%s1783_s29 + $0x2bc] sm:$0xff] }
  0x8a   : > { %v1007_v25 = vadd.f32 %v1006_v10, %v741_v2  ;;  %v733_v27 = vmul.f32 %v1789_v13, %v472_v8  ;;  %v1010_v31 = vsel %vm820_vm0, %v744_v3, 0.0  ;;  %v734_v32 = vmul.f32 %v1794_v17, %v473_v14 }
  0x8b   : > { %v984_v30 = vadd.f32 %v983_v61, %v982_v16  ;;  %v737_v33 = vmul.f32 %v1798_v19, %v476_v21  ;;  %v996_v37 = vadd.f32 %v732_v26, %v731_v22  ;;  %v491_v38 = vunpack.c.l.bf16 %v294_v23 }
  0x8c   : > { %v1008_v36 = vadd.f32 %v1007_v25, %v742_v9  ;;  %v492_v39 = vunpack.c.h.bf16 %v294_v23  ;;  %v735_v40 = vmul.f32 %v1796_v18, %v474_v15  ;;  %v736_v41 = vmul.f32 %v1802_v28, %v475_v20  ;;  %v303_v15 = vld [vmem:[%s1783_s29 + $0x2c4] sm:$0xff]  ;;  %v304_v23 = vld [vmem:[%s1783_s29 + $0x2cc] sm:$0xff] }
  0x8d   : > { %985 = vadd.xlane.f32.xlu0 %v984_v30  ;;  %v493_v42 = vunpack.c.l.bf16 %v295_v29  ;;  %v494_v43 = vunpack.c.h.bf16 %v295_v29  ;;  %v997_v45 = vadd.f32 %v996_v37, %v733_v27  ;;  %v495_v46 = vunpack.c.l.bf16 %v296_v34  ;;  %v305_v27 = vld [vmem:[%s1783_s29 + $0x2b8] ss:$28 sps:$4 sm:$0xff]  }
  0x8e   : > { %v1009_v44 = vadd.f32 %v1008_v36, %v743_v24  ;;  %v497_v47 = vunpack.c.h.bf16 %v297_v35  ;;  %v496_v49 = vunpack.c.h.bf16 %v296_v34  ;;  %v752_v50 = vmul.f32 %v1785_v11, %v491_v38 }
  0x8f   : > { %v753_v51 = vmul.f32 %v1787_v12, %v492_v39  ;;  %v754_v52 = vmul.f32 %v1789_v13, %v493_v42  ;;  %v998_v55 = vadd.f32 %v997_v45, %v734_v32  ;;  %v1001_v56 = vsel %vm820_vm0, %v737_v33, 0.0  ;;  %v298_v42 = vld [vmem:[%s1783_s29 + $0x2a0] sm:$0xff] }
  0x90   : > { %v1011_v54 = vadd.f32 %v1010_v31, %v1009_v44  ;;  %v755_v57 = vmul.f32 %v1794_v17, %v494_v43  ;;  %v758_v59 = vmul.f32 %v1798_v19, %v497_v47  ;;  %v484_v61 = vunpack.c.l.bf16 %v290_v48  ;;  %v299_v43 = vld [vmem:[%s1783_s29 + $0x2a8] sm:$0xff] }
  0x91   : > { %v1023_v60 = vadd.f32 %v753_v51, %v752_v50  ;;  %v485_v62 = vunpack.c.h.bf16 %v290_v48  ;;  %v999_v63 = vadd.f32 %v998_v55, %v735_v40  ;;  %v756_v0 = vmul.f32 %v1796_v18, %v495_v46 }
  0x92   : > { %1012 = vadd.xlane.f32.xlu1 %v1011_v54  ;;  %v486_v1 = vunpack.c.l.bf16 %v291_v53  ;;  %v487_v2 = vunpack.c.h.bf16 %v291_v53  ;;  %v757_v3 = vmul.f32 %v1802_v28, %v496_v49  ;;  %v488_v5 = vunpack.c.l.bf16 %v292_v58 }
  0x93   : > { %v1024_v4 = vadd.f32 %v1023_v60, %v754_v52  ;;  %v490_v6 = vunpack.c.l.bf16 %v297_v35  ;;  %v1000_v8 = vadd.f32 %v999_v63, %v736_v41  ;;  %v745_v9 = vmul.f32 %v1785_v11, %v484_v61  ;;  %v300_v52 = vld [vmem:[%s1783_s29 + $0x2b0] sm:$0xff] }
  0x94   : > { %v746_v10 = vmul.f32 %v1787_v12, %v485_v62  ;;  %v747_v14 = vmul.f32 %v1789_v13, %v486_v1  ;;  %v1028_v20 = vsel %vm820_vm0, %v758_v59, 0.0  ;;  %v489_v21 = vunpack.c.h.bf16 %v292_v58  ;;  %v310_v1 = vld [vmem:[%s1783_s29 + $0x2f4] sm:$0xff] }
  0x95   : > { %v1025_v16 = vadd.f32 %v1024_v4, %v755_v57  ;;  %v748_v22 = vmul.f32 %v1794_v17, %v487_v2  ;;  %v1002_v24 = vadd.f32 %v1001_v56, %v1000_v8  ;;  %v751_v25 = vmul.f32 %v1798_v19, %v490_v6  ;;  %v311_v6 = vld [vmem:[%s1783_s29 + $0x2fc] sm:$0xff] }
  0x96   : > { %v1014_v26 = vadd.f32 %v746_v10, %v745_v9  ;;  %v505_v29 = vunpack.c.l.bf16 %v302_v7  ;;  %v506_v31 = vunpack.c.h.bf16 %v302_v7  ;;  %v507_v32 = vunpack.c.l.bf16 %v303_v15  ;;  %v312_v10 = vld [vmem:[%s1783_s29 + $0x304] sm:$0xff] }
  0x97   : > { %v1026_v30 = vadd.f32 %v1025_v16, %v756_v0  ;;  %v508_v33 = vunpack.c.h.bf16 %v303_v15  ;;  %1003 = vadd.xlane.f32.xlu0 %v1002_v24  ;;  %v749_v34 = vmul.f32 %v1796_v18, %v488_v5  ;;  %v509_v36 = vunpack.c.l.bf16 %v304_v23  ;;  %v313_v16 = vld [vmem:[%s1783_s29 + $0x2f0] ss:$28 sps:$4 sm:$0xff]  }
  0x98   : > { %v1015_v35 = vadd.f32 %v1014_v26, %v747_v14  ;;  %v510_v37 = vunpack.c.h.bf16 %v304_v23  ;;  %v511_v39 = vunpack.c.h.bf16 %v305_v27  ;;  %v766_v40 = vmul.f32 %v1785_v11, %v505_v29 }
  0x99   : > { %v1027_v38 = vadd.f32 %v1026_v30, %v757_v3  ;;  %v767_v41 = vmul.f32 %v1787_v12, %v506_v31  ;;  %v750_v44 = vmul.f32 %v1802_v28, %v489_v21  ;;  %v1019_v46 = vsel %vm820_vm0, %v751_v25, 0.0  ;;  %v306_v31 = vld [vmem:[%s1783_s29 + $0x2d8] sm:$0xff] }
  0x9a   : > { %v1016_v45 = vadd.f32 %v1015_v35, %v748_v22  ;;  %v768_v47 = vmul.f32 %v1789_v13, %v507_v32  ;;  %v769_v49 = vmul.f32 %v1794_v17, %v508_v33  ;;  %v770_v50 = vmul.f32 %v1796_v18, %v509_v36  ;;  %v307_v36 = vld [vmem:[%s1783_s29 + $0x2e0] sm:$0xff] }
  0x9b   : > { %v1029_v48 = vadd.f32 %v1028_v20, %v1027_v38  ;;  %v1041_v51 = vadd.f32 %v767_v41, %v766_v40  ;;  %v498_v54 = vunpack.c.l.bf16 %v298_v42  ;;  %v499_v55 = vunpack.c.h.bf16 %v298_v42  ;;  %v308_v41 = vld [vmem:[%s1783_s29 + $0x2e8] sm:$0xff] }
  0x9c   : > { %v1017_v53 = vadd.f32 %v1016_v45, %v749_v34  ;;  %v500_v56 = vunpack.c.l.bf16 %v299_v43  ;;  %v771_v57 = vmul.f32 %v1802_v28, %v510_v37  ;;  %v772_v58 = vmul.f32 %v1798_v19, %v511_v39 }
  0x9d   : > { %1030 = vadd.xlane.f32.xlu1 %v1029_v48  ;;  %v1042_v59 = vadd.f32 %v1041_v51, %v768_v47  ;;  %v501_v60 = vunpack.c.h.bf16 %v299_v43  ;;  %v502_v62 = vunpack.c.l.bf16 %v300_v52  ;;  %v504_v63 = vunpack.c.l.bf16 %v305_v27 }
  0x9e   : > { %v1018_v61 = vadd.f32 %v1017_v53, %v750_v44  ;;  %v759_v0 = vmul.f32 %v1785_v11, %v498_v54  ;;  %v503_v3 = vunpack.c.h.bf16 %v300_v52  ;;  %v760_v4 = vmul.f32 %v1787_v12, %v499_v55  ;;  %v318_v54 = vld [vmem:[%s1783_s29 + $0x32c] sm:$0xff] }
  0x9f   : > { %v1043_v2 = vadd.f32 %v1042_v59, %v769_v49  ;;  %v761_v5 = vmul.f32 %v1789_v13, %v500_v56  ;;  %v762_v8 = vmul.f32 %v1794_v17, %v501_v60  ;;  %v765_v9 = vmul.f32 %v1798_v19, %v504_v63  ;;  %v319_v59 = vld [vmem:[%s1783_s29 + $0x334] sm:$0xff] }
  0xa0   : > { %v1020_v7 = vadd.f32 %v1019_v46, %v1018_v61  ;;  %v1032_v15 = vadd.f32 %v760_v4, %v759_v0  ;;  %v519_v20 = vunpack.c.l.bf16 %v310_v1  ;;  %v520_v21 = vunpack.c.h.bf16 %v310_v1  ;;  %v320_v0 = vld [vmem:[%s1783_s29 + $0x33c] sm:$0xff] }
  0xa1   : > { %v1044_v14 = vadd.f32 %v1043_v2, %v770_v50  ;;  %v1046_v22 = vsel %vm820_vm0, %v772_v58, 0.0  ;;  %v763_v23 = vmul.f32 %v1796_v18, %v502_v62  ;;  %v521_v24 = vunpack.c.l.bf16 %v311_v6 }
  0xa2   : > { %1021 = vadd.xlane.f32.xlu0 %v1020_v7  ;;  %v522_v25 = vunpack.c.h.bf16 %v311_v6  ;;  %v764_v27 = vmul.f32 %v1802_v28, %v503_v3  ;;  %v1033_v29 = vadd.f32 %v1032_v15, %v761_v5  ;;  %v523_v30 = vunpack.c.l.bf16 %v312_v10  ;;  %v321_v6 = vld [vmem:[%s1783_s29 + $0x328] ss:$28 sps:$4 sm:$0xff]  }
  0xa3   : > { %v1045_v26 = vadd.f32 %v1044_v14, %v771_v57  ;;  %v525_v32 = vunpack.c.h.bf16 %v313_v16  ;;  %v780_v33 = vmul.f32 %v1785_v11, %v519_v20  ;;  %v781_v34 = vmul.f32 %v1787_v12, %v520_v21 }
  0xa4   : > { %v782_v35 = vmul.f32 %v1789_v13, %v521_v24  ;;  %v1034_v38 = vadd.f32 %v1033_v29, %v762_v8  ;;  %v1037_v39 = vsel %vm820_vm0, %v765_v9, 0.0  ;;  %v524_v40 = vunpack.c.h.bf16 %v312_v10  ;;  %v314_v24 = vld [vmem:[%s1783_s29 + $0x310] sm:$0xff] }
  0xa5   : > { %v1047_v37 = vadd.f32 %v1046_v22, %v1045_v26  ;;  %v783_v42 = vmul.f32 %v1794_v17, %v522_v25  ;;  %v1059_v43 = vadd.f32 %v781_v34, %v780_v33  ;;  %v512_v44 = vunpack.c.l.bf16 %v306_v31  ;;  %v315_v25 = vld [vmem:[%s1783_s29 + $0x318] sm:$0xff] }
  0xa6   : > { %v513_v45 = vunpack.c.h.bf16 %v306_v31  ;;  %v1035_v46 = vadd.f32 %v1034_v38, %v763_v23  ;;  %v784_v47 = vmul.f32 %v1796_v18, %v523_v30  ;;  %v514_v48 = vunpack.c.l.bf16 %v307_v36 }
  0xa7   : > { %1048 = vadd.xlane.f32.xlu1 %v1047_v37  ;;  %v515_v49 = vunpack.c.h.bf16 %v307_v36  ;;  %v786_v50 = vmul.f32 %v1798_v19, %v525_v32  ;;  %v1060_v51 = vadd.f32 %v1059_v43, %v782_v35  ;;  %v516_v52 = vunpack.c.l.bf16 %v308_v41  ;;  %v316_v35 = vld [vmem:[%s1783_s29 + $0x320] sm:$0xff] }
  0xa8   : > { %v518_v53 = vunpack.c.l.bf16 %v313_v16  ;;  %v1036_v55 = vadd.f32 %v1035_v46, %v764_v27  ;;  %v773_v56 = vmul.f32 %v1785_v11, %v512_v44  ;;  %v774_v57 = vmul.f32 %v1787_v12, %v513_v45 }
  0xa9   : > { %v775_v58 = vmul.f32 %v1789_v13, %v514_v48  ;;  %v785_v60 = vmul.f32 %v1802_v28, %v524_v40  ;;  %v1061_v61 = vadd.f32 %v1060_v51, %v783_v42  ;;  %v517_v62 = vunpack.c.h.bf16 %v308_v41  ;;  %v326_v48 = vld [vmem:[%s1783_s29 + $0x364] sm:$0xff] }
  0xaa   : > { %v776_v63 = vmul.f32 %v1794_v17, %v515_v49  ;;  %v1038_v1 = vadd.f32 %v1037_v39, %v1036_v55  ;;  %v779_v2 = vmul.f32 %v1798_v19, %v518_v53  ;;  %v1050_v3 = vadd.f32 %v774_v57, %v773_v56  ;;  %v327_v53 = vld [vmem:[%s1783_s29 + $0x36c] sm:$0xff]  ;;  %v328_v57 = vld [vmem:[%s1783_s29 + $0x374] sm:$0xff] }
  0xab   : > { %v533_v4 = vunpack.c.l.bf16 %v318_v54  ;;  %v1062_v5 = vadd.f32 %v1061_v61, %v784_v47  ;;  %v534_v7 = vunpack.c.h.bf16 %v318_v54  ;;  %v535_v8 = vunpack.c.l.bf16 %v319_v59 }
  0xac   : > { %v536_v9 = vunpack.c.h.bf16 %v319_v59  ;;  %1039 = vadd.xlane.f32.xlu0 %v1038_v1  ;;  %v1064_v10 = vsel %vm820_vm0, %v786_v50, 0.0  ;;  %v777_v14 = vmul.f32 %v1796_v18, %v516_v52  ;;  %v1051_v15 = vadd.f32 %v1050_v3, %v775_v58 }
  0xad   : > { %v537_v16 = vunpack.c.l.bf16 %v320_v0  ;;  %v1063_v20 = vadd.f32 %v1062_v5, %v785_v60  ;;  %v538_v21 = vunpack.c.h.bf16 %v320_v0  ;;  %v794_v22 = vmul.f32 %v1785_v11, %v533_v4  ;;  %v2143_v60 = vld [vmem:[%s1783_s29 + $0x360] ss:$28 sps:$4 sm:$0xff]  }
  0xae   : > { %v795_v23 = vmul.f32 %v1787_v12, %v534_v7  ;;  %v778_v26 = vmul.f32 %v1802_v28, %v517_v62  ;;  %v1052_v27 = vadd.f32 %v1051_v15, %v776_v63  ;;  %v539_v29 = vunpack.c.h.bf16 %v321_v6  ;;  %v322_v7 = vld [vmem:[%s1783_s29 + $0x348] sm:$0xff]  ;;  %v323_v15 = vld [vmem:[%s1783_s29 + $0x350] sm:$0xff] }
  0xaf   : > { %v796_v30 = vmul.f32 %v1789_v13, %v535_v8  ;;  %v1065_v31 = vadd.f32 %v1064_v10, %v1063_v20  ;;  %v1055_v32 = vsel %vm820_vm0, %v779_v2, 0.0  ;;  %v797_v33 = vmul.f32 %v1794_v17, %v536_v9 }
  0xb0   : > { %v1077_v34 = vadd.f32 %v795_v23, %v794_v22  ;;  %v1053_v36 = vadd.f32 %v1052_v27, %v777_v14  ;;  %v526_v37 = vunpack.c.l.bf16 %v314_v24  ;;  %v527_v38 = vunpack.c.h.bf16 %v314_v24  ;;  %v324_v23 = vld [vmem:[%s1783_s29 + $0x358] sm:$0xff] }
  0xb1   : > { %v528_v39 = vunpack.c.l.bf16 %v315_v25  ;;  %1066 = vadd.xlane.f32.xlu1 %v1065_v31  ;;  %v798_v40 = vmul.f32 %v1796_v18, %v537_v16  ;;  %v799_v41 = vmul.f32 %v1802_v28, %v538_v21  ;;  %v529_v43 = vunpack.c.h.bf16 %v315_v25 }
  0xb2   : > { %v1078_v42 = vadd.f32 %v1077_v34, %v796_v30  ;;  %v1054_v44 = vadd.f32 %v1053_v36, %v778_v26  ;;  %v800_v45 = vmul.f32 %v1798_v19, %v539_v29  ;;  %v530_v46 = vunpack.c.l.bf16 %v316_v35 }
  0xb3   : > { %v787_v47 = vmul.f32 %v1785_v11, %v526_v37  ;;  %v532_v50 = vunpack.c.l.bf16 %v321_v6  ;;  %v788_v51 = vmul.f32 %v1787_v12, %v527_v38  ;;  %v789_v52 = vmul.f32 %v1789_v13, %v528_v39 }
  0xb4   : > { %v1079_v49 = vadd.f32 %v1078_v42, %v797_v33  ;;  %v1056_v54 = vadd.f32 %v1055_v32, %v1054_v44  ;;  %v531_v55 = vunpack.c.h.bf16 %v316_v35  ;;  %v790_v56 = vmul.f32 %v1794_v17, %v529_v43  ;;  %v2164_v42 = vld [vmem:[#allocation2] ss:$0 sm:$0xff] }
  0xb5   : > { %v1068_v59 = vadd.f32 %v788_v51, %v787_v47  ;;  %v547_v61 = vunpack.c.l.bf16 %v326_v48  ;;  %v548_v62 = vunpack.c.h.bf16 %v326_v48  ;;  %v1082_v63 = vsel %vm820_vm0, %v800_v45, 0.0 }
  0xb6   : > { %v1080_v58 = vadd.f32 %v1079_v49, %v798_v40  ;;  %1057 = vadd.xlane.f32.xlu0 %v1056_v54  ;;  %v791_v0 = vmul.f32 %v1796_v18, %v530_v46  ;;  %v549_v1 = vunpack.c.l.bf16 %v327_v53  ;;  %v550_v2 = vunpack.c.h.bf16 %v327_v53 }
  0xb7   : > { %v793_v4 = vmul.f32 %v1798_v19, %v532_v50  ;;  %v1069_v5 = vadd.f32 %v1068_v59, %v789_v52  ;;  %v551_v6 = vunpack.c.l.bf16 %v328_v57  ;;  %v553_v8 = vunpack.c.h.bf16 %v2143_v60 }
  0xb8   : > { %v1081_v3 = vadd.f32 %v1080_v58, %v799_v41  ;;  %v808_v9 = vmul.f32 %v1785_v11, %v547_v61  ;;  %v809_v10 = vmul.f32 %v1787_v12, %v548_v62  ;;  %v810_v14 = vmul.f32 %v1789_v13, %v549_v1  ;;  %v842_v29 = vpop.xlane.xlu1 %841 }
  0xb9   : > { %v792_v20 = vmul.f32 %v1802_v28, %v531_v55  ;;  %v1070_v21 = vadd.f32 %v1069_v5, %v790_v56  ;;  %v552_v22 = vunpack.c.h.bf16 %v328_v57  ;;  %v811_v24 = vmul.f32 %v1794_v17, %v550_v2 }
  0xba   : > { %v1083_v16 = vadd.f32 %v1082_v63, %v1081_v3  ;;  %v1095_v25 = vadd.f32 %v809_v10, %v808_v9  ;;  %v540_v26 = vunpack.c.l.bf16 %v322_v7  ;;  %v541_v27 = vunpack.c.h.bf16 %v322_v7 }
  0xbb   : > { %v1071_v30 = vadd.f32 %v1070_v21, %v791_v0  ;;  %v1073_v31 = vsel %vm820_vm0, %v793_v4, 0.0  ;;  %v542_v32 = vunpack.c.l.bf16 %v323_v15  ;;  %v543_v33 = vunpack.c.h.bf16 %v323_v15  ;;  %v824_v43 = vpop.xlane.xlu0 %823 }
  0xbc   : > { %1084 = vadd.xlane.f32.xlu1 %v1083_v16  ;;  %v812_v34 = vmul.f32 %v1796_v18, %v551_v6  ;;  %v814_v35 = vmul.f32 %v1798_v19, %v553_v8  ;;  %v1096_v36 = vadd.f32 %v1095_v25, %v810_v14  ;;  %v544_v37 = vunpack.c.l.bf16 %v324_v23 }
  0xbd   : > { %v1072_v38 = vadd.f32 %v1071_v30, %v792_v20  ;;  %v801_v39 = vmul.f32 %v1785_v11, %v540_v26  ;;  %v802_v40 = vmul.f32 %v1787_v12, %v541_v27  ;;  %v803_v41 = vmul.f32 %v1789_v13, %v542_v32 }
  0xbe   : > { %v813_v44 = vmul.f32 %v1802_v28, %v552_v22  ;;  %v1097_v45 = vadd.f32 %v1096_v36, %v811_v24  ;;  %v545_v46 = vunpack.c.h.bf16 %v324_v23  ;;  %v546_v47 = vunpack.c.l.bf16 %v2143_v60 }
  0xbf   : > { %v1074_v48 = vadd.f32 %v1073_v31, %v1072_v38  ;;  %v804_v49 = vmul.f32 %v1794_v17, %v543_v33  ;;  %v1086_v50 = vadd.f32 %v802_v40, %v801_v39  ;;  %v1113_v11 = vadd.f32 %v2164_v42, %v842_v29 }
  0xc0   : > { %v1098_v51 = vadd.f32 %v1097_v45, %v812_v34  ;;  %v1111_v12 = vadd.f32 %v2164_v42, %v824_v43  ;;  %v1100_v52 = vsel %vm820_vm0, %v814_v35, 0.0  ;;  %v805_v53 = vmul.f32 %v1796_v18, %v544_v37 }
  0xc1   : > { %v851_v13 = vpop.xlane.xlu1 %850  ;;  %1075 = vadd.xlane.f32.xlu0 %v1074_v48  ;;  %v1087_v54 = vadd.f32 %v1086_v50, %v803_v41  ;;  %v807_v57 = vmul.f32 %v1798_v19, %v546_v47  ;;  %1146 = vst.msk [vmem:[%s2175_s5 + $0x10] sm:$0xff] %vm1143_vm1, %v1113_v11  ;;  %v806_v17 = vmul.f32 %v1802_v28, %v545_v46 }
  0xc2   : > { %v1114_v55 = vadd.f32 %v2164_v42, %v851_v13  ;;  %v1099_v56 = vadd.f32 %v1098_v51, %v813_v44  ;;  %1144 = vst.msk [vmem:[%s2175_s5] sm:$0xff] %vm1143_vm1, %v1111_v12 }
  0xc3   : > { %v1088_v18 = vadd.f32 %v1087_v54, %v804_v49  ;;  %v1091_v60 = vsel %vm820_vm0, %v807_v57, 0.0 }
  0xc4   : > { %1147 = vst.msk [vmem:[%s2175_s5 + $0x18] sm:$0xff] %vm1143_vm1, %v1114_v55  ;;  %v1101_v58 = vadd.f32 %v1100_v52, %v1099_v56 }
  0xc5   : > { %v1089_v59 = vadd.f32 %v1088_v18, %v805_v53 }
  0xc6   : > { %v833_v19 = vpop.xlane.xlu0 %832  ;;  %1102 = vadd.xlane.f32.xlu1 %v1101_v58 }
  0xc7   : > { %v1112_v61 = vadd.f32 %v2164_v42, %v833_v19  ;;  %v1090_v62 = vadd.f32 %v1089_v59, %v806_v17 }
  0xc9   : > { %1145 = vst.msk [vmem:[%s2175_s5 + $0x8] sm:$0xff] %vm1143_vm1, %v1112_v61  ;;  %v1092_v63 = vadd.f32 %v1091_v60, %v1090_v62 }
  0xcb   : > { %v869_v28 = vpop.xlane.xlu1 %868  ;;  %1093 = vadd.xlane.f32.xlu0 %v1092_v63 }
  0xcc   : > { %v1116_v0 = vadd.f32 %v2164_v42, %v869_v28 }
  0xce   : > { %1149 = vst.msk [vmem:[%s2175_s5 + $0x28] sm:$0xff] %vm1143_vm1, %v1116_v0 }
  0xd0   : > { %v860_v1 = vpop.xlane.xlu0 %859 }
  0xd1   : > { %v1115_v2 = vadd.f32 %v2164_v42, %v860_v1 }
  0xd3   : > { %1148 = vst.msk [vmem:[%s2175_s5 + $0x20] sm:$0xff] %vm1143_vm1, %v1115_v2 }
  0xd6   : > { %v887_v3 = vpop.xlane.xlu1 %886 }
  0xd7   : > { %v1118_v4 = vadd.f32 %v2164_v42, %v887_v3 }
  0xd9   : > { %1151 = vst.msk [vmem:[%s2175_s5 + $0x38] sm:$0xff] %vm1143_vm1, %v1118_v4 }
  0xdb   : > { %v878_v5 = vpop.xlane.xlu0 %877 }
  0xdc   : > { %v1117_v6 = vadd.f32 %v2164_v42, %v878_v5 }
  0xde   : > { %1150 = vst.msk [vmem:[%s2175_s5 + $0x30] sm:$0xff] %vm1143_vm1, %v1117_v6 }
  0xe0   : > { %v905_v7 = vpop.xlane.xlu1 %904 }
  0xe1   : > { %v1120_v8 = vadd.f32 %v2164_v42, %v905_v7 }
  0xe3   : > { %1153 = vst.msk [vmem:[%s2175_s5 + $0x48] sm:$0xff] %vm1143_vm1, %v1120_v8 }
  0xe5   : > { %v896_v9 = vpop.xlane.xlu0 %895 }
  0xe6   : > { %v1119_v10 = vadd.f32 %v2164_v42, %v896_v9 }
  0xe8   : > { %1152 = vst.msk [vmem:[%s2175_s5 + $0x40] sm:$0xff] %vm1143_vm1, %v1119_v10 }
  0xeb   : > { %v923_v14 = vpop.xlane.xlu1 %922 }
  0xec   : > { %v1122_v15 = vadd.f32 %v2164_v42, %v923_v14 }
  0xee   : > { %1155 = vst.msk [vmem:[%s2175_s5 + $0x58] sm:$0xff] %vm1143_vm1, %v1122_v15 }
  0xf0   : > { %v914_v16 = vpop.xlane.xlu0 %913 }
  0xf1   : > { %v1121_v20 = vadd.f32 %v2164_v42, %v914_v16 }
  0xf3   : > { %1154 = vst.msk [vmem:[%s2175_s5 + $0x50] sm:$0xff] %vm1143_vm1, %v1121_v20 }
  0xf5   : > { %v941_v21 = vpop.xlane.xlu1 %940 }
  0xf6   : > { %v1124_v22 = vadd.f32 %v2164_v42, %v941_v21 }
  0xf8   : > { %1157 = vst.msk [vmem:[%s2175_s5 + $0x68] sm:$0xff] %vm1143_vm1, %v1124_v22 }
  0xfa   : > { %v932_v23 = vpop.xlane.xlu0 %931 }
  0xfb   : > { %v1123_v24 = vadd.f32 %v2164_v42, %v932_v23 }
  0xfd   : > { %1156 = vst.msk [vmem:[%s2175_s5 + $0x60] sm:$0xff] %vm1143_vm1, %v1123_v24 }
 0x100   : > { %v959_v25 = vpop.xlane.xlu1 %958 }
 0x101   : > { %v1126_v26 = vadd.f32 %v2164_v42, %v959_v25 }
 0x103   : > { %1159 = vst.msk [vmem:[%s2175_s5 + $0x78] sm:$0xff] %vm1143_vm1, %v1126_v26 }
 0x105   : > { %v950_v27 = vpop.xlane.xlu0 %949 }
 0x106   : > { %v1125_v29 = vadd.f32 %v2164_v42, %v950_v27 }
 0x108   : > { %1158 = vst.msk [vmem:[%s2175_s5 + $0x70] sm:$0xff] %vm1143_vm1, %v1125_v29 }
 0x10a   : > { %v977_v30 = vpop.xlane.xlu1 %976 }
 0x10b   : > { %v1128_v31 = vadd.f32 %v2164_v42, %v977_v30 }
 0x10d   : > { %1161 = vst.msk [vmem:[%s2175_s5 + $0x88] sm:$0xff] %vm1143_vm1, %v1128_v31 }
 0x10f   : > { %v968_v32 = vpop.xlane.xlu0 %967 }
 0x110   : > { %v1127_v33 = vadd.f32 %v2164_v42, %v968_v32 }
 0x112   : > { %1160 = vst.msk [vmem:[%s2175_s5 + $0x80] sm:$0xff] %vm1143_vm1, %v1127_v33 }
 0x115   : > { %v995_v34 = vpop.xlane.xlu1 %994 }
 0x116   : > { %v1130_v35 = vadd.f32 %v2164_v42, %v995_v34 }
 0x118   : > { %1163 = vst.msk [vmem:[%s2175_s5 + $0x98] sm:$0xff] %vm1143_vm1, %v1130_v35 }
 0x11a   : > { %v986_v36 = vpop.xlane.xlu0 %985 }
 0x11b   : > { %v1129_v37 = vadd.f32 %v2164_v42, %v986_v36 }
 0x11d   : > { %1162 = vst.msk [vmem:[%s2175_s5 + $0x90] sm:$0xff] %vm1143_vm1, %v1129_v37 }
 0x11f   : > { %v1013_v38 = vpop.xlane.xlu1 %1012 }
 0x120   : > { %v1132_v39 = vadd.f32 %v2164_v42, %v1013_v38 }
 0x122   : > { %1165 = vst.msk [vmem:[%s2175_s5 + $0xa8] sm:$0xff] %vm1143_vm1, %v1132_v39 }
 0x124   : > { %v1004_v40 = vpop.xlane.xlu0 %1003 }
 0x125   : > { %v1131_v41 = vadd.f32 %v2164_v42, %v1004_v40 }
 0x127   : > { %1164 = vst.msk [vmem:[%s2175_s5 + $0xa0] sm:$0xff] %vm1143_vm1, %v1131_v41 }
 0x12a   : > { %v1031_v43 = vpop.xlane.xlu1 %1030 }
 0x12b   : > { %v1134_v44 = vadd.f32 %v2164_v42, %v1031_v43 }
 0x12d   : > { %1167 = vst.msk [vmem:[%s2175_s5 + $0xb8] sm:$0xff] %vm1143_vm1, %v1134_v44 }
 0x12f   : > { %v1022_v45 = vpop.xlane.xlu0 %1021 }
 0x130   : > { %v1133_v46 = vadd.f32 %v2164_v42, %v1022_v45 }
 0x132   : > { %1166 = vst.msk [vmem:[%s2175_s5 + $0xb0] sm:$0xff] %vm1143_vm1, %v1133_v46 }
 0x134   : > { %v1049_v47 = vpop.xlane.xlu1 %1048 }
 0x135   : > { %v1136_v48 = vadd.f32 %v2164_v42, %v1049_v47 }
 0x137   : > { %1169 = vst.msk [vmem:[%s2175_s5 + $0xc8] sm:$0xff] %vm1143_vm1, %v1136_v48 }
 0x139   : > { %v1040_v49 = vpop.xlane.xlu0 %1039 }
 0x13a   : > { %v1135_v50 = vadd.f32 %v2164_v42, %v1040_v49 }
 0x13c   : > { %1168 = vst.msk [vmem:[%s2175_s5 + $0xc0] sm:$0xff] %vm1143_vm1, %v1135_v50 }
 0x13e   : > { %v1067_v51 = vpop.xlane.xlu1 %1066 }
 0x13f   : > { %v1138_v11 = vadd.f32 %v2164_v42, %v1067_v51 }
 0x141   : > { %1171 = vst.msk [vmem:[%s2175_s5 + $0xd8] sm:$0xff] %vm1143_vm1, %v1138_v11 }
 0x143   : > { %v1058_v12 = vpop.xlane.xlu0 %1057 }
 0x144   : > { %v1137_v13 = vadd.f32 %v2164_v42, %v1058_v12 }
 0x146   : > { %1170 = vst.msk [vmem:[%s2175_s5 + $0xd0] sm:$0xff] %vm1143_vm1, %v1137_v13 }
 0x149   : > { %v1085_v52 = vpop.xlane.xlu1 %1084 }
 0x14a   : > { %v1140_v53 = vadd.f32 %v2164_v42, %v1085_v52 }
 0x14c   : > { %1173 = vst.msk [vmem:[%s2175_s5 + $0xe8] sm:$0xff] %vm1143_vm1, %v1140_v53 }
 0x14e   : > { %v1076_v54 = vpop.xlane.xlu0 %1075 }
 0x14f   : > { %v1139_v55 = vadd.f32 %v2164_v42, %v1076_v54 }
 0x151   : > { %1172 = vst.msk [vmem:[%s2175_s5 + $0xe0] sm:$0xff] %vm1143_vm1, %v1139_v55 }
 0x153   : > { %v1103_v56 = vpop.xlane.xlu1 %1102 }
 0x154   : > { %v1142_v57 = vadd.f32 %v2164_v42, %v1103_v56 }
 0x155   : > { %1182 = sbr.rel (!%p1768_p4) target bundleno = 404 (0x194), region = 36 }
 0x156   : > { %1175 = vst.msk [vmem:[%s2175_s5 + $0xf8] sm:$0xff] %vm1143_vm1, %v1142_v57 }
 0x158   : > { %v1094_v17 = vpop.xlane.xlu0 %1093 }
 0x159   : > { %v1141_v18 = vadd.f32 %v2164_v42, %v1094_v17 }
 0x15b   : > { %1174 = vst.msk [vmem:[%s2175_s5 + $0xf0] sm:$0xff] %vm1143_vm1, %v1141_v18 }
 0x15c   : > { %s2425_s6 = smov (!%p1185_p8, %s1184_s6), 32 }
 0x15d   : > { %s1525_s11 = sshll.u32 %s2425_s6, 7 }
 0x15e   : > { %p1528_p9 = scmp.eq.s32.totalorder %s1525_s11, 0 }
 0x15f   : > { %s2285_s12 = sshrl.u32 (!%p1528_p9), %s2425_s6, 5 }
 0x160   : > { %1193 = sbr.rel (%p1528_p9) target bundleno = 404 (0x194), region = 40  ;;  %p1529_p10 = scmp.le.s32.totalorder (!%p1528_p9), %s2285_s12, 0 }
 0x167   : > { %1471 = sbr.rel (%p1529_p10) target bundleno = 383 (0x17f), region = 116  ;;  %s2416_s13 = smov (!%p1529_p10), %s2279_s10 }
 0x168   : > { %s2417_s14 = smov (!%p1529_p10), %s2175_s5  ;;  %s2294_s16 = smov (!%p1529_p10), 0  }
 0x169   : > { %s2296_s2 = smov (!%p1529_p10), 0  }
 0x16e LB: >> { %v1317_v42 = vld [vmem:[%s1694_s14] sm:$0xff]  ;;  %v1319_v58 = vld [vmem:[%s1694_s14 + $0x8] sm:$0xff]  ;;  %v1321_v59 = vld [vmem:[%s1694_s14 + $0x10] sm:$0xff]  ;;  %s1381_s18 = sadd.s32 1, %s1698_s16  ;;  %s1311_s2 = sadd.s32 1, %s1702_s2   ;;  %s1702_s2 = sphi %s2296_s2, %s1311_s2   ;;  %s1698_s16 = sphi %s2294_s16, %s2420_s16   ;;  %s1694_s14 = sphi %s2417_s14, %s2419_s14   ;;  %s1690_s13 = sphi %s2416_s13, %s2418_s13  }
 0x16f   : >> { %1318 = vst [vmem:[%s1690_s13] sm:$0xff] %v1317_v42  ;;  %1320 = vst [vmem:[%s1690_s13 + $0x8] sm:$0xff] %v1319_v58  ;;  %v1323_v19 = vld [vmem:[%s1694_s14 + $0x18] sm:$0xff]  ;;  %v1325_v60 = vld [vmem:[%s1694_s14 + $0x20] sm:$0xff]  ;;  %p1382_p11 = scmp.ge.s32.totalorder %s1381_s18, %s2285_s12  ;;  %p1310_p12 = scmp.ge.s32.totalorder %s1311_s2, %s2285_s12 }
 0x170   : >> { %1322 = vst [vmem:[%s1690_s13 + $0x10] sm:$0xff] %v1321_v59  ;;  %v1327_v61 = vld [vmem:[%s1694_s14 + $0x28] sm:$0xff]  ;;  %1324 = vst [vmem:[%s1690_s13 + $0x18] sm:$0xff] %v1323_v19  ;;  %v1329_v62 = vld [vmem:[%s1694_s14 + $0x30] sm:$0xff] }
 0x171   : >> { %1326 = vst [vmem:[%s1690_s13 + $0x20] sm:$0xff] %v1325_v60  ;;  %1328 = vst [vmem:[%s1690_s13 + $0x28] sm:$0xff] %v1327_v61  ;;  %v1331_v63 = vld [vmem:[%s1694_s14 + $0x38] sm:$0xff]  ;;  %v1333_v28 = vld [vmem:[%s1694_s14 + $0x40] sm:$0xff]  ;;  %s2427_s18 = smov (%p1382_p11, %s1381_s18), 0 }
 0x172   : >> { %1330 = vst [vmem:[%s1690_s13 + $0x30] sm:$0xff] %v1329_v62  ;;  %1332 = vst [vmem:[%s1690_s13 + $0x38] sm:$0xff] %v1331_v63  ;;  %v1335_v0 = vld [vmem:[%s1694_s14 + $0x48] sm:$0xff]  ;;  %v1337_v1 = vld [vmem:[%s1694_s14 + $0x50] sm:$0xff]  ;;  %s1530_s19 = sshll.u32 %s2427_s18, 8  ;;  %s2420_s16 = smov %s2427_s18 }
 0x173   : >> { %1334 = vst [vmem:[%s1690_s13 + $0x40] sm:$0xff] %v1333_v28  ;;  %v1339_v2 = vld [vmem:[%s1694_s14 + $0x58] sm:$0xff]  ;;  %1336 = vst [vmem:[%s1690_s13 + $0x48] sm:$0xff] %v1335_v0  ;;  %v1341_v3 = vld [vmem:[%s1694_s14 + $0x60] sm:$0xff]  ;;  %s2352_s21 = scalar_lea.vmem %s2175_s5, %s1530_s19 [#allocation3]   ;;  %s1387_s22 = scalar_lea.vmem %s2279_s10, %s1530_s19  }
 0x174   : >> { %1338 = vst [vmem:[%s1690_s13 + $0x50] sm:$0xff] %v1337_v1  ;;  %1340 = vst [vmem:[%s1690_s13 + $0x58] sm:$0xff] %v1339_v2  ;;  %v1343_v4 = vld [vmem:[%s1694_s14 + $0x68] sm:$0xff]  ;;  %v1345_v5 = vld [vmem:[%s1694_s14 + $0x70] sm:$0xff] }
 0x175   : >> { %1342 = vst [vmem:[%s1690_s13 + $0x60] sm:$0xff] %v1341_v3  ;;  %1344 = vst [vmem:[%s1690_s13 + $0x68] sm:$0xff] %v1343_v4  ;;  %v1347_v6 = vld [vmem:[%s1694_s14 + $0x78] sm:$0xff]  ;;  %v1349_v7 = vld [vmem:[%s1694_s14 + $0x80] sm:$0xff] }
 0x176   : >> { %1346 = vst [vmem:[%s1690_s13 + $0x70] sm:$0xff] %v1345_v5  ;;  %v1351_v8 = vld [vmem:[%s1694_s14 + $0x88] sm:$0xff]  ;;  %1348 = vst [vmem:[%s1690_s13 + $0x78] sm:$0xff] %v1347_v6  ;;  %v1353_v9 = vld [vmem:[%s1694_s14 + $0x90] sm:$0xff] }
 0x177   : >> { %1350 = vst [vmem:[%s1690_s13 + $0x80] sm:$0xff] %v1349_v7  ;;  %1352 = vst [vmem:[%s1690_s13 + $0x88] sm:$0xff] %v1351_v8  ;;  %v1355_v10 = vld [vmem:[%s1694_s14 + $0x98] sm:$0xff]  ;;  %v1357_v14 = vld [vmem:[%s1694_s14 + $0xa0] sm:$0xff] }
 0x178   : >> { %1354 = vst [vmem:[%s1690_s13 + $0x90] sm:$0xff] %v1353_v9  ;;  %1356 = vst [vmem:[%s1690_s13 + $0x98] sm:$0xff] %v1355_v10  ;;  %v1359_v15 = vld [vmem:[%s1694_s14 + $0xa8] sm:$0xff]  ;;  %v1361_v16 = vld [vmem:[%s1694_s14 + $0xb0] sm:$0xff]  ;;  %1313 = sbr.rel (!%p1310_p12) target bundleno = 366 (0x16e), region = 122 }
 0x179   : >> { %1358 = vst [vmem:[%s1690_s13 + $0xa0] sm:$0xff] %v1357_v14  ;;  %v1363_v20 = vld [vmem:[%s1694_s14 + $0xb8] sm:$0xff]  ;;  %1360 = vst [vmem:[%s1690_s13 + $0xa8] sm:$0xff] %v1359_v15  ;;  %v1365_v21 = vld [vmem:[%s1694_s14 + $0xc0] sm:$0xff] }
 0x17a   : >> { %1362 = vst [vmem:[%s1690_s13 + $0xb0] sm:$0xff] %v1361_v16  ;;  %1364 = vst [vmem:[%s1690_s13 + $0xb8] sm:$0xff] %v1363_v20  ;;  %v1367_v22 = vld [vmem:[%s1694_s14 + $0xc8] sm:$0xff]  ;;  %v1369_v23 = vld [vmem:[%s1694_s14 + $0xd0] sm:$0xff] }
 0x17b   : >> { %1366 = vst [vmem:[%s1690_s13 + $0xc0] sm:$0xff] %v1365_v21  ;;  %1368 = vst [vmem:[%s1690_s13 + $0xc8] sm:$0xff] %v1367_v22  ;;  %v1371_v24 = vld [vmem:[%s1694_s14 + $0xd8] sm:$0xff]  ;;  %v1373_v25 = vld [vmem:[%s1694_s14 + $0xe0] sm:$0xff] }
 0x17c   : >> { %1370 = vst [vmem:[%s1690_s13 + $0xd0] sm:$0xff] %v1369_v23  ;;  %v1375_v26 = vld [vmem:[%s1694_s14 + $0xe8] sm:$0xff]  ;;  %1372 = vst [vmem:[%s1690_s13 + $0xd8] sm:$0xff] %v1371_v24  ;;  %v1377_v27 = vld [vmem:[%s1694_s14 + $0xf0] sm:$0xff] }
 0x17d   : >> { %1374 = vst [vmem:[%s1690_s13 + $0xe0] sm:$0xff] %v1373_v25  ;;  %1376 = vst [vmem:[%s1690_s13 + $0xe8] sm:$0xff] %v1375_v26  ;;  %v1379_v29 = vld [vmem:[%s1694_s14 + $0xf8] sm:$0xff]  ;;  %s2419_s14 = smov %s2352_s21 }
 0x17e   : >> { %1378 = vst [vmem:[%s1690_s13 + $0xf0] sm:$0xff] %v1377_v27  ;;  %1380 = vst [vmem:[%s1690_s13 + $0xf8] sm:$0xff] %v1379_v29  ;;  %s2418_s13 = smov %s1387_s22 }
 0x17f PF: > { %s2393_s23 = sand.u32 31, %s2425_s6   ;;  %s1541_s24 = sshll.u32 %s2285_s12, 8 }
 0x180   : > { %s1392_s25 = scalar_lea.vmem %s2175_s5, %s1541_s24 [#allocation3]   ;;  %s1394_s26 = scalar_lea.vmem %s2279_s10, %s1541_s24  }
 0x181   : > { %p1535_p13 = scmp.le.s32.totalorder %s2393_s23, 0 }
 0x182   : > { %s1704_s27 = smov (!%p1535_p13), %s1394_s26   ;;  %s1708_s28 = smov (!%p1535_p13), %s1392_s25  }
 0x183   : > { %1485 = sbr.rel (%p1535_p13) target bundleno = 404 (0x194), region = 127  ;;  %s1712_s29 = smov (!%p1535_p13), 0  }
 0x184   : > { %s1716_s30 = smov (!%p1535_p13), 0  }
 0x18a LB: >> { %v1404_v30 = vld [vmem:[%s1710_s28] sm:$0xff]  ;;  %s1406_s4 = sadd.s32 1, %s1714_s29  ;;  %s1398_s30 = sadd.s32 1, %s1718_s30   ;;  %s1718_s30 = sphi %s1716_s30, %s1398_s30   ;;  %s1714_s29 = sphi %s1712_s29, %s1713_s29   ;;  %s1710_s28 = sphi %s1708_s28, %s1411_s28   ;;  %s1706_s27 = sphi %s1704_s27, %s1412_s27  }
 0x18b   : >> { %1405 = vst [vmem:[%s1706_s27] sm:$0xff] %v1404_v30  ;;  %p1407_p0 = scmp.ge.s32.totalorder %s1406_s4, %s2393_s23  ;;  %p1397_p1 = scmp.ge.s32.totalorder %s1398_s30, %s2393_s23 }
 0x18d   : >> { %s2429_s4 = smov (%p1407_p0, %s1406_s4), 0  ;;  %1400 = sbr.rel (!%p1397_p1) target bundleno = 394 (0x18a), region = 133 }
 0x18e   : >> { %s1536_s5 = sshll.u32 %s2429_s4, 3  ;;  %s1713_s29 = smov %s2429_s4  }
 0x18f   : >> { %s1411_s28 = scalar_lea.vmem %s1392_s25, %s1536_s5 [#allocation3]   ;;  %s1412_s27 = scalar_lea.vmem %s1394_s26, %s1536_s5  }
 0x194 PF: > { %p12_p2 = scmp.ge.s32.totalorder %s1758_s17, 9   ;;  %s2421_s14 = smov %s1682_s15 }
 0x195   : > { %s2422_s15 = smov %s1766_s20  ;;  %s2423_s16 = smov %s1758_s17 }
 0x196   :  { %14 = sbr.rel (!%p12_p2) target bundleno = 5 (0x5), region = 144 }

</bundles_post_ra>
